<compile_context>
chip_gen: v7x
topology: tpu7x:2x2x1
jax: 0.10.0
libtpu: 0.0.40
codegen_flags: <defaults>
</compile_context>

<pallas_src>
import jax
import jax.numpy as jnp
from jax.experimental import pallas as pl
from jax.experimental.pallas import tpu as pltpu

# ----------------------------- configuration --------------------------------
SRC_VOCAB = 50
TGT_VOCAB = 50
EMBED_DIM = 32
HIDDEN_DIM = 32
SEQ_LEN = 8          # source sequence length
BATCH = 2
MAX_LEN = 6          # decoder steps (max_length in inference)
SOS_IDX = 1
VOCAB_PAD = 128      # lane-dense padded vocab (embeddings / logits)

_VMEM = pl.BlockSpec(memory_space=pltpu.MemorySpace.VMEM)


# ----------------------------- fused kernel ----------------------------------
def _lstm_step(gates_x, h, c, whh, H):
    """One LSTM cell step with the input-side gates precomputed.
    gates layout follows PyTorch: [i, f, g, o] over the 4H=128 lanes."""
    gates = gates_x + jnp.dot(h, whh, preferred_element_type=jnp.float32)   # [B, 4H]
    # Full-vreg EUP transcendentals (2 ops instead of 4 partial ones),
    # then cheap lane sub-slices.
    # TODO(synk): gate slices live in different 32-lane quarters; explicit
    # pltpu.roll realignment could shave XLU latency on v6e/v7x if the bundle
    # dump shows a permute/copy fallback instead of vrot.
    sig = jax.nn.sigmoid(gates)
    th = jnp.tanh(gates)
    i = sig[:, 0 * H:1 * H]
    f = sig[:, 1 * H:2 * H]
    g = th[:, 2 * H:3 * H]
    o = sig[:, 3 * H:4 * H]
    c_new = f * c + i * g
    h_new = o * jnp.tanh(c_new)
    return h_new, c_new


def seq2seq_kernel(src_ref,                       # [S*B, 1] int32 tokens, row = s*B + b
                   enc_table_ref,                 # [VP, 4H]  enc_emb @ enc_wih^T (folded)
                   enc_whh_ref, enc_b_ref,        # [H, 4H], [1, 4H]
                   dec_table_ref,                 # [VP, 4H]  dec_emb @ dec_wih^T (folded)
                   dec_whh_ref, dec_b_ref,        # [H, 4H], [1, 4H]
                   wc_dec_ref, wc_ctx_ref, bc_ref,  # [H,H], [H,H], [1,H]
                   wo_ref, bo_ref,                # [H, VP], [1, VP]
                   logits_ref):                   # out: [T*B, VP], row = t*B + b
    B = BATCH
    SB = src_ref.shape[0]
    S = SB // B
    T = logits_ref.shape[0] // B
    VP = logits_ref.shape[1]
    H = HIDDEN_DIM

    # ---- hoisted weight / bias reads & broadcasts (kernel is fully unrolled) ----
    enc_table = enc_table_ref[...]
    enc_whh = enc_whh_ref[...]
    dec_table = dec_table_ref[...]
    dec_whh = dec_whh_ref[...]
    dec_bias = jnp.broadcast_to(dec_b_ref[...], (B, 4 * H))
    wc_dec = wc_dec_ref[...]
    wc_ctx = wc_ctx_ref[...]
    bc = jnp.broadcast_to(bc_ref[...], (B, H))
    wo = wo_ref[...]
    bo = jnp.broadcast_to(bo_ref[...], (B, VP))

    lane_sb = jax.lax.broadcasted_iota(jnp.int32, (SB, VP), 1)   # for encoder one-hots
    lane_bv = jax.lax.broadcasted_iota(jnp.int32, (B, VP), 1)    # for decoder one-hots / argmax
    neg_inf = jnp.float32(-jnp.inf)

    # ------------------------------ encoder ---------------------------------
    # Whole input path in ONE matmul, off the recurrent chain (tokens known up front).
    src_tok = src_ref[...]                                       # [S*B, 1] int32
    onehot_all = (lane_sb == src_tok).astype(jnp.float32)        # [S*B, VP]
    gates_x_all = (jnp.dot(onehot_all, enc_table,
                           preferred_element_type=jnp.float32)
                   + jnp.broadcast_to(enc_b_ref[...], (SB, 4 * H)))   # [S*B, 4H]

    h = jnp.zeros((B, H), jnp.float32)
    c = jnp.zeros((B, H), jnp.float32)
    hs = []                                                      # encoder states stay in vregs
    for t in range(S):                                           # S = 8, fully unrolled
        gx = gates_x_all[t * B:(t + 1) * B, :]                   # [B, 4H]
        h, c = _lstm_step(gx, h, c, enc_whh, H)
        hs.append(h)

    enc_flat = jnp.concatenate(hs, axis=0)                       # [S*B, H], row = s*B + b
    enc_T = enc_flat.T                                           # [H, S*B]  (one-time transpose)

    # cross-batch mask for the flattened attention scores: col j belongs to batch j % B
    col_b = jax.lax.broadcasted_iota(jnp.int32, (B, SB), 1) % B
    row_b = jax.lax.broadcasted_iota(jnp.int32, (B, SB), 0)
    valid = col_b == row_b                                       # [B, S*B]

    # ------------------------------ decoder ---------------------------------
    tok = jnp.full((B, 1), SOS_IDX, dtype=jnp.int32)             # <sos> start token
    for step in range(T):                                        # T = 6, fully unrolled
        onehot = (lane_bv == tok).astype(jnp.float32)            # [B, VP]
        gx = jnp.dot(onehot, dec_table,
                     preferred_element_type=jnp.float32) + dec_bias   # [B, 4H]
        h, c = _lstm_step(gx, h, c, dec_whh, H)

        # dot attention as plain 2-D MXU matmuls on the flattened encoder slab
        scores = jnp.dot(h, enc_T, preferred_element_type=jnp.float32)     # [B, S*B]
        scores = jnp.where(valid, scores, neg_inf)
        m = jnp.max(scores, axis=-1, keepdims=True)
        ex = jnp.exp(scores - m)
        attn = ex * pl.reciprocal(jnp.sum(ex, axis=-1, keepdims=True),
                                  approx=True)                            # softmax over seq
        context = jnp.dot(attn, enc_flat,
                          preferred_element_type=jnp.float32)             # [B, H]

        # context_combiner without the lane-axis concat: split weight, sum in f32
        comb = jnp.tanh(jnp.dot(h, wc_dec, preferred_element_type=jnp.float32)
                        + jnp.dot(context, wc_ctx, preferred_element_type=jnp.float32)
                        + bc)
        pred = jnp.dot(comb, wo, preferred_element_type=jnp.float32) + bo  # [B, VP]
        logits_ref[step * B:(step + 1) * B, :] = pred                      # lane-dense store

        # greedy feedback (teacher forcing disabled): in-kernel argmax over real vocab.
        # NOTE: lanes >= TGT_VOCAB carry exactly-zero padded logits; the mask below
        # must stay coupled to that zero-padding invariant.
        masked = jnp.where(lane_bv < TGT_VOCAB, pred, neg_inf)
        maxv = jnp.max(masked, axis=1, keepdims=True)
        first_hit = jnp.min(
            jnp.where(masked == maxv, lane_bv.astype(jnp.float32), float(VP)),
            axis=1, keepdims=True)
        tok = first_hit.astype(jnp.int32)                                  # [B, 1]


# ----------------------------- wrapper ----------------------------------------
def _seq2seq_forward(source_seq, params, max_length=MAX_LEN):
    """source_seq: [S, B] int32.  Returns logits [max_length, B, TGT_VOCAB]."""
    S, B = source_seq.shape
    # time-major flatten: row index = s*B + b (matches the per-step slices in-kernel)
    src_flat = source_seq.reshape(S * B, 1).astype(jnp.int32)

    logits_flat = pl.pallas_call(
        seq2seq_kernel,
        out_shape=jax.ShapeDtypeStruct((max_length * B, VOCAB_PAD), jnp.float32),
        in_specs=[_VMEM] * 12,
        out_specs=_VMEM,
    )(src_flat,
      params["enc_table"], params["enc_whh_t"], params["enc_b"],
      params["dec_table"], params["dec_whh_t"], params["dec_b"],
      params["wc_dec"], params["wc_ctx"], params["bc"],
      params["wo_t"], params["bo"])

    logits = logits_flat.reshape(max_length, B, VOCAB_PAD)
    return logits[:, :, :TGT_VOCAB]                    # drop lane padding


seq2seq_forward = jax.jit(_seq2seq_forward, static_argnames=("max_length",))


# ----------------------------- parameter init --------------------------------
def init_params(key):
    H, E, VP = HIDDEN_DIM, EMBED_DIM, VOCAB_PAD
    ks = jax.random.split(key, 12)
    u = lambda k, shape, bound: jax.random.uniform(k, shape, jnp.float32, -bound, bound)
    kb = 1.0 / jnp.sqrt(H)
    kc = 1.0 / jnp.sqrt(2 * H)

    # embeddings (N(0,1) like nn.Embedding), padded to 128 vocab rows with zeros
    enc_embed = jnp.zeros((VP, E), jnp.float32).at[:SRC_VOCAB].set(
        jax.random.normal(ks[0], (SRC_VOCAB, E), jnp.float32))
    dec_embed = jnp.zeros((VP, E), jnp.float32).at[:TGT_VOCAB].set(
        jax.random.normal(ks[1], (TGT_VOCAB, E), jnp.float32))

    # LSTM weights stored transposed: x @ W^T == x @ W_t ; gate order [i,f,g,o]
    enc_wih_t = u(ks[2], (E, 4 * H), kb)
    enc_whh_t = u(ks[3], (H, 4 * H), kb)
    enc_b = u(ks[4], (1, 4 * H), kb)                    # b_ih + b_hh folded
    dec_wih_t = u(ks[5], (E, 4 * H), kb)
    dec_whh_t = u(ks[6], (H, 4 * H), kb)
    dec_b = u(ks[7], (1, 4 * H), kb)

    # context_combiner Linear(2H -> H): W^T is [2H, H]; split into dec/ctx halves
    wc_full = u(ks[8], (2 * H, H), kc)

    # out_projection Linear(H -> V): pad output lanes to 128 with zeros
    wo_t = jnp.zeros((H, VP), jnp.float32).at[:, :TGT_VOCAB].set(
        u(ks[10], (H, TGT_VOCAB), kb))
    bo = jnp.zeros((1, VP), jnp.float32).at[:, :TGT_VOCAB].set(
        u(ks[11], (1, TGT_VOCAB), kb))

    return {
        # folded embedding @ input-weight tables (dropout=0 -> fold is exact)
        "enc_table": jnp.dot(enc_embed, enc_wih_t),     # [VP, 4H]
        "dec_table": jnp.dot(dec_embed, dec_wih_t),     # [VP, 4H]
        # recurrent weights / biases
        "enc_whh_t": enc_whh_t,
        "enc_b": enc_b,
        "dec_whh_t": dec_whh_t,
        "dec_b": dec_b,
        # context_combiner split (avoids lane-axis concat in-kernel)
        "wc_dec": wc_full[:H],
        "wc_ctx": wc_full[H:],
        "bc": u(ks[9], (1, H), kc),
        # out_projection (lane-padded)
        "wo_t": wo_t,
        "bo": bo,
    }
# TODO(synk): bidirectional encoder / n_layers>1 / 'general'&'concat' attention
# variants and stochastic teacher forcing are not exercised in this synthetic
# config (n_layers=1, birnn=False, attn='dot', dropout=0, tf_ratio=0).


# ----------------------------- main -------------------------------------------
if __name__ == "__main__":
    key = jax.random.PRNGKey(0)
    pkey, dkey = jax.random.split(key)
    params = init_params(pkey)

    source_seq = jax.random.randint(dkey, (SEQ_LEN, BATCH), 0, SRC_VOCAB,
                                    dtype=jnp.int32)

    out = seq2seq_forward(source_seq, params, max_length=MAX_LEN)
    out = jax.block_until_ready(out)
    assert out.shape == (MAX_LEN, BATCH, TGT_VOCAB), out.shape
    assert bool(jnp.all(jnp.isfinite(out)))
    print("KERNEL_OK")
</pallas_src>

<mosaic_0001>
module attributes {stable_mosaic.version = 11 : i64} {
  func.func @seq2seq_kernel(%arg0: memref<16x1xi32, #tpu.memory_space<vmem>>, %arg1: memref<128x128xf32, #tpu.memory_space<vmem>>, %arg2: memref<32x128xf32, #tpu.memory_space<vmem>>, %arg3: memref<1x128xf32, #tpu.memory_space<vmem>>, %arg4: memref<128x128xf32, #tpu.memory_space<vmem>>, %arg5: memref<32x128xf32, #tpu.memory_space<vmem>>, %arg6: memref<1x128xf32, #tpu.memory_space<vmem>>, %arg7: memref<32x32xf32, #tpu.memory_space<vmem>>, %arg8: memref<32x32xf32, #tpu.memory_space<vmem>>, %arg9: memref<1x32xf32, #tpu.memory_space<vmem>>, %arg10: memref<32x128xf32, #tpu.memory_space<vmem>>, %arg11: memref<1x128xf32, #tpu.memory_space<vmem>>, %arg12: memref<12x128xf32, #tpu.memory_space<vmem>>) attributes {dimension_semantics = [], scalar_prefetch = 0 : i64, scratch_operands = 0 : i64, tpu.core_type = #tpu.core_type<tc>} {
    %c0 = arith.constant 0 : index
    %c0_0 = arith.constant 0 : index
    %0 = vector.load %arg1[%c0, %c0_0] : memref<128x128xf32, #tpu.memory_space<vmem>>, vector<128x128xf32>
    %c0_1 = arith.constant 0 : index
    %c0_2 = arith.constant 0 : index
    %1 = vector.load %arg2[%c0_1, %c0_2] : memref<32x128xf32, #tpu.memory_space<vmem>>, vector<32x128xf32>
    %c0_3 = arith.constant 0 : index
    %c0_4 = arith.constant 0 : index
    %2 = vector.load %arg4[%c0_3, %c0_4] : memref<128x128xf32, #tpu.memory_space<vmem>>, vector<128x128xf32>
    %c0_5 = arith.constant 0 : index
    %c0_6 = arith.constant 0 : index
    %3 = vector.load %arg5[%c0_5, %c0_6] : memref<32x128xf32, #tpu.memory_space<vmem>>, vector<32x128xf32>
    %c0_7 = arith.constant 0 : index
    %c0_8 = arith.constant 0 : index
    %4 = vector.load %arg6[%c0_7, %c0_8] : memref<1x128xf32, #tpu.memory_space<vmem>>, vector<1x128xf32>
    %5 = vector.shape_cast %4 : vector<1x128xf32> to vector<1x128xf32>
    %6 = vector.broadcast %5 : vector<1x128xf32> to vector<2x128xf32>
    %c0_9 = arith.constant 0 : index
    %c0_10 = arith.constant 0 : index
    %7 = vector.load %arg7[%c0_9, %c0_10] : memref<32x32xf32, #tpu.memory_space<vmem>>, vector<32x32xf32>
    %c0_11 = arith.constant 0 : index
    %c0_12 = arith.constant 0 : index
    %8 = vector.load %arg8[%c0_11, %c0_12] : memref<32x32xf32, #tpu.memory_space<vmem>>, vector<32x32xf32>
    %c0_13 = arith.constant 0 : index
    %c0_14 = arith.constant 0 : index
    %9 = vector.load %arg9[%c0_13, %c0_14] : memref<1x32xf32, #tpu.memory_space<vmem>>, vector<1x32xf32>
    %10 = vector.shape_cast %9 : vector<1x32xf32> to vector<1x32xf32>
    %11 = vector.broadcast %10 : vector<1x32xf32> to vector<2x32xf32>
    %c0_15 = arith.constant 0 : index
    %c0_16 = arith.constant 0 : index
    %12 = vector.load %arg10[%c0_15, %c0_16] : memref<32x128xf32, #tpu.memory_space<vmem>>, vector<32x128xf32>
    %c0_17 = arith.constant 0 : index
    %c0_18 = arith.constant 0 : index
    %13 = vector.load %arg11[%c0_17, %c0_18] : memref<1x128xf32, #tpu.memory_space<vmem>>, vector<1x128xf32>
    %14 = vector.shape_cast %13 : vector<1x128xf32> to vector<1x128xf32>
    %15 = vector.broadcast %14 : vector<1x128xf32> to vector<2x128xf32>
    %16 = tpu.iota {dimensions = array<i32: 1>} : vector<16x128xi32>
    %17 = tpu.iota {dimensions = array<i32: 1>} : vector<2x128xi32>
    %c0_19 = arith.constant 0 : index
    %c0_20 = arith.constant 0 : index
    %18 = vector.load %arg0[%c0_19, %c0_20] : memref<16x1xi32, #tpu.memory_space<vmem>>, vector<16x1xi32>
    %19 = vector.broadcast %18 : vector<16x1xi32> to vector<16x128xi32>
    %20 = arith.cmpi eq, %16, %19 : vector<16x128xi32>
    %21 = arith.extui %20 : vector<16x128xi1> to vector<16x128xi32>
    %22 = arith.sitofp %21 : vector<16x128xi32> to vector<16x128xf32>
    %cst = arith.constant dense<0.000000e+00> : vector<16x128xf32>
    %23 = tpu.matmul %22, %0, %cst {dimension_numbers = #tpu.dot_dimension_numbers<[1], [0], [0], [1], [0, 0, 1, 1], [], []>} : vector<16x128xf32>, vector<128x128xf32>, vector<16x128xf32> -> vector<16x128xf32>
    %c0_21 = arith.constant 0 : index
    %c0_22 = arith.constant 0 : index
    %24 = vector.load %arg3[%c0_21, %c0_22] : memref<1x128xf32, #tpu.memory_space<vmem>>, vector<1x128xf32>
    %25 = vector.shape_cast %24 : vector<1x128xf32> to vector<1x128xf32>
    %26 = vector.broadcast %25 : vector<1x128xf32> to vector<16x128xf32>
    %27 = arith.addf %23, %26 : vector<16x128xf32>
    %cst_23 = arith.constant 0.000000e+00 : f32
    %28 = vector.broadcast %cst_23 : f32 to vector<2x32xf32>
    %cst_24 = arith.constant 0.000000e+00 : f32
    %29 = vector.broadcast %cst_24 : f32 to vector<2x32xf32>
    %30 = vector.extract_strided_slice %27 {offsets = [0, 0], sizes = [2, 128], strides = [1, 1]} : vector<16x128xf32> to vector<2x128xf32>
    %cst_25 = arith.constant dense<0.000000e+00> : vector<2x128xf32>
    %31 = tpu.matmul %28, %1, %cst_25 {dimension_numbers = #tpu.dot_dimension_numbers<[1], [0], [0], [1], [0, 0, 1, 1], [], []>} : vector<2x32xf32>, vector<32x128xf32>, vector<2x128xf32> -> vector<2x128xf32>
    %32 = arith.addf %30, %31 : vector<2x128xf32>
    %33 = arith.negf %32 : vector<2x128xf32>
    %34 = math.exp %33 : vector<2x128xf32>
    %cst_26 = arith.constant 1.000000e+00 : f32
    %35 = vector.broadcast %cst_26 : f32 to vector<2x128xf32>
    %36 = arith.addf %35, %34 : vector<2x128xf32>
    %37 = arith.divf %35, %36 : vector<2x128xf32>
    %38 = math.tanh %32 : vector<2x128xf32>
    %39 = vector.extract_strided_slice %37 {offsets = [0, 0], sizes = [2, 32], strides = [1, 1]} : vector<2x128xf32> to vector<2x32xf32>
    %40 = vector.extract_strided_slice %37 {offsets = [0, 32], sizes = [2, 32], strides = [1, 1]} : vector<2x128xf32> to vector<2x32xf32>
    %41 = vector.extract_strided_slice %38 {offsets = [0, 64], sizes = [2, 32], strides = [1, 1]} : vector<2x128xf32> to vector<2x32xf32>
    %42 = vector.extract_strided_slice %37 {offsets = [0, 96], sizes = [2, 32], strides = [1, 1]} : vector<2x128xf32> to vector<2x32xf32>
    %43 = arith.mulf %40, %29 : vector<2x32xf32>
    %44 = arith.mulf %39, %41 : vector<2x32xf32>
    %45 = arith.addf %43, %44 : vector<2x32xf32>
    %46 = math.tanh %45 : vector<2x32xf32>
    %47 = arith.mulf %42, %46 : vector<2x32xf32>
    %48 = vector.extract_strided_slice %27 {offsets = [2, 0], sizes = [2, 128], strides = [1, 1]} : vector<16x128xf32> to vector<2x128xf32>
    %cst_27 = arith.constant dense<0.000000e+00> : vector<2x128xf32>
    %49 = tpu.matmul %47, %1, %cst_27 {dimension_numbers = #tpu.dot_dimension_numbers<[1], [0], [0], [1], [0, 0, 1, 1], [], []>} : vector<2x32xf32>, vector<32x128xf32>, vector<2x128xf32> -> vector<2x128xf32>
    %50 = arith.addf %48, %49 : vector<2x128xf32>
    %51 = arith.negf %50 : vector<2x128xf32>
    %52 = math.exp %51 : vector<2x128xf32>
    %cst_28 = arith.constant 1.000000e+00 : f32
    %53 = vector.broadcast %cst_28 : f32 to vector<2x128xf32>
    %54 = arith.addf %53, %52 : vector<2x128xf32>
    %55 = arith.divf %53, %54 : vector<2x128xf32>
    %56 = math.tanh %50 : vector<2x128xf32>
    %57 = vector.extract_strided_slice %55 {offsets = [0, 0], sizes = [2, 32], strides = [1, 1]} : vector<2x128xf32> to vector<2x32xf32>
    %58 = vector.extract_strided_slice %55 {offsets = [0, 32], sizes = [2, 32], strides = [1, 1]} : vector<2x128xf32> to vector<2x32xf32>
    %59 = vector.extract_strided_slice %56 {offsets = [0, 64], sizes = [2, 32], strides = [1, 1]} : vector<2x128xf32> to vector<2x32xf32>
    %60 = vector.extract_strided_slice %55 {offsets = [0, 96], sizes = [2, 32], strides = [1, 1]} : vector<2x128xf32> to vector<2x32xf32>
    %61 = arith.mulf %58, %45 : vector<2x32xf32>
    %62 = arith.mulf %57, %59 : vector<2x32xf32>
    %63 = arith.addf %61, %62 : vector<2x32xf32>
    %64 = math.tanh %63 : vector<2x32xf32>
    %65 = arith.mulf %60, %64 : vector<2x32xf32>
    %66 = vector.extract_strided_slice %27 {offsets = [4, 0], sizes = [2, 128], strides = [1, 1]} : vector<16x128xf32> to vector<2x128xf32>
    %cst_29 = arith.constant dense<0.000000e+00> : vector<2x128xf32>
    %67 = tpu.matmul %65, %1, %cst_29 {dimension_numbers = #tpu.dot_dimension_numbers<[1], [0], [0], [1], [0, 0, 1, 1], [], []>} : vector<2x32xf32>, vector<32x128xf32>, vector<2x128xf32> -> vector<2x128xf32>
    %68 = arith.addf %66, %67 : vector<2x128xf32>
    %69 = arith.negf %68 : vector<2x128xf32>
    %70 = math.exp %69 : vector<2x128xf32>
    %cst_30 = arith.constant 1.000000e+00 : f32
    %71 = vector.broadcast %cst_30 : f32 to vector<2x128xf32>
    %72 = arith.addf %71, %70 : vector<2x128xf32>
    %73 = arith.divf %71, %72 : vector<2x128xf32>
    %74 = math.tanh %68 : vector<2x128xf32>
    %75 = vector.extract_strided_slice %73 {offsets = [0, 0], sizes = [2, 32], strides = [1, 1]} : vector<2x128xf32> to vector<2x32xf32>
    %76 = vector.extract_strided_slice %73 {offsets = [0, 32], sizes = [2, 32], strides = [1, 1]} : vector<2x128xf32> to vector<2x32xf32>
    %77 = vector.extract_strided_slice %74 {offsets = [0, 64], sizes = [2, 32], strides = [1, 1]} : vector<2x128xf32> to vector<2x32xf32>
    %78 = vector.extract_strided_slice %73 {offsets = [0, 96], sizes = [2, 32], strides = [1, 1]} : vector<2x128xf32> to vector<2x32xf32>
    %79 = arith.mulf %76, %63 : vector<2x32xf32>
    %80 = arith.mulf %75, %77 : vector<2x32xf32>
    %81 = arith.addf %79, %80 : vector<2x32xf32>
    %82 = math.tanh %81 : vector<2x32xf32>
    %83 = arith.mulf %78, %82 : vector<2x32xf32>
    %84 = vector.extract_strided_slice %27 {offsets = [6, 0], sizes = [2, 128], strides = [1, 1]} : vector<16x128xf32> to vector<2x128xf32>
    %cst_31 = arith.constant dense<0.000000e+00> : vector<2x128xf32>
    %85 = tpu.matmul %83, %1, %cst_31 {dimension_numbers = #tpu.dot_dimension_numbers<[1], [0], [0], [1], [0, 0, 1, 1], [], []>} : vector<2x32xf32>, vector<32x128xf32>, vector<2x128xf32> -> vector<2x128xf32>
    %86 = arith.addf %84, %85 : vector<2x128xf32>
    %87 = arith.negf %86 : vector<2x128xf32>
    %88 = math.exp %87 : vector<2x128xf32>
    %cst_32 = arith.constant 1.000000e+00 : f32
    %89 = vector.broadcast %cst_32 : f32 to vector<2x128xf32>
    %90 = arith.addf %89, %88 : vector<2x128xf32>
    %91 = arith.divf %89, %90 : vector<2x128xf32>
    %92 = math.tanh %86 : vector<2x128xf32>
    %93 = vector.extract_strided_slice %91 {offsets = [0, 0], sizes = [2, 32], strides = [1, 1]} : vector<2x128xf32> to vector<2x32xf32>
    %94 = vector.extract_strided_slice %91 {offsets = [0, 32], sizes = [2, 32], strides = [1, 1]} : vector<2x128xf32> to vector<2x32xf32>
    %95 = vector.extract_strided_slice %92 {offsets = [0, 64], sizes = [2, 32], strides = [1, 1]} : vector<2x128xf32> to vector<2x32xf32>
    %96 = vector.extract_strided_slice %91 {offsets = [0, 96], sizes = [2, 32], strides = [1, 1]} : vector<2x128xf32> to vector<2x32xf32>
    %97 = arith.mulf %94, %81 : vector<2x32xf32>
    %98 = arith.mulf %93, %95 : vector<2x32xf32>
    %99 = arith.addf %97, %98 : vector<2x32xf32>
    %100 = math.tanh %99 : vector<2x32xf32>
    %101 = arith.mulf %96, %100 : vector<2x32xf32>
    %102 = vector.extract_strided_slice %27 {offsets = [8, 0], sizes = [2, 128], strides = [1, 1]} : vector<16x128xf32> to vector<2x128xf32>
    %cst_33 = arith.constant dense<0.000000e+00> : vector<2x128xf32>
    %103 = tpu.matmul %101, %1, %cst_33 {dimension_numbers = #tpu.dot_dimension_numbers<[1], [0], [0], [1], [0, 0, 1, 1], [], []>} : vector<2x32xf32>, vector<32x128xf32>, vector<2x128xf32> -> vector<2x128xf32>
    %104 = arith.addf %102, %103 : vector<2x128xf32>
    %105 = arith.negf %104 : vector<2x128xf32>
    %106 = math.exp %105 : vector<2x128xf32>
    %cst_34 = arith.constant 1.000000e+00 : f32
    %107 = vector.broadcast %cst_34 : f32 to vector<2x128xf32>
    %108 = arith.addf %107, %106 : vector<2x128xf32>
    %109 = arith.divf %107, %108 : vector<2x128xf32>
    %110 = math.tanh %104 : vector<2x128xf32>
    %111 = vector.extract_strided_slice %109 {offsets = [0, 0], sizes = [2, 32], strides = [1, 1]} : vector<2x128xf32> to vector<2x32xf32>
    %112 = vector.extract_strided_slice %109 {offsets = [0, 32], sizes = [2, 32], strides = [1, 1]} : vector<2x128xf32> to vector<2x32xf32>
    %113 = vector.extract_strided_slice %110 {offsets = [0, 64], sizes = [2, 32], strides = [1, 1]} : vector<2x128xf32> to vector<2x32xf32>
    %114 = vector.extract_strided_slice %109 {offsets = [0, 96], sizes = [2, 32], strides = [1, 1]} : vector<2x128xf32> to vector<2x32xf32>
    %115 = arith.mulf %112, %99 : vector<2x32xf32>
    %116 = arith.mulf %111, %113 : vector<2x32xf32>
    %117 = arith.addf %115, %116 : vector<2x32xf32>
    %118 = math.tanh %117 : vector<2x32xf32>
    %119 = arith.mulf %114, %118 : vector<2x32xf32>
    %120 = vector.extract_strided_slice %27 {offsets = [10, 0], sizes = [2, 128], strides = [1, 1]} : vector<16x128xf32> to vector<2x128xf32>
    %cst_35 = arith.constant dense<0.000000e+00> : vector<2x128xf32>
    %121 = tpu.matmul %119, %1, %cst_35 {dimension_numbers = #tpu.dot_dimension_numbers<[1], [0], [0], [1], [0, 0, 1, 1], [], []>} : vector<2x32xf32>, vector<32x128xf32>, vector<2x128xf32> -> vector<2x128xf32>
    %122 = arith.addf %120, %121 : vector<2x128xf32>
    %123 = arith.negf %122 : vector<2x128xf32>
    %124 = math.exp %123 : vector<2x128xf32>
    %cst_36 = arith.constant 1.000000e+00 : f32
    %125 = vector.broadcast %cst_36 : f32 to vector<2x128xf32>
    %126 = arith.addf %125, %124 : vector<2x128xf32>
    %127 = arith.divf %125, %126 : vector<2x128xf32>
    %128 = math.tanh %122 : vector<2x128xf32>
    %129 = vector.extract_strided_slice %127 {offsets = [0, 0], sizes = [2, 32], strides = [1, 1]} : vector<2x128xf32> to vector<2x32xf32>
    %130 = vector.extract_strided_slice %127 {offsets = [0, 32], sizes = [2, 32], strides = [1, 1]} : vector<2x128xf32> to vector<2x32xf32>
    %131 = vector.extract_strided_slice %128 {offsets = [0, 64], sizes = [2, 32], strides = [1, 1]} : vector<2x128xf32> to vector<2x32xf32>
    %132 = vector.extract_strided_slice %127 {offsets = [0, 96], sizes = [2, 32], strides = [1, 1]} : vector<2x128xf32> to vector<2x32xf32>
    %133 = arith.mulf %130, %117 : vector<2x32xf32>
    %134 = arith.mulf %129, %131 : vector<2x32xf32>
    %135 = arith.addf %133, %134 : vector<2x32xf32>
    %136 = math.tanh %135 : vector<2x32xf32>
    %137 = arith.mulf %132, %136 : vector<2x32xf32>
    %138 = vector.extract_strided_slice %27 {offsets = [12, 0], sizes = [2, 128], strides = [1, 1]} : vector<16x128xf32> to vector<2x128xf32>
    %cst_37 = arith.constant dense<0.000000e+00> : vector<2x128xf32>
    %139 = tpu.matmul %137, %1, %cst_37 {dimension_numbers = #tpu.dot_dimension_numbers<[1], [0], [0], [1], [0, 0, 1, 1], [], []>} : vector<2x32xf32>, vector<32x128xf32>, vector<2x128xf32> -> vector<2x128xf32>
    %140 = arith.addf %138, %139 : vector<2x128xf32>
    %141 = arith.negf %140 : vector<2x128xf32>
    %142 = math.exp %141 : vector<2x128xf32>
    %cst_38 = arith.constant 1.000000e+00 : f32
    %143 = vector.broadcast %cst_38 : f32 to vector<2x128xf32>
    %144 = arith.addf %143, %142 : vector<2x128xf32>
    %145 = arith.divf %143, %144 : vector<2x128xf32>
    %146 = math.tanh %140 : vector<2x128xf32>
    %147 = vector.extract_strided_slice %145 {offsets = [0, 0], sizes = [2, 32], strides = [1, 1]} : vector<2x128xf32> to vector<2x32xf32>
    %148 = vector.extract_strided_slice %145 {offsets = [0, 32], sizes = [2, 32], strides = [1, 1]} : vector<2x128xf32> to vector<2x32xf32>
    %149 = vector.extract_strided_slice %146 {offsets = [0, 64], sizes = [2, 32], strides = [1, 1]} : vector<2x128xf32> to vector<2x32xf32>
    %150 = vector.extract_strided_slice %145 {offsets = [0, 96], sizes = [2, 32], strides = [1, 1]} : vector<2x128xf32> to vector<2x32xf32>
    %151 = arith.mulf %148, %135 : vector<2x32xf32>
    %152 = arith.mulf %147, %149 : vector<2x32xf32>
    %153 = arith.addf %151, %152 : vector<2x32xf32>
    %154 = math.tanh %153 : vector<2x32xf32>
    %155 = arith.mulf %150, %154 : vector<2x32xf32>
    %156 = vector.extract_strided_slice %27 {offsets = [14, 0], sizes = [2, 128], strides = [1, 1]} : vector<16x128xf32> to vector<2x128xf32>
    %cst_39 = arith.constant dense<0.000000e+00> : vector<2x128xf32>
    %157 = tpu.matmul %155, %1, %cst_39 {dimension_numbers = #tpu.dot_dimension_numbers<[1], [0], [0], [1], [0, 0, 1, 1], [], []>} : vector<2x32xf32>, vector<32x128xf32>, vector<2x128xf32> -> vector<2x128xf32>
    %158 = arith.addf %156, %157 : vector<2x128xf32>
    %159 = arith.negf %158 : vector<2x128xf32>
    %160 = math.exp %159 : vector<2x128xf32>
    %cst_40 = arith.constant 1.000000e+00 : f32
    %161 = vector.broadcast %cst_40 : f32 to vector<2x128xf32>
    %162 = arith.addf %161, %160 : vector<2x128xf32>
    %163 = arith.divf %161, %162 : vector<2x128xf32>
    %164 = math.tanh %158 : vector<2x128xf32>
    %165 = vector.extract_strided_slice %163 {offsets = [0, 0], sizes = [2, 32], strides = [1, 1]} : vector<2x128xf32> to vector<2x32xf32>
    %166 = vector.extract_strided_slice %163 {offsets = [0, 32], sizes = [2, 32], strides = [1, 1]} : vector<2x128xf32> to vector<2x32xf32>
    %167 = vector.extract_strided_slice %164 {offsets = [0, 64], sizes = [2, 32], strides = [1, 1]} : vector<2x128xf32> to vector<2x32xf32>
    %168 = vector.extract_strided_slice %163 {offsets = [0, 96], sizes = [2, 32], strides = [1, 1]} : vector<2x128xf32> to vector<2x32xf32>
    %169 = arith.mulf %166, %153 : vector<2x32xf32>
    %170 = arith.mulf %165, %167 : vector<2x32xf32>
    %171 = arith.addf %169, %170 : vector<2x32xf32>
    %172 = math.tanh %171 : vector<2x32xf32>
    %173 = arith.mulf %168, %172 : vector<2x32xf32>
    %174 = tpu.concatenate %47, %65, %83, %101, %119, %137, %155, %173 in 0 : vector<2x32xf32>, vector<2x32xf32>, vector<2x32xf32>, vector<2x32xf32>, vector<2x32xf32>, vector<2x32xf32>, vector<2x32xf32>, vector<2x32xf32> -> vector<16x32xf32>
    %175 = tpu.transpose %174, [1, 0] : vector<16x32xf32> -> vector<32x16xf32>
    %176 = tpu.iota {dimensions = array<i32: 1>} : vector<2x16xi32>
    %c2_i32 = arith.constant 2 : i32
    %c0_i32 = arith.constant 0 : i32
    %177 = arith.cmpi eq, %c2_i32, %c0_i32 : i32
    %c1_i32 = arith.constant 1 : i32
    %178 = arith.select %177, %c1_i32, %c2_i32 : i32
    %179 = vector.broadcast %178 : i32 to vector<2x16xi32>
    %180 = arith.remsi %176, %179 : vector<2x16xi32>
    %c0_i32_41 = arith.constant 0 : i32
    %181 = vector.broadcast %c0_i32_41 : i32 to vector<2x16xi32>
    %182 = arith.cmpi ne, %180, %181 : vector<2x16xi32>
    %c0_i32_42 = arith.constant 0 : i32
    %183 = vector.broadcast %c0_i32_42 : i32 to vector<2x16xi32>
    %184 = arith.cmpi slt, %180, %183 : vector<2x16xi32>
    %c0_i32_43 = arith.constant 0 : i32
    %185 = arith.cmpi slt, %178, %c0_i32_43 : i32
    %186 = vector.broadcast %185 : i1 to vector<2x16xi1>
    %187 = vector.broadcast %186 : vector<2x16xi1> to vector<2x16xi1>
    %188 = arith.xori %184, %187 : vector<2x16xi1>
    %189 = arith.andi %188, %182 : vector<2x16xi1>
    %190 = vector.broadcast %178 : i32 to vector<2x16xi32>
    %191 = arith.addi %180, %190 : vector<2x16xi32>
    %192 = arith.select %189, %191, %180 : vector<2x16xi1>, vector<2x16xi32>
    %193 = tpu.iota {dimensions = array<i32: 0>} : vector<2x16xi32>
    %194 = arith.cmpi eq, %192, %193 : vector<2x16xi32>
    %c1_i32_44 = arith.constant 1 : i32
    %195 = vector.broadcast %c1_i32_44 : i32 to vector<2x1xi32>
    %196 = vector.broadcast %195 : vector<2x1xi32> to vector<2x128xi32>
    %197 = arith.cmpi eq, %17, %196 : vector<2x128xi32>
    %198 = arith.extui %197 : vector<2x128xi1> to vector<2x128xi32>
    %199 = arith.sitofp %198 : vector<2x128xi32> to vector<2x128xf32>
    %cst_45 = arith.constant dense<0.000000e+00> : vector<2x128xf32>
    %200 = tpu.matmul %199, %2, %cst_45 {dimension_numbers = #tpu.dot_dimension_numbers<[1], [0], [0], [1], [0, 0, 1, 1], [], []>} : vector<2x128xf32>, vector<128x128xf32>, vector<2x128xf32> -> vector<2x128xf32>
    %201 = arith.addf %200, %6 : vector<2x128xf32>
    %cst_46 = arith.constant dense<0.000000e+00> : vector<2x128xf32>
    %202 = tpu.matmul %173, %3, %cst_46 {dimension_numbers = #tpu.dot_dimension_numbers<[1], [0], [0], [1], [0, 0, 1, 1], [], []>} : vector<2x32xf32>, vector<32x128xf32>, vector<2x128xf32> -> vector<2x128xf32>
    %203 = arith.addf %201, %202 : vector<2x128xf32>
    %204 = arith.negf %203 : vector<2x128xf32>
    %205 = math.exp %204 : vector<2x128xf32>
    %cst_47 = arith.constant 1.000000e+00 : f32
    %206 = vector.broadcast %cst_47 : f32 to vector<2x128xf32>
    %207 = arith.addf %206, %205 : vector<2x128xf32>
    %208 = arith.divf %206, %207 : vector<2x128xf32>
    %209 = math.tanh %203 : vector<2x128xf32>
    %210 = vector.extract_strided_slice %208 {offsets = [0, 0], sizes = [2, 32], strides = [1, 1]} : vector<2x128xf32> to vector<2x32xf32>
    %211 = vector.extract_strided_slice %208 {offsets = [0, 32], sizes = [2, 32], strides = [1, 1]} : vector<2x128xf32> to vector<2x32xf32>
    %212 = vector.extract_strided_slice %209 {offsets = [0, 64], sizes = [2, 32], strides = [1, 1]} : vector<2x128xf32> to vector<2x32xf32>
    %213 = vector.extract_strided_slice %208 {offsets = [0, 96], sizes = [2, 32], strides = [1, 1]} : vector<2x128xf32> to vector<2x32xf32>
    %214 = arith.mulf %211, %171 : vector<2x32xf32>
    %215 = arith.mulf %210, %212 : vector<2x32xf32>
    %216 = arith.addf %214, %215 : vector<2x32xf32>
    %217 = math.tanh %216 : vector<2x32xf32>
    %218 = arith.mulf %213, %217 : vector<2x32xf32>
    %cst_48 = arith.constant dense<0.000000e+00> : vector<2x16xf32>
    %219 = tpu.matmul %218, %175, %cst_48 {dimension_numbers = #tpu.dot_dimension_numbers<[1], [0], [0], [1], [0, 0, 1, 1], [], []>} : vector<2x32xf32>, vector<32x16xf32>, vector<2x16xf32> -> vector<2x16xf32>
    %cst_49 = arith.constant 0xFF800000 : f32
    %220 = vector.broadcast %cst_49 : f32 to vector<2x16xf32>
    %221 = arith.select %194, %219, %220 : vector<2x16xi1>, vector<2x16xf32>
    %cst_50 = arith.constant dense<0xFF800000> : vector<2xf32>
    %222 = vector.multi_reduction <maximumf>, %221, %cst_50 [1] : vector<2x16xf32> to vector<2xf32>
    %223 = vector.shape_cast %222 : vector<2xf32> to vector<2x1xf32>
    %224 = vector.broadcast %223 : vector<2x1xf32> to vector<2x16xf32>
    %225 = arith.subf %221, %224 : vector<2x16xf32>
    %226 = math.exp %225 : vector<2x16xf32>
    %cst_51 = arith.constant dense<0.000000e+00> : vector<2xf32>
    %227 = vector.multi_reduction <add>, %226, %cst_51 [1] : vector<2x16xf32> to vector<2xf32>
    %228 = vector.shape_cast %227 : vector<2xf32> to vector<2x1xf32>
    %229 = tpu.reciprocal %228 {approx = true} : vector<2x1xf32> -> vector<2x1xf32>
    %230 = vector.broadcast %229 : vector<2x1xf32> to vector<2x16xf32>
    %231 = arith.mulf %226, %230 : vector<2x16xf32>
    %cst_52 = arith.constant dense<0.000000e+00> : vector<2x32xf32>
    %232 = tpu.matmul %231, %174, %cst_52 {dimension_numbers = #tpu.dot_dimension_numbers<[1], [0], [0], [1], [0, 0, 1, 1], [], []>} : vector<2x16xf32>, vector<16x32xf32>, vector<2x32xf32> -> vector<2x32xf32>
    %cst_53 = arith.constant dense<0.000000e+00> : vector<2x32xf32>
    %233 = tpu.matmul %218, %7, %cst_53 {dimension_numbers = #tpu.dot_dimension_numbers<[1], [0], [0], [1], [0, 0, 1, 1], [], []>} : vector<2x32xf32>, vector<32x32xf32>, vector<2x32xf32> -> vector<2x32xf32>
    %cst_54 = arith.constant dense<0.000000e+00> : vector<2x32xf32>
    %234 = tpu.matmul %232, %8, %cst_54 {dimension_numbers = #tpu.dot_dimension_numbers<[1], [0], [0], [1], [0, 0, 1, 1], [], []>} : vector<2x32xf32>, vector<32x32xf32>, vector<2x32xf32> -> vector<2x32xf32>
    %235 = arith.addf %233, %234 : vector<2x32xf32>
    %236 = arith.addf %235, %11 : vector<2x32xf32>
    %237 = math.tanh %236 : vector<2x32xf32>
    %cst_55 = arith.constant dense<0.000000e+00> : vector<2x128xf32>
    %238 = tpu.matmul %237, %12, %cst_55 {dimension_numbers = #tpu.dot_dimension_numbers<[1], [0], [0], [1], [0, 0, 1, 1], [], []>} : vector<2x32xf32>, vector<32x128xf32>, vector<2x128xf32> -> vector<2x128xf32>
    %239 = arith.addf %238, %15 : vector<2x128xf32>
    %c0_56 = arith.constant 0 : index
    %c0_57 = arith.constant 0 : index
    %240 = vector.load %arg12[%c0_56, %c0_57] : memref<12x128xf32, #tpu.memory_space<vmem>>, vector<2x128xf32>
    tpu.vector_store %arg12[%c0_56, %c0_57], %239 {strides = array<i32>} : memref<12x128xf32, #tpu.memory_space<vmem>>, vector<2x128xf32>,
    %c50_i32 = arith.constant 50 : i32
    %241 = vector.broadcast %c50_i32 : i32 to vector<2x128xi32>
    %242 = arith.cmpi slt, %17, %241 : vector<2x128xi32>
    %cst_58 = arith.constant 0xFF800000 : f32
    %243 = vector.broadcast %cst_58 : f32 to vector<2x128xf32>
    %244 = arith.select %242, %239, %243 : vector<2x128xi1>, vector<2x128xf32>
    %cst_59 = arith.constant dense<0xFF800000> : vector<2xf32>
    %245 = vector.multi_reduction <maximumf>, %244, %cst_59 [1] : vector<2x128xf32> to vector<2xf32>
    %246 = vector.shape_cast %245 : vector<2xf32> to vector<2x1xf32>
    %247 = vector.broadcast %246 : vector<2x1xf32> to vector<2x128xf32>
    %248 = arith.cmpf oeq, %244, %247 : vector<2x128xf32>
    %249 = arith.sitofp %17 : vector<2x128xi32> to vector<2x128xf32>
    %cst_60 = arith.constant 1.280000e+02 : f32
    %250 = vector.broadcast %cst_60 : f32 to vector<2x128xf32>
    %251 = arith.select %248, %249, %250 : vector<2x128xi1>, vector<2x128xf32>
    %cst_61 = arith.constant dense<0x7F800000> : vector<2xf32>
    %252 = vector.multi_reduction <minimumf>, %251, %cst_61 [1] : vector<2x128xf32> to vector<2xf32>
    %253 = vector.shape_cast %252 : vector<2xf32> to vector<2x1xf32>
    %254 = arith.fptosi %253 : vector<2x1xf32> to vector<2x1xi32>
    %255 = vector.broadcast %254 : vector<2x1xi32> to vector<2x128xi32>
    %256 = arith.cmpi eq, %17, %255 : vector<2x128xi32>
    %257 = arith.extui %256 : vector<2x128xi1> to vector<2x128xi32>
    %258 = arith.sitofp %257 : vector<2x128xi32> to vector<2x128xf32>
    %cst_62 = arith.constant dense<0.000000e+00> : vector<2x128xf32>
    %259 = tpu.matmul %258, %2, %cst_62 {dimension_numbers = #tpu.dot_dimension_numbers<[1], [0], [0], [1], [0, 0, 1, 1], [], []>} : vector<2x128xf32>, vector<128x128xf32>, vector<2x128xf32> -> vector<2x128xf32>
    %260 = arith.addf %259, %6 : vector<2x128xf32>
    %cst_63 = arith.constant dense<0.000000e+00> : vector<2x128xf32>
    %261 = tpu.matmul %218, %3, %cst_63 {dimension_numbers = #tpu.dot_dimension_numbers<[1], [0], [0], [1], [0, 0, 1, 1], [], []>} : vector<2x32xf32>, vector<32x128xf32>, vector<2x128xf32> -> vector<2x128xf32>
    %262 = arith.addf %260, %261 : vector<2x128xf32>
    %263 = arith.negf %262 : vector<2x128xf32>
    %264 = math.exp %263 : vector<2x128xf32>
    %cst_64 = arith.constant 1.000000e+00 : f32
    %265 = vector.broadcast %cst_64 : f32 to vector<2x128xf32>
    %266 = arith.addf %265, %264 : vector<2x128xf32>
    %267 = arith.divf %265, %266 : vector<2x128xf32>
    %268 = math.tanh %262 : vector<2x128xf32>
    %269 = vector.extract_strided_slice %267 {offsets = [0, 0], sizes = [2, 32], strides = [1, 1]} : vector<2x128xf32> to vector<2x32xf32>
    %270 = vector.extract_strided_slice %267 {offsets = [0, 32], sizes = [2, 32], strides = [1, 1]} : vector<2x128xf32> to vector<2x32xf32>
    %271 = vector.extract_strided_slice %268 {offsets = [0, 64], sizes = [2, 32], strides = [1, 1]} : vector<2x128xf32> to vector<2x32xf32>
    %272 = vector.extract_strided_slice %267 {offsets = [0, 96], sizes = [2, 32], strides = [1, 1]} : vector<2x128xf32> to vector<2x32xf32>
    %273 = arith.mulf %270, %216 : vector<2x32xf32>
    %274 = arith.mulf %269, %271 : vector<2x32xf32>
    %275 = arith.addf %273, %274 : vector<2x32xf32>
    %276 = math.tanh %275 : vector<2x32xf32>
    %277 = arith.mulf %272, %276 : vector<2x32xf32>
    %cst_65 = arith.constant dense<0.000000e+00> : vector<2x16xf32>
    %278 = tpu.matmul %277, %175, %cst_65 {dimension_numbers = #tpu.dot_dimension_numbers<[1], [0], [0], [1], [0, 0, 1, 1], [], []>} : vector<2x32xf32>, vector<32x16xf32>, vector<2x16xf32> -> vector<2x16xf32>
    %cst_66 = arith.constant 0xFF800000 : f32
    %279 = vector.broadcast %cst_66 : f32 to vector<2x16xf32>
    %280 = arith.select %194, %278, %279 : vector<2x16xi1>, vector<2x16xf32>
    %cst_67 = arith.constant dense<0xFF800000> : vector<2xf32>
    %281 = vector.multi_reduction <maximumf>, %280, %cst_67 [1] : vector<2x16xf32> to vector<2xf32>
    %282 = vector.shape_cast %281 : vector<2xf32> to vector<2x1xf32>
    %283 = vector.broadcast %282 : vector<2x1xf32> to vector<2x16xf32>
    %284 = arith.subf %280, %283 : vector<2x16xf32>
    %285 = math.exp %284 : vector<2x16xf32>
    %cst_68 = arith.constant dense<0.000000e+00> : vector<2xf32>
    %286 = vector.multi_reduction <add>, %285, %cst_68 [1] : vector<2x16xf32> to vector<2xf32>
    %287 = vector.shape_cast %286 : vector<2xf32> to vector<2x1xf32>
    %288 = tpu.reciprocal %287 {approx = true} : vector<2x1xf32> -> vector<2x1xf32>
    %289 = vector.broadcast %288 : vector<2x1xf32> to vector<2x16xf32>
    %290 = arith.mulf %285, %289 : vector<2x16xf32>
    %cst_69 = arith.constant dense<0.000000e+00> : vector<2x32xf32>
    %291 = tpu.matmul %290, %174, %cst_69 {dimension_numbers = #tpu.dot_dimension_numbers<[1], [0], [0], [1], [0, 0, 1, 1], [], []>} : vector<2x16xf32>, vector<16x32xf32>, vector<2x32xf32> -> vector<2x32xf32>
    %cst_70 = arith.constant dense<0.000000e+00> : vector<2x32xf32>
    %292 = tpu.matmul %277, %7, %cst_70 {dimension_numbers = #tpu.dot_dimension_numbers<[1], [0], [0], [1], [0, 0, 1, 1], [], []>} : vector<2x32xf32>, vector<32x32xf32>, vector<2x32xf32> -> vector<2x32xf32>
    %cst_71 = arith.constant dense<0.000000e+00> : vector<2x32xf32>
    %293 = tpu.matmul %291, %8, %cst_71 {dimension_numbers = #tpu.dot_dimension_numbers<[1], [0], [0], [1], [0, 0, 1, 1], [], []>} : vector<2x32xf32>, vector<32x32xf32>, vector<2x32xf32> -> vector<2x32xf32>
    %294 = arith.addf %292, %293 : vector<2x32xf32>
    %295 = arith.addf %294, %11 : vector<2x32xf32>
    %296 = math.tanh %295 : vector<2x32xf32>
    %cst_72 = arith.constant dense<0.000000e+00> : vector<2x128xf32>
    %297 = tpu.matmul %296, %12, %cst_72 {dimension_numbers = #tpu.dot_dimension_numbers<[1], [0], [0], [1], [0, 0, 1, 1], [], []>} : vector<2x32xf32>, vector<32x128xf32>, vector<2x128xf32> -> vector<2x128xf32>
    %298 = arith.addf %297, %15 : vector<2x128xf32>
    %c2 = arith.constant 2 : index
    %c0_73 = arith.constant 0 : index
    %299 = vector.load %arg12[%c2, %c0_73] : memref<12x128xf32, #tpu.memory_space<vmem>>, vector<2x128xf32>
    tpu.vector_store %arg12[%c2, %c0_73], %298 {strides = array<i32>} : memref<12x128xf32, #tpu.memory_space<vmem>>, vector<2x128xf32>,
    %c50_i32_74 = arith.constant 50 : i32
    %300 = vector.broadcast %c50_i32_74 : i32 to vector<2x128xi32>
    %301 = arith.cmpi slt, %17, %300 : vector<2x128xi32>
    %cst_75 = arith.constant 0xFF800000 : f32
    %302 = vector.broadcast %cst_75 : f32 to vector<2x128xf32>
    %303 = arith.select %301, %298, %302 : vector<2x128xi1>, vector<2x128xf32>
    %cst_76 = arith.constant dense<0xFF800000> : vector<2xf32>
    %304 = vector.multi_reduction <maximumf>, %303, %cst_76 [1] : vector<2x128xf32> to vector<2xf32>
    %305 = vector.shape_cast %304 : vector<2xf32> to vector<2x1xf32>
    %306 = vector.broadcast %305 : vector<2x1xf32> to vector<2x128xf32>
    %307 = arith.cmpf oeq, %303, %306 : vector<2x128xf32>
    %308 = arith.sitofp %17 : vector<2x128xi32> to vector<2x128xf32>
    %cst_77 = arith.constant 1.280000e+02 : f32
    %309 = vector.broadcast %cst_77 : f32 to vector<2x128xf32>
    %310 = arith.select %307, %308, %309 : vector<2x128xi1>, vector<2x128xf32>
    %cst_78 = arith.constant dense<0x7F800000> : vector<2xf32>
    %311 = vector.multi_reduction <minimumf>, %310, %cst_78 [1] : vector<2x128xf32> to vector<2xf32>
    %312 = vector.shape_cast %311 : vector<2xf32> to vector<2x1xf32>
    %313 = arith.fptosi %312 : vector<2x1xf32> to vector<2x1xi32>
    %314 = vector.broadcast %313 : vector<2x1xi32> to vector<2x128xi32>
    %315 = arith.cmpi eq, %17, %314 : vector<2x128xi32>
    %316 = arith.extui %315 : vector<2x128xi1> to vector<2x128xi32>
    %317 = arith.sitofp %316 : vector<2x128xi32> to vector<2x128xf32>
    %cst_79 = arith.constant dense<0.000000e+00> : vector<2x128xf32>
    %318 = tpu.matmul %317, %2, %cst_79 {dimension_numbers = #tpu.dot_dimension_numbers<[1], [0], [0], [1], [0, 0, 1, 1], [], []>} : vector<2x128xf32>, vector<128x128xf32>, vector<2x128xf32> -> vector<2x128xf32>
    %319 = arith.addf %318, %6 : vector<2x128xf32>
    %cst_80 = arith.constant dense<0.000000e+00> : vector<2x128xf32>
    %320 = tpu.matmul %277, %3, %cst_80 {dimension_numbers = #tpu.dot_dimension_numbers<[1], [0], [0], [1], [0, 0, 1, 1], [], []>} : vector<2x32xf32>, vector<32x128xf32>, vector<2x128xf32> -> vector<2x128xf32>
    %321 = arith.addf %319, %320 : vector<2x128xf32>
    %322 = arith.negf %321 : vector<2x128xf32>
    %323 = math.exp %322 : vector<2x128xf32>
    %cst_81 = arith.constant 1.000000e+00 : f32
    %324 = vector.broadcast %cst_81 : f32 to vector<2x128xf32>
    %325 = arith.addf %324, %323 : vector<2x128xf32>
    %326 = arith.divf %324, %325 : vector<2x128xf32>
    %327 = math.tanh %321 : vector<2x128xf32>
    %328 = vector.extract_strided_slice %326 {offsets = [0, 0], sizes = [2, 32], strides = [1, 1]} : vector<2x128xf32> to vector<2x32xf32>
    %329 = vector.extract_strided_slice %326 {offsets = [0, 32], sizes = [2, 32], strides = [1, 1]} : vector<2x128xf32> to vector<2x32xf32>
    %330 = vector.extract_strided_slice %327 {offsets = [0, 64], sizes = [2, 32], strides = [1, 1]} : vector<2x128xf32> to vector<2x32xf32>
    %331 = vector.extract_strided_slice %326 {offsets = [0, 96], sizes = [2, 32], strides = [1, 1]} : vector<2x128xf32> to vector<2x32xf32>
    %332 = arith.mulf %329, %275 : vector<2x32xf32>
    %333 = arith.mulf %328, %330 : vector<2x32xf32>
    %334 = arith.addf %332, %333 : vector<2x32xf32>
    %335 = math.tanh %334 : vector<2x32xf32>
    %336 = arith.mulf %331, %335 : vector<2x32xf32>
    %cst_82 = arith.constant dense<0.000000e+00> : vector<2x16xf32>
    %337 = tpu.matmul %336, %175, %cst_82 {dimension_numbers = #tpu.dot_dimension_numbers<[1], [0], [0], [1], [0, 0, 1, 1], [], []>} : vector<2x32xf32>, vector<32x16xf32>, vector<2x16xf32> -> vector<2x16xf32>
    %cst_83 = arith.constant 0xFF800000 : f32
    %338 = vector.broadcast %cst_83 : f32 to vector<2x16xf32>
    %339 = arith.select %194, %337, %338 : vector<2x16xi1>, vector<2x16xf32>
    %cst_84 = arith.constant dense<0xFF800000> : vector<2xf32>
    %340 = vector.multi_reduction <maximumf>, %339, %cst_84 [1] : vector<2x16xf32> to vector<2xf32>
    %341 = vector.shape_cast %340 : vector<2xf32> to vector<2x1xf32>
    %342 = vector.broadcast %341 : vector<2x1xf32> to vector<2x16xf32>
    %343 = arith.subf %339, %342 : vector<2x16xf32>
    %344 = math.exp %343 : vector<2x16xf32>
    %cst_85 = arith.constant dense<0.000000e+00> : vector<2xf32>
    %345 = vector.multi_reduction <add>, %344, %cst_85 [1] : vector<2x16xf32> to vector<2xf32>
    %346 = vector.shape_cast %345 : vector<2xf32> to vector<2x1xf32>
    %347 = tpu.reciprocal %346 {approx = true} : vector<2x1xf32> -> vector<2x1xf32>
    %348 = vector.broadcast %347 : vector<2x1xf32> to vector<2x16xf32>
    %349 = arith.mulf %344, %348 : vector<2x16xf32>
    %cst_86 = arith.constant dense<0.000000e+00> : vector<2x32xf32>
    %350 = tpu.matmul %349, %174, %cst_86 {dimension_numbers = #tpu.dot_dimension_numbers<[1], [0], [0], [1], [0, 0, 1, 1], [], []>} : vector<2x16xf32>, vector<16x32xf32>, vector<2x32xf32> -> vector<2x32xf32>
    %cst_87 = arith.constant dense<0.000000e+00> : vector<2x32xf32>
    %351 = tpu.matmul %336, %7, %cst_87 {dimension_numbers = #tpu.dot_dimension_numbers<[1], [0], [0], [1], [0, 0, 1, 1], [], []>} : vector<2x32xf32>, vector<32x32xf32>, vector<2x32xf32> -> vector<2x32xf32>
    %cst_88 = arith.constant dense<0.000000e+00> : vector<2x32xf32>
    %352 = tpu.matmul %350, %8, %cst_88 {dimension_numbers = #tpu.dot_dimension_numbers<[1], [0], [0], [1], [0, 0, 1, 1], [], []>} : vector<2x32xf32>, vector<32x32xf32>, vector<2x32xf32> -> vector<2x32xf32>
    %353 = arith.addf %351, %352 : vector<2x32xf32>
    %354 = arith.addf %353, %11 : vector<2x32xf32>
    %355 = math.tanh %354 : vector<2x32xf32>
    %cst_89 = arith.constant dense<0.000000e+00> : vector<2x128xf32>
    %356 = tpu.matmul %355, %12, %cst_89 {dimension_numbers = #tpu.dot_dimension_numbers<[1], [0], [0], [1], [0, 0, 1, 1], [], []>} : vector<2x32xf32>, vector<32x128xf32>, vector<2x128xf32> -> vector<2x128xf32>
    %357 = arith.addf %356, %15 : vector<2x128xf32>
    %c4 = arith.constant 4 : index
    %c0_90 = arith.constant 0 : index
    %358 = vector.load %arg12[%c4, %c0_90] : memref<12x128xf32, #tpu.memory_space<vmem>>, vector<2x128xf32>
    tpu.vector_store %arg12[%c4, %c0_90], %357 {strides = array<i32>} : memref<12x128xf32, #tpu.memory_space<vmem>>, vector<2x128xf32>,
    %c50_i32_91 = arith.constant 50 : i32
    %359 = vector.broadcast %c50_i32_91 : i32 to vector<2x128xi32>
    %360 = arith.cmpi slt, %17, %359 : vector<2x128xi32>
    %cst_92 = arith.constant 0xFF800000 : f32
    %361 = vector.broadcast %cst_92 : f32 to vector<2x128xf32>
    %362 = arith.select %360, %357, %361 : vector<2x128xi1>, vector<2x128xf32>
    %cst_93 = arith.constant dense<0xFF800000> : vector<2xf32>
    %363 = vector.multi_reduction <maximumf>, %362, %cst_93 [1] : vector<2x128xf32> to vector<2xf32>
    %364 = vector.shape_cast %363 : vector<2xf32> to vector<2x1xf32>
    %365 = vector.broadcast %364 : vector<2x1xf32> to vector<2x128xf32>
    %366 = arith.cmpf oeq, %362, %365 : vector<2x128xf32>
    %367 = arith.sitofp %17 : vector<2x128xi32> to vector<2x128xf32>
    %cst_94 = arith.constant 1.280000e+02 : f32
    %368 = vector.broadcast %cst_94 : f32 to vector<2x128xf32>
    %369 = arith.select %366, %367, %368 : vector<2x128xi1>, vector<2x128xf32>
    %cst_95 = arith.constant dense<0x7F800000> : vector<2xf32>
    %370 = vector.multi_reduction <minimumf>, %369, %cst_95 [1] : vector<2x128xf32> to vector<2xf32>
    %371 = vector.shape_cast %370 : vector<2xf32> to vector<2x1xf32>
    %372 = arith.fptosi %371 : vector<2x1xf32> to vector<2x1xi32>
    %373 = vector.broadcast %372 : vector<2x1xi32> to vector<2x128xi32>
    %374 = arith.cmpi eq, %17, %373 : vector<2x128xi32>
    %375 = arith.extui %374 : vector<2x128xi1> to vector<2x128xi32>
    %376 = arith.sitofp %375 : vector<2x128xi32> to vector<2x128xf32>
    %cst_96 = arith.constant dense<0.000000e+00> : vector<2x128xf32>
    %377 = tpu.matmul %376, %2, %cst_96 {dimension_numbers = #tpu.dot_dimension_numbers<[1], [0], [0], [1], [0, 0, 1, 1], [], []>} : vector<2x128xf32>, vector<128x128xf32>, vector<2x128xf32> -> vector<2x128xf32>
    %378 = arith.addf %377, %6 : vector<2x128xf32>
    %cst_97 = arith.constant dense<0.000000e+00> : vector<2x128xf32>
    %379 = tpu.matmul %336, %3, %cst_97 {dimension_numbers = #tpu.dot_dimension_numbers<[1], [0], [0], [1], [0, 0, 1, 1], [], []>} : vector<2x32xf32>, vector<32x128xf32>, vector<2x128xf32> -> vector<2x128xf32>
    %380 = arith.addf %378, %379 : vector<2x128xf32>
    %381 = arith.negf %380 : vector<2x128xf32>
    %382 = math.exp %381 : vector<2x128xf32>
    %cst_98 = arith.constant 1.000000e+00 : f32
    %383 = vector.broadcast %cst_98 : f32 to vector<2x128xf32>
    %384 = arith.addf %383, %382 : vector<2x128xf32>
    %385 = arith.divf %383, %384 : vector<2x128xf32>
    %386 = math.tanh %380 : vector<2x128xf32>
    %387 = vector.extract_strided_slice %385 {offsets = [0, 0], sizes = [2, 32], strides = [1, 1]} : vector<2x128xf32> to vector<2x32xf32>
    %388 = vector.extract_strided_slice %385 {offsets = [0, 32], sizes = [2, 32], strides = [1, 1]} : vector<2x128xf32> to vector<2x32xf32>
    %389 = vector.extract_strided_slice %386 {offsets = [0, 64], sizes = [2, 32], strides = [1, 1]} : vector<2x128xf32> to vector<2x32xf32>
    %390 = vector.extract_strided_slice %385 {offsets = [0, 96], sizes = [2, 32], strides = [1, 1]} : vector<2x128xf32> to vector<2x32xf32>
    %391 = arith.mulf %388, %334 : vector<2x32xf32>
    %392 = arith.mulf %387, %389 : vector<2x32xf32>
    %393 = arith.addf %391, %392 : vector<2x32xf32>
    %394 = math.tanh %393 : vector<2x32xf32>
    %395 = arith.mulf %390, %394 : vector<2x32xf32>
    %cst_99 = arith.constant dense<0.000000e+00> : vector<2x16xf32>
    %396 = tpu.matmul %395, %175, %cst_99 {dimension_numbers = #tpu.dot_dimension_numbers<[1], [0], [0], [1], [0, 0, 1, 1], [], []>} : vector<2x32xf32>, vector<32x16xf32>, vector<2x16xf32> -> vector<2x16xf32>
    %cst_100 = arith.constant 0xFF800000 : f32
    %397 = vector.broadcast %cst_100 : f32 to vector<2x16xf32>
    %398 = arith.select %194, %396, %397 : vector<2x16xi1>, vector<2x16xf32>
    %cst_101 = arith.constant dense<0xFF800000> : vector<2xf32>
    %399 = vector.multi_reduction <maximumf>, %398, %cst_101 [1] : vector<2x16xf32> to vector<2xf32>
    %400 = vector.shape_cast %399 : vector<2xf32> to vector<2x1xf32>
    %401 = vector.broadcast %400 : vector<2x1xf32> to vector<2x16xf32>
    %402 = arith.subf %398, %401 : vector<2x16xf32>
    %403 = math.exp %402 : vector<2x16xf32>
    %cst_102 = arith.constant dense<0.000000e+00> : vector<2xf32>
    %404 = vector.multi_reduction <add>, %403, %cst_102 [1] : vector<2x16xf32> to vector<2xf32>
    %405 = vector.shape_cast %404 : vector<2xf32> to vector<2x1xf32>
    %406 = tpu.reciprocal %405 {approx = true} : vector<2x1xf32> -> vector<2x1xf32>
    %407 = vector.broadcast %406 : vector<2x1xf32> to vector<2x16xf32>
    %408 = arith.mulf %403, %407 : vector<2x16xf32>
    %cst_103 = arith.constant dense<0.000000e+00> : vector<2x32xf32>
    %409 = tpu.matmul %408, %174, %cst_103 {dimension_numbers = #tpu.dot_dimension_numbers<[1], [0], [0], [1], [0, 0, 1, 1], [], []>} : vector<2x16xf32>, vector<16x32xf32>, vector<2x32xf32> -> vector<2x32xf32>
    %cst_104 = arith.constant dense<0.000000e+00> : vector<2x32xf32>
    %410 = tpu.matmul %395, %7, %cst_104 {dimension_numbers = #tpu.dot_dimension_numbers<[1], [0], [0], [1], [0, 0, 1, 1], [], []>} : vector<2x32xf32>, vector<32x32xf32>, vector<2x32xf32> -> vector<2x32xf32>
    %cst_105 = arith.constant dense<0.000000e+00> : vector<2x32xf32>
    %411 = tpu.matmul %409, %8, %cst_105 {dimension_numbers = #tpu.dot_dimension_numbers<[1], [0], [0], [1], [0, 0, 1, 1], [], []>} : vector<2x32xf32>, vector<32x32xf32>, vector<2x32xf32> -> vector<2x32xf32>
    %412 = arith.addf %410, %411 : vector<2x32xf32>
    %413 = arith.addf %412, %11 : vector<2x32xf32>
    %414 = math.tanh %413 : vector<2x32xf32>
    %cst_106 = arith.constant dense<0.000000e+00> : vector<2x128xf32>
    %415 = tpu.matmul %414, %12, %cst_106 {dimension_numbers = #tpu.dot_dimension_numbers<[1], [0], [0], [1], [0, 0, 1, 1], [], []>} : vector<2x32xf32>, vector<32x128xf32>, vector<2x128xf32> -> vector<2x128xf32>
    %416 = arith.addf %415, %15 : vector<2x128xf32>
    %c6 = arith.constant 6 : index
    %c0_107 = arith.constant 0 : index
    %417 = vector.load %arg12[%c6, %c0_107] : memref<12x128xf32, #tpu.memory_space<vmem>>, vector<2x128xf32>
    tpu.vector_store %arg12[%c6, %c0_107], %416 {strides = array<i32>} : memref<12x128xf32, #tpu.memory_space<vmem>>, vector<2x128xf32>,
    %c50_i32_108 = arith.constant 50 : i32
    %418 = vector.broadcast %c50_i32_108 : i32 to vector<2x128xi32>
    %419 = arith.cmpi slt, %17, %418 : vector<2x128xi32>
    %cst_109 = arith.constant 0xFF800000 : f32
    %420 = vector.broadcast %cst_109 : f32 to vector<2x128xf32>
    %421 = arith.select %419, %416, %420 : vector<2x128xi1>, vector<2x128xf32>
    %cst_110 = arith.constant dense<0xFF800000> : vector<2xf32>
    %422 = vector.multi_reduction <maximumf>, %421, %cst_110 [1] : vector<2x128xf32> to vector<2xf32>
    %423 = vector.shape_cast %422 : vector<2xf32> to vector<2x1xf32>
    %424 = vector.broadcast %423 : vector<2x1xf32> to vector<2x128xf32>
    %425 = arith.cmpf oeq, %421, %424 : vector<2x128xf32>
    %426 = arith.sitofp %17 : vector<2x128xi32> to vector<2x128xf32>
    %cst_111 = arith.constant 1.280000e+02 : f32
    %427 = vector.broadcast %cst_111 : f32 to vector<2x128xf32>
    %428 = arith.select %425, %426, %427 : vector<2x128xi1>, vector<2x128xf32>
    %cst_112 = arith.constant dense<0x7F800000> : vector<2xf32>
    %429 = vector.multi_reduction <minimumf>, %428, %cst_112 [1] : vector<2x128xf32> to vector<2xf32>
    %430 = vector.shape_cast %429 : vector<2xf32> to vector<2x1xf32>
    %431 = arith.fptosi %430 : vector<2x1xf32> to vector<2x1xi32>
    %432 = vector.broadcast %431 : vector<2x1xi32> to vector<2x128xi32>
    %433 = arith.cmpi eq, %17, %432 : vector<2x128xi32>
    %434 = arith.extui %433 : vector<2x128xi1> to vector<2x128xi32>
    %435 = arith.sitofp %434 : vector<2x128xi32> to vector<2x128xf32>
    %cst_113 = arith.constant dense<0.000000e+00> : vector<2x128xf32>
    %436 = tpu.matmul %435, %2, %cst_113 {dimension_numbers = #tpu.dot_dimension_numbers<[1], [0], [0], [1], [0, 0, 1, 1], [], []>} : vector<2x128xf32>, vector<128x128xf32>, vector<2x128xf32> -> vector<2x128xf32>
    %437 = arith.addf %436, %6 : vector<2x128xf32>
    %cst_114 = arith.constant dense<0.000000e+00> : vector<2x128xf32>
    %438 = tpu.matmul %395, %3, %cst_114 {dimension_numbers = #tpu.dot_dimension_numbers<[1], [0], [0], [1], [0, 0, 1, 1], [], []>} : vector<2x32xf32>, vector<32x128xf32>, vector<2x128xf32> -> vector<2x128xf32>
    %439 = arith.addf %437, %438 : vector<2x128xf32>
    %440 = arith.negf %439 : vector<2x128xf32>
    %441 = math.exp %440 : vector<2x128xf32>
    %cst_115 = arith.constant 1.000000e+00 : f32
    %442 = vector.broadcast %cst_115 : f32 to vector<2x128xf32>
    %443 = arith.addf %442, %441 : vector<2x128xf32>
    %444 = arith.divf %442, %443 : vector<2x128xf32>
    %445 = math.tanh %439 : vector<2x128xf32>
    %446 = vector.extract_strided_slice %444 {offsets = [0, 0], sizes = [2, 32], strides = [1, 1]} : vector<2x128xf32> to vector<2x32xf32>
    %447 = vector.extract_strided_slice %444 {offsets = [0, 32], sizes = [2, 32], strides = [1, 1]} : vector<2x128xf32> to vector<2x32xf32>
    %448 = vector.extract_strided_slice %445 {offsets = [0, 64], sizes = [2, 32], strides = [1, 1]} : vector<2x128xf32> to vector<2x32xf32>
    %449 = vector.extract_strided_slice %444 {offsets = [0, 96], sizes = [2, 32], strides = [1, 1]} : vector<2x128xf32> to vector<2x32xf32>
    %450 = arith.mulf %447, %393 : vector<2x32xf32>
    %451 = arith.mulf %446, %448 : vector<2x32xf32>
    %452 = arith.addf %450, %451 : vector<2x32xf32>
    %453 = math.tanh %452 : vector<2x32xf32>
    %454 = arith.mulf %449, %453 : vector<2x32xf32>
    %cst_116 = arith.constant dense<0.000000e+00> : vector<2x16xf32>
    %455 = tpu.matmul %454, %175, %cst_116 {dimension_numbers = #tpu.dot_dimension_numbers<[1], [0], [0], [1], [0, 0, 1, 1], [], []>} : vector<2x32xf32>, vector<32x16xf32>, vector<2x16xf32> -> vector<2x16xf32>
    %cst_117 = arith.constant 0xFF800000 : f32
    %456 = vector.broadcast %cst_117 : f32 to vector<2x16xf32>
    %457 = arith.select %194, %455, %456 : vector<2x16xi1>, vector<2x16xf32>
    %cst_118 = arith.constant dense<0xFF800000> : vector<2xf32>
    %458 = vector.multi_reduction <maximumf>, %457, %cst_118 [1] : vector<2x16xf32> to vector<2xf32>
    %459 = vector.shape_cast %458 : vector<2xf32> to vector<2x1xf32>
    %460 = vector.broadcast %459 : vector<2x1xf32> to vector<2x16xf32>
    %461 = arith.subf %457, %460 : vector<2x16xf32>
    %462 = math.exp %461 : vector<2x16xf32>
    %cst_119 = arith.constant dense<0.000000e+00> : vector<2xf32>
    %463 = vector.multi_reduction <add>, %462, %cst_119 [1] : vector<2x16xf32> to vector<2xf32>
    %464 = vector.shape_cast %463 : vector<2xf32> to vector<2x1xf32>
    %465 = tpu.reciprocal %464 {approx = true} : vector<2x1xf32> -> vector<2x1xf32>
    %466 = vector.broadcast %465 : vector<2x1xf32> to vector<2x16xf32>
    %467 = arith.mulf %462, %466 : vector<2x16xf32>
    %cst_120 = arith.constant dense<0.000000e+00> : vector<2x32xf32>
    %468 = tpu.matmul %467, %174, %cst_120 {dimension_numbers = #tpu.dot_dimension_numbers<[1], [0], [0], [1], [0, 0, 1, 1], [], []>} : vector<2x16xf32>, vector<16x32xf32>, vector<2x32xf32> -> vector<2x32xf32>
    %cst_121 = arith.constant dense<0.000000e+00> : vector<2x32xf32>
    %469 = tpu.matmul %454, %7, %cst_121 {dimension_numbers = #tpu.dot_dimension_numbers<[1], [0], [0], [1], [0, 0, 1, 1], [], []>} : vector<2x32xf32>, vector<32x32xf32>, vector<2x32xf32> -> vector<2x32xf32>
    %cst_122 = arith.constant dense<0.000000e+00> : vector<2x32xf32>
    %470 = tpu.matmul %468, %8, %cst_122 {dimension_numbers = #tpu.dot_dimension_numbers<[1], [0], [0], [1], [0, 0, 1, 1], [], []>} : vector<2x32xf32>, vector<32x32xf32>, vector<2x32xf32> -> vector<2x32xf32>
    %471 = arith.addf %469, %470 : vector<2x32xf32>
    %472 = arith.addf %471, %11 : vector<2x32xf32>
    %473 = math.tanh %472 : vector<2x32xf32>
    %cst_123 = arith.constant dense<0.000000e+00> : vector<2x128xf32>
    %474 = tpu.matmul %473, %12, %cst_123 {dimension_numbers = #tpu.dot_dimension_numbers<[1], [0], [0], [1], [0, 0, 1, 1], [], []>} : vector<2x32xf32>, vector<32x128xf32>, vector<2x128xf32> -> vector<2x128xf32>
    %475 = arith.addf %474, %15 : vector<2x128xf32>
    %c8 = arith.constant 8 : index
    %c0_124 = arith.constant 0 : index
    %476 = vector.load %arg12[%c8, %c0_124] : memref<12x128xf32, #tpu.memory_space<vmem>>, vector<2x128xf32>
    tpu.vector_store %arg12[%c8, %c0_124], %475 {strides = array<i32>} : memref<12x128xf32, #tpu.memory_space<vmem>>, vector<2x128xf32>,
    %c50_i32_125 = arith.constant 50 : i32
    %477 = vector.broadcast %c50_i32_125 : i32 to vector<2x128xi32>
    %478 = arith.cmpi slt, %17, %477 : vector<2x128xi32>
    %cst_126 = arith.constant 0xFF800000 : f32
    %479 = vector.broadcast %cst_126 : f32 to vector<2x128xf32>
    %480 = arith.select %478, %475, %479 : vector<2x128xi1>, vector<2x128xf32>
    %cst_127 = arith.constant dense<0xFF800000> : vector<2xf32>
    %481 = vector.multi_reduction <maximumf>, %480, %cst_127 [1] : vector<2x128xf32> to vector<2xf32>
    %482 = vector.shape_cast %481 : vector<2xf32> to vector<2x1xf32>
    %483 = vector.broadcast %482 : vector<2x1xf32> to vector<2x128xf32>
    %484 = arith.cmpf oeq, %480, %483 : vector<2x128xf32>
    %485 = arith.sitofp %17 : vector<2x128xi32> to vector<2x128xf32>
    %cst_128 = arith.constant 1.280000e+02 : f32
    %486 = vector.broadcast %cst_128 : f32 to vector<2x128xf32>
    %487 = arith.select %484, %485, %486 : vector<2x128xi1>, vector<2x128xf32>
    %cst_129 = arith.constant dense<0x7F800000> : vector<2xf32>
    %488 = vector.multi_reduction <minimumf>, %487, %cst_129 [1] : vector<2x128xf32> to vector<2xf32>
    %489 = vector.shape_cast %488 : vector<2xf32> to vector<2x1xf32>
    %490 = arith.fptosi %489 : vector<2x1xf32> to vector<2x1xi32>
    %491 = vector.broadcast %490 : vector<2x1xi32> to vector<2x128xi32>
    %492 = arith.cmpi eq, %17, %491 : vector<2x128xi32>
    %493 = arith.extui %492 : vector<2x128xi1> to vector<2x128xi32>
    %494 = arith.sitofp %493 : vector<2x128xi32> to vector<2x128xf32>
    %cst_130 = arith.constant dense<0.000000e+00> : vector<2x128xf32>
    %495 = tpu.matmul %494, %2, %cst_130 {dimension_numbers = #tpu.dot_dimension_numbers<[1], [0], [0], [1], [0, 0, 1, 1], [], []>} : vector<2x128xf32>, vector<128x128xf32>, vector<2x128xf32> -> vector<2x128xf32>
    %496 = arith.addf %495, %6 : vector<2x128xf32>
    %cst_131 = arith.constant dense<0.000000e+00> : vector<2x128xf32>
    %497 = tpu.matmul %454, %3, %cst_131 {dimension_numbers = #tpu.dot_dimension_numbers<[1], [0], [0], [1], [0, 0, 1, 1], [], []>} : vector<2x32xf32>, vector<32x128xf32>, vector<2x128xf32> -> vector<2x128xf32>
    %498 = arith.addf %496, %497 : vector<2x128xf32>
    %499 = arith.negf %498 : vector<2x128xf32>
    %500 = math.exp %499 : vector<2x128xf32>
    %cst_132 = arith.constant 1.000000e+00 : f32
    %501 = vector.broadcast %cst_132 : f32 to vector<2x128xf32>
    %502 = arith.addf %501, %500 : vector<2x128xf32>
    %503 = arith.divf %501, %502 : vector<2x128xf32>
    %504 = math.tanh %498 : vector<2x128xf32>
    %505 = vector.extract_strided_slice %503 {offsets = [0, 0], sizes = [2, 32], strides = [1, 1]} : vector<2x128xf32> to vector<2x32xf32>
    %506 = vector.extract_strided_slice %503 {offsets = [0, 32], sizes = [2, 32], strides = [1, 1]} : vector<2x128xf32> to vector<2x32xf32>
    %507 = vector.extract_strided_slice %504 {offsets = [0, 64], sizes = [2, 32], strides = [1, 1]} : vector<2x128xf32> to vector<2x32xf32>
    %508 = vector.extract_strided_slice %503 {offsets = [0, 96], sizes = [2, 32], strides = [1, 1]} : vector<2x128xf32> to vector<2x32xf32>
    %509 = arith.mulf %506, %452 : vector<2x32xf32>
    %510 = arith.mulf %505, %507 : vector<2x32xf32>
    %511 = arith.addf %509, %510 : vector<2x32xf32>
    %512 = math.tanh %511 : vector<2x32xf32>
    %513 = arith.mulf %508, %512 : vector<2x32xf32>
    %cst_133 = arith.constant dense<0.000000e+00> : vector<2x16xf32>
    %514 = tpu.matmul %513, %175, %cst_133 {dimension_numbers = #tpu.dot_dimension_numbers<[1], [0], [0], [1], [0, 0, 1, 1], [], []>} : vector<2x32xf32>, vector<32x16xf32>, vector<2x16xf32> -> vector<2x16xf32>
    %cst_134 = arith.constant 0xFF800000 : f32
    %515 = vector.broadcast %cst_134 : f32 to vector<2x16xf32>
    %516 = arith.select %194, %514, %515 : vector<2x16xi1>, vector<2x16xf32>
    %cst_135 = arith.constant dense<0xFF800000> : vector<2xf32>
    %517 = vector.multi_reduction <maximumf>, %516, %cst_135 [1] : vector<2x16xf32> to vector<2xf32>
    %518 = vector.shape_cast %517 : vector<2xf32> to vector<2x1xf32>
    %519 = vector.broadcast %518 : vector<2x1xf32> to vector<2x16xf32>
    %520 = arith.subf %516, %519 : vector<2x16xf32>
    %521 = math.exp %520 : vector<2x16xf32>
    %cst_136 = arith.constant dense<0.000000e+00> : vector<2xf32>
    %522 = vector.multi_reduction <add>, %521, %cst_136 [1] : vector<2x16xf32> to vector<2xf32>
    %523 = vector.shape_cast %522 : vector<2xf32> to vector<2x1xf32>
    %524 = tpu.reciprocal %523 {approx = true} : vector<2x1xf32> -> vector<2x1xf32>
    %525 = vector.broadcast %524 : vector<2x1xf32> to vector<2x16xf32>
    %526 = arith.mulf %521, %525 : vector<2x16xf32>
    %cst_137 = arith.constant dense<0.000000e+00> : vector<2x32xf32>
    %527 = tpu.matmul %526, %174, %cst_137 {dimension_numbers = #tpu.dot_dimension_numbers<[1], [0], [0], [1], [0, 0, 1, 1], [], []>} : vector<2x16xf32>, vector<16x32xf32>, vector<2x32xf32> -> vector<2x32xf32>
    %cst_138 = arith.constant dense<0.000000e+00> : vector<2x32xf32>
    %528 = tpu.matmul %513, %7, %cst_138 {dimension_numbers = #tpu.dot_dimension_numbers<[1], [0], [0], [1], [0, 0, 1, 1], [], []>} : vector<2x32xf32>, vector<32x32xf32>, vector<2x32xf32> -> vector<2x32xf32>
    %cst_139 = arith.constant dense<0.000000e+00> : vector<2x32xf32>
    %529 = tpu.matmul %527, %8, %cst_139 {dimension_numbers = #tpu.dot_dimension_numbers<[1], [0], [0], [1], [0, 0, 1, 1], [], []>} : vector<2x32xf32>, vector<32x32xf32>, vector<2x32xf32> -> vector<2x32xf32>
    %530 = arith.addf %528, %529 : vector<2x32xf32>
    %531 = arith.addf %530, %11 : vector<2x32xf32>
    %532 = math.tanh %531 : vector<2x32xf32>
    %cst_140 = arith.constant dense<0.000000e+00> : vector<2x128xf32>
    %533 = tpu.matmul %532, %12, %cst_140 {dimension_numbers = #tpu.dot_dimension_numbers<[1], [0], [0], [1], [0, 0, 1, 1], [], []>} : vector<2x32xf32>, vector<32x128xf32>, vector<2x128xf32> -> vector<2x128xf32>
    %534 = arith.addf %533, %15 : vector<2x128xf32>
    %c10 = arith.constant 10 : index
    %c0_141 = arith.constant 0 : index
    %535 = vector.load %arg12[%c10, %c0_141] : memref<12x128xf32, #tpu.memory_space<vmem>>, vector<2x128xf32>
    tpu.vector_store %arg12[%c10, %c0_141], %534 {strides = array<i32>} : memref<12x128xf32, #tpu.memory_space<vmem>>, vector<2x128xf32>,
    return
  }
}

</mosaic_0001>

<bundles_post_ra>
// kernel: _seq2seq_forward.1
= control target key start
LH: loop header
LB: loop body
LE: loop exit
PB: predicated region body
PF: predicated region fallthrough
CT: control target
= control target key end

     0   :  { %17 = vsyncpa [#allocation3], 0  ;;  %s7424_s0 = inlined_call_operand.vmem [shape: s32[16,1], index: 0, kind: input, shape index: {}]   ;;  %s7425_s1 = inlined_call_operand.hbm [shape: f32[128,128], index: 1, kind: input, shape index: {}]   ;;  %s7426_s2 = inlined_call_operand.vmem [shape: f32[32,128], index: 2, kind: input, shape index: {}]   ;;  %s7427_s3 = inlined_call_operand.hbm [shape: f32[1,128], index: 3, kind: input, shape index: {}]   ;;  %s7428_s4 = inlined_call_operand.hbm [shape: f32[128,128], index: 4, kind: input, shape index: {}]   ;;  %s7429_s5 = inlined_call_operand.vmem [shape: f32[32,128], index: 5, kind: input, shape index: {}]   ;;  %s7430_s6 = inlined_call_operand.hbm [shape: f32[1,128], index: 6, kind: input, shape index: {}]   ;;  %s7431_s7 = inlined_call_operand.hbm [shape: f32[32,32], index: 7, kind: input, shape index: {}]   ;;  %s7432_s8 = inlined_call_operand.hbm [shape: f32[32,32], index: 8, kind: input, shape index: {}]   ;;  %s7433_s9 = inlined_call_operand.hbm [shape: f32[1,32], index: 9, kind: input, shape index: {}]   ;;  %s7434_s10 = inlined_call_operand.hbm [shape: f32[32,128], index: 10, kind: input, shape index: {}]   ;;  %s7435_s11 = inlined_call_operand.hbm [shape: f32[1,128], index: 11, kind: input, shape index: {}]   ;;  %s7436_s12 = inlined_call_operand.vmem [shape: f32[12,128], index: 12, kind: output, shape index: {}]  }
   0x1   :  { %18 = vsyncpa [#allocation5], 0 }
   0x2   :  { %19 = vsyncpa [#allocation8], 0 }
   0x3   :  { %20 = vsyncpa [#allocation11], 0 }
   0x4   :  { %21 = vsyncpa [#allocation14], 0  ;;  %s6466_s21 = smov [#allocation4]   ;;  %s6467_s23 = smov [#allocation7]  }
   0x5   :  { %s44_s22 = sshll.u32 %s6466_s21, 4  ;;  %s68_s24 = sshll.u32 %s6467_s23, 4  ;;  %s45_s22 = int_to_ptr.vmem [resolvable:$true] %s44_s22  ;;  %s69_s24 = int_to_ptr.vmem [resolvable:$true] %s68_s24 }
   0x6   :  { %s6258_s27 = scalar_lea.hbm %s7427_s3, 16 }
   0x7   :  { %p6259_p0 = scmp.ne.s32.totalorder %s7427_s3, %s6258_s27  ;;  %p6262_p1 = scmp.lt.u32.totalorder %s6258_s27, %s7427_s3 }
   0x9   :  { %p6264_p2 = pnand %p6262_p1, %p6259_p0 }
   0xb   :  { %6267 = shalt.err (!%p6264_p2)
}
   0xc   :  { %s6268_s14 = scalar_lea.vmem %s45_s22, 16  ;;  %s6272_s15 = scalar_lea.vmem %s45_s22, 32 }
   0xd   :  { %p6269_p3 = scmp.ne.s32.totalorder %s45_s22, %s6268_s14  ;;  %p6273_p4 = scmp.lt.s32.totalorder %s45_s22, %s45_s22 }
   0xe   :  { %p6274_p5 = scmp.lt.s32.totalorder %s6272_s15, %s6268_s14 }
  0x10   :  { %p6275_p6 = por %p6274_p5, %p6273_p4 }
  0x12   :  { %p6276_p7 = pnand %p6275_p6, %p6269_p3 }
  0x14   :  { %6279 = shalt.err (!%p6276_p7)
}
  0x15   :  { %47 = dma.hbm_to_vmem [thread:$0]  %s7427_s3, 16, %s45_s22, [#allocation5]  }
  0x16   :  { %s6280_s20 = scalar_lea.hbm %s7430_s6, 16 }
  0x17   :  { %p6281_p8 = scmp.ne.s32.totalorder %s7430_s6, %s6280_s20  ;;  %p6284_p9 = scmp.lt.u32.totalorder %s6280_s20, %s7430_s6 }
  0x19   :  { %p6286_p10 = pnand %p6284_p9, %p6281_p8 }
  0x1b   :  { %6289 = shalt.err (!%p6286_p10)
}
  0x1c   :  { %s6290_s27 = scalar_lea.vmem %s69_s24, 16  ;;  %s6294_s28 = scalar_lea.vmem %s69_s24, 32 }
  0x1d   :  { %p6291_p11 = scmp.ne.s32.totalorder %s69_s24, %s6290_s27  ;;  %p6295_p12 = scmp.lt.s32.totalorder %s69_s24, %s69_s24 }
  0x1e   :  { %p6296_p13 = scmp.lt.s32.totalorder %s6294_s28, %s6290_s27 }
  0x20   :  { %p6297_p0 = por %p6296_p13, %p6295_p12 }
  0x22   :  { %p6298_p1 = pnand %p6297_p0, %p6291_p11 }
  0x24   :  { %6301 = shalt.err (!%p6298_p1)
}
  0x25   :  { %71 = dma.hbm_to_vmem [thread:$0]  %s7430_s6, 16, %s69_s24, [#allocation8]  }
  0x26   :  { %s6468_s29 = smov [#allocation10]   ;;  %s6469_s13 = smov [#allocation13]  }
  0x27   :  { %s89_s30 = sshll.u32 %s6468_s29, 4  ;;  %s111_s14 = sshll.u32 %s6469_s13, 4  ;;  %s90_s30 = int_to_ptr.vmem [resolvable:$true] %s89_s30  ;;  %s6573_s14 = int_to_ptr.vmem [resolvable:$true] %s111_s14 }
  0x28   :  { %s6302_s17 = scalar_lea.hbm %s7432_s8, 512 }
  0x29   :  { %p6303_p2 = scmp.ne.s32.totalorder %s7432_s8, %s6302_s17  ;;  %p6306_p3 = scmp.lt.u32.totalorder %s6302_s17, %s7432_s8 }
  0x2b   :  { %p6308_p4 = pnand %p6306_p3, %p6303_p2 }
  0x2d   :  { %6311 = shalt.err (!%p6308_p4)
}
  0x2e   :  { %s6312_s6 = scalar_lea.vmem %s90_s30, 512  ;;  %p6317_p6 = scmp.lt.s32.totalorder %s90_s30, %s90_s30 }
  0x2f   :  { %p6313_p5 = scmp.ne.s32.totalorder %s90_s30, %s6312_s6  ;;  %p6318_p7 = scmp.lt.s32.totalorder %s6312_s6, %s6312_s6 }
  0x31   :  { %p6319_p8 = por %p6318_p7, %p6317_p6 }
  0x33   :  { %p6320_p9 = pnand %p6319_p8, %p6313_p5 }
  0x35   :  { %6323 = shalt.err (!%p6320_p9)
}
  0x36   :  { %s6470_s24 = smov 128   ;;  %s6471_s23 = smov 8  }
  0x37   :  { %95 = dma.hbm_to_vmem [thread:$0]  %s7432_s8, 512, %s90_s30, [#allocation11], %s6470_s24, %s6470_s24, %s6471_s23  }
  0x38   :  { %s6324_s3 = scalar_lea.hbm %s7434_s10, 512 }
  0x39   :  { %p6325_p10 = scmp.ne.s32.totalorder %s7434_s10, %s6324_s3  ;;  %p6328_p11 = scmp.lt.u32.totalorder %s6324_s3, %s7434_s10 }
  0x3b   :  { %p6330_p12 = pnand %p6328_p11, %p6325_p10 }
  0x3d   :  { %6333 = shalt.err (!%p6330_p12)
}
  0x3e   :  { %s6334_s16 = scalar_lea.vmem %s6573_s14, 512  ;;  %p6339_p0 = scmp.lt.s32.totalorder %s6573_s14, %s6573_s14 }
  0x3f   :  { %p6335_p13 = scmp.ne.s32.totalorder %s6573_s14, %s6334_s16  ;;  %p6340_p1 = scmp.lt.s32.totalorder %s6334_s16, %s6334_s16 }
  0x41   :  { %p6341_p2 = por %p6340_p1, %p6339_p0 }
  0x43   :  { %p6342_p3 = pnand %p6341_p2, %p6335_p13 }
  0x45   :  { %6345 = shalt.err (!%p6342_p3)
}
  0x46   :  { %117 = dma.hbm_to_vmem [thread:$0]  %s7434_s10, 512, %s6573_s14, [#allocation14], %s6470_s24, %s6470_s24, %s6471_s23  }
  0x47   :  { %s6472_s17 = smov [#allocation2]   ;;  %s6473_s19 = smov [#allocation6]  }
  0x48   :  { %s29_s18 = sshll.u32 %s6472_s17, 4  ;;  %s53_s20 = sshll.u32 %s6473_s19, 4  ;;  %s30_s18 = int_to_ptr.vmem [resolvable:$true] %s29_s18  ;;  %s6610_s20 = int_to_ptr.vmem [resolvable:$true] %s53_s20 }
  0x49   :  { %s6346_s25 = scalar_lea.hbm %s7425_s1, 2048 }
  0x4a   :  { %p6347_p4 = scmp.ne.s32.totalorder %s7425_s1, %s6346_s25  ;;  %p6350_p5 = scmp.lt.u32.totalorder %s6346_s25, %s7425_s1 }
  0x4c   :  { %p6352_p6 = pnand %p6350_p5, %p6347_p4 }
  0x4e   :  { %6355 = shalt.err (!%p6352_p6)
}
  0x4f   :  { %s6356_s10 = scalar_lea.vmem %s30_s18, 2048  ;;  %p6361_p8 = scmp.lt.s32.totalorder %s30_s18, %s30_s18 }
  0x50   :  { %p6357_p7 = scmp.ne.s32.totalorder %s30_s18, %s6356_s10  ;;  %p6362_p9 = scmp.lt.s32.totalorder %s6356_s10, %s6356_s10 }
  0x52   :  { %p6363_p10 = por %p6362_p9, %p6361_p8 }
  0x54   :  { %p6364_p11 = pnand %p6363_p10, %p6357_p7 }
  0x56   :  { %6367 = shalt.err (!%p6364_p11)
}
  0x57   :  { %35 = dma.hbm_to_vmem [thread:$0]  %s7425_s1, 2048, %s30_s18, [#allocation3], %s6470_s24, %s6470_s24, %s6471_s23  }
  0x58   :  { %s6368_s15 = scalar_lea.hbm %s7428_s4, 2048 }
  0x59   :  { %p6369_p12 = scmp.ne.s32.totalorder %s7428_s4, %s6368_s15  ;;  %p6372_p13 = scmp.lt.u32.totalorder %s6368_s15, %s7428_s4 }
  0x5b   :  { %p6374_p0 = pnand %p6372_p13, %p6369_p12 }
  0x5d   :  { %6377 = shalt.err (!%p6374_p0)
}
  0x5e   :  { %s6378_s19 = scalar_lea.vmem %s6610_s20, 2048  ;;  %p6383_p2 = scmp.lt.s32.totalorder %s6610_s20, %s6610_s20 }
  0x5f   :  { %p6379_p1 = scmp.ne.s32.totalorder %s6610_s20, %s6378_s19  ;;  %p6384_p3 = scmp.lt.s32.totalorder %s6378_s19, %s6378_s19 }
  0x61   :  { %p6385_p4 = por %p6384_p3, %p6383_p2 }
  0x63   :  { %p6386_p5 = pnand %p6385_p4, %p6379_p1 }
  0x65   :  { %6389 = shalt.err (!%p6386_p5)
}
  0x66   :  { %59 = dma.hbm_to_vmem [thread:$0]  %s7428_s4, 2048, %s6610_s20, [#allocation5], %s6470_s24, %s6470_s24, %s6471_s23  }
  0x67   :  { %s6474_s21 = smov [#allocation9]   ;;  %s6475_s25 = smov [#allocation12]  }
  0x68   :  { %s77_s6 = sshll.u32 %s6474_s21, 4  ;;  %s102_s26 = sshll.u32 %s6475_s25, 4  ;;  %s78_s6 = int_to_ptr.vmem [resolvable:$true] %s77_s6  ;;  %s103_s26 = int_to_ptr.vmem [resolvable:$true] %s102_s26 }
  0x69   :  { %s6390_s3 = scalar_lea.hbm %s7431_s7, 512 }
  0x6a   :  { %p6391_p6 = scmp.ne.s32.totalorder %s7431_s7, %s6390_s3  ;;  %p6394_p7 = scmp.lt.u32.totalorder %s6390_s3, %s7431_s7 }
  0x6c   :  { %p6396_p8 = pnand %p6394_p7, %p6391_p6 }
  0x6e   :  { %6399 = shalt.err (!%p6396_p8)
}
  0x6f   :  { %s6400_s4 = scalar_lea.vmem %s78_s6, 512  ;;  %p6405_p10 = scmp.lt.s32.totalorder %s78_s6, %s78_s6 }
  0x70   :  { %p6401_p9 = scmp.ne.s32.totalorder %s78_s6, %s6400_s4  ;;  %p6406_p11 = scmp.lt.s32.totalorder %s6400_s4, %s6400_s4 }
  0x72   :  { %p6407_p12 = por %p6406_p11, %p6405_p10 }
  0x74   :  { %p6408_p13 = pnand %p6407_p12, %p6401_p9 }
  0x76   :  { %6411 = shalt.err (!%p6408_p13)
}
  0x77   :  { %83 = dma.hbm_to_vmem [thread:$0]  %s7431_s7, 512, %s78_s6, [#allocation8], %s6470_s24, %s6470_s24, %s6471_s23  }
  0x78   :  { %s6412_s8 = scalar_lea.hbm %s7433_s9, 16 }
  0x79   :  { %p6413_p0 = scmp.ne.s32.totalorder %s7433_s9, %s6412_s8  ;;  %p6416_p1 = scmp.lt.u32.totalorder %s6412_s8, %s7433_s9 }
  0x7b   :  { %p6418_p2 = pnand %p6416_p1, %p6413_p0 }
  0x7d   :  { %6421 = shalt.err (!%p6418_p2)
}
  0x7e   :  { %s6422_s18 = scalar_lea.vmem %s103_s26, 16  ;;  %s6426_s21 = scalar_lea.vmem %s103_s26, 32 }
  0x7f   :  { %p6423_p3 = scmp.ne.s32.totalorder %s103_s26, %s6422_s18  ;;  %p6427_p4 = scmp.lt.s32.totalorder %s103_s26, %s103_s26 }
  0x80   :  { %p6428_p5 = scmp.lt.s32.totalorder %s6426_s21, %s6422_s18 }
  0x82   :  { %p6429_p6 = por %p6428_p5, %p6427_p4 }
  0x84   :  { %p6430_p7 = pnand %p6429_p6, %p6423_p3 }
  0x86   :  { %6433 = shalt.err (!%p6430_p7)
}
  0x87   :  { %105 = dma.hbm_to_vmem [thread:$0]  %s7433_s9, 16, %s103_s26, [#allocation11]  }
  0x88   :  { %s6476_s23 = smov [#allocation15]   ;;  %s6434_s28 = scalar_lea.hbm %s7435_s11, 16 }
  0x89   :  { %s124_s6 = sshll.u32 %s6476_s23, 4  ;;  %p6435_p8 = scmp.ne.s32.totalorder %s7435_s11, %s6434_s28  ;;  %s125_s6 = int_to_ptr.vmem [resolvable:$true] %s124_s6 }
  0x8a   :  { %p6438_p9 = scmp.lt.u32.totalorder %s6434_s28, %s7435_s11 }
  0x8c   :  { %p6440_p10 = pnand %p6438_p9, %p6435_p8 }
  0x8e   :  { %6443 = shalt.err (!%p6440_p10)
}
  0x8f   :  { %s6444_s29 = scalar_lea.vmem %s125_s6, 16  ;;  %s6448_s9 = scalar_lea.vmem %s125_s6, 32 }
  0x90   :  { %p6445_p11 = scmp.ne.s32.totalorder %s125_s6, %s6444_s29  ;;  %p6449_p12 = scmp.lt.s32.totalorder %s125_s6, %s125_s6 }
  0x91   :  { %p6450_p13 = scmp.lt.s32.totalorder %s6448_s9, %s6444_s29 }
  0x93   :  { %p6451_p0 = por %p6450_p13, %p6449_p12 }
  0x95   :  { %p6452_p1 = pnand %p6451_p0, %p6445_p11 }
  0x97   :  { %6455 = shalt.err (!%p6452_p1)
}
  0x98   :  { %127 = dma.hbm_to_vmem [thread:$0]  %s7435_s11, 16, %s125_s6, [#allocation14]  }
  0x99   :  { %6456 = dma.done.wait [#allocation3], 2048  }
  0x9a   :  { %6457 = vsyncadd [#allocation3], 4294965248 }
  0x9b   :  { %6458 = dma.done.wait [#allocation5], 2064  }
  0x9c   :  { %6459 = vsyncadd [#allocation5], 4294965232 }
  0x9d   :  { %6460 = dma.done.wait [#allocation8], 528  }
  0x9e   :  { %6461 = vsyncadd [#allocation8], 4294966768 }
  0x9f   :  { %6462 = dma.done.wait [#allocation11], 528  }
  0xa0   :  { %6463 = vsyncadd [#allocation11], 4294966768 }
  0xa1   :  { %6464 = dma.done.wait [#allocation14], 528  }
  0xa2   :  { %6465 = vsyncadd [#allocation14], 4294966768  ;;  %v6477_v0 = vmov 0   ;;  %v6478_v1 = vmov 0.0|0.0   ;;  %v230_v2 = vld [vmem:[%s7424_s0] sm:$0xff]  ;;  %v156_v4 = vld [vmem:[#allocation2 + $0x8] sm:$0xff]  ;;  %v228_v35 = vlaneseq }
  0xa3   :  { %6101 = vset.pattern.permute.xlu0 %v6477_v0  ;;  %5677 = vmatprep.subr.bf16.mxu1 %v6478_v1  ;;  %v155_v3 = vld [vmem:[#allocation2] sm:$0xff]  ;;  %v157_v5 = vld [vmem:[#allocation2 + $0x10] sm:$0xff]  ;;  %v158_v6 = vld [vmem:[#allocation2 + $0x18] sm:$0xff]  ;;  %vm6479_vm0 = vmmov 0   ;;  %v6480_v20 = vmov 0.0   ;;  %v6481_v38 = vmov 1.0  }
  0xa4   :  { %233 = vperm.xlu0 %6101, %v230_v2   ;;  %v231_v7 = vld [vmem:[%s7424_s0 + $0x8] sm:$0xff]  ;;  %v5645_v8 = vpack.c.bf16 %v156_v4, %v155_v3  ;;  %v5649_v9 = vpack.c.bf16 %v158_v6, %v157_v5  ;;  %v159_v10 = vld [vmem:[#allocation2 + $0x20] sm:$0xff]  ;;  %v173_v16 = vld [vmem:[%s7426_s2 + $0x10] sm:$0xff]  ;;  %5007 = vmatprep.mubr.msk.f32.mxu1 %vm6479_vm0, %v6480_v20  ;;  %v6724_v36 = vand.u32 127, %v228_v35  ;;  %s6483_s21 = smov 32   ;;  %vm326_vm3 = vcmask 261120  }
  0xa5   :  { %v160_v11 = vld [vmem:[#allocation2 + $0x28] sm:$0xff]  ;;  %v171_v12 = vld [vmem:[%s7426_s2] sm:$0xff]  ;;  %v161_v17 = vld [vmem:[#allocation2 + $0x30] sm:$0xff]  ;;  %vm1169_vm4 = vcmask 1041408   ;;  %vm1171_vm5 = vcmask 1043456   ;;  %vm1173_vm6 = vcmask 1045504  }
  0xa6   :  { %5646 = vmatprep.subr.bf16.mxu0 %v5645_v8  ;;  %v172_v13 = vld [vmem:[%s7426_s2 + $0x8] sm:$0xff]  ;;  %v5653_v14 = vpack.c.bf16 %v160_v11, %v159_v10  ;;  %v162_v18 = vld [vmem:[#allocation2 + $0x38] sm:$0xff]  ;;  %v163_v23 = vld [vmem:[#allocation2 + $0x40] sm:$0xff]  ;;  %vm1193_vm7 = vcmp.eq.s32.totalorder %v6724_v36, 1  ;;  %vm1456_vm10 = vcmask 123904   ;;  %vm1470_vm11 = vcmask 130048  }
  0xa7   :  { %5648 = vmatpush3.bf16.msra.mxu0 %v5645_v8  ;;  %v6699_v15 = vpack.c.bf16 %v172_v13, %v171_v12  ;;  %v174_v19 = vld [vmem:[%s7426_s2 + $0x18] sm:$0xff]  ;;  %v5657_v22 = vpack.c.bf16 %v162_v18, %v161_v17  ;;  %v164_v24 = vld [vmem:[#allocation2 + $0x48] sm:$0xff]  ;;  %v165_v26 = vld [vmem:[#allocation2 + $0x50] sm:$0xff]  ;;  %s6482_s2 = smov 64   ;;  %vm1763_vm12 = vcmp.lt.s32.totalorder %v6724_v36, 50 }
  0xa8   :  { %236 = vperm.xlu0 %6101, %v231_v7   ;;  %5650 = vmatprep.subr.bf16.mxu0 %v5649_v9  ;;  %v6710_v21 = vpack.c.bf16 %v174_v19, %v173_v16  ;;  %v5661_v25 = vpack.c.bf16 %v164_v24, %v163_v23  ;;  %v166_v27 = vld [vmem:[#allocation2 + $0x58] sm:$0xff]  ;;  %v167_v29 = vld [vmem:[#allocation2 + $0x60] sm:$0xff]  ;;  %v168_v30 = vld [vmem:[#allocation2 + $0x68] sm:$0xff] }
  0xa9   :  { %5679 = vmatpush3.bf16.msra.mxu1 %v6699_v15  ;;  %v5665_v28 = vpack.c.bf16 %v166_v27, %v165_v26  ;;  %v5669_v31 = vpack.c.bf16 %v168_v30, %v167_v29  ;;  %v169_v32 = vld [vmem:[#allocation2 + $0x70] sm:$0xff]  ;;  %v170_v33 = vld [vmem:[#allocation2 + $0x78] sm:$0xff]  ;;  %v4564_v42 = vld [vmem:[#allocation4] ss:$0 sm:$0xff] }
  0xaa   :  { %5680 = vmatprep.subr.bf16.mxu1 %v6478_v1  ;;  %v5673_v34 = vpack.c.bf16 %v170_v33, %v169_v32  ;;  %vm6920_vm8 = vmpackc.low %vm326_vm3, %vm326_vm3 }
  0xab   :  { %5652 = vmatpush3.bf16.msra.mxu0 %v5649_v9 }
  0xac   :  { %5654 = vmatprep.subr.bf16.mxu0 %v5653_v14 }
  0xad   :  { %5682 = vmatpush3.bf16.msra.mxu1 %v6710_v21 }
  0xae   :  { %5683 = vmatprep.subr.bf16.mxu1 %v6478_v1 }
  0xaf   :  { %5656 = vmatpush3.bf16.msra.mxu0 %v5653_v14 }
  0xb0   :  { %5658 = vmatprep.subr.bf16.mxu0 %v5657_v22  ;;  %5008 = vmatmul.mubr.f32.vlgmr.msra.gmra.mrb[0].mxu1 %v6480_v20 }
  0xb1   :  { %5685 = vmatpush3.bf16.msra.mxu1 %v6699_v15  ;;  %5018 = vmatprep.mubr.msk.f32.mxu1 %vm6479_vm0, %v6480_v20 }
  0xb2   :  { %5686 = vmatprep.subr.bf16.mxu1 %v6478_v1 }
  0xb3   :  { %5660 = vmatpush3.bf16.msra.mxu0 %v5657_v22 }
  0xb4   :  { %5662 = vmatprep.subr.bf16.mxu0 %v5661_v25 }
  0xb5   :  { %5688 = vmatpush3.bf16.msra.mxu1 %v6710_v21 }
  0xb6   :  { %5689 = vmatprep.subr.bf16.mxu1 %v6478_v1 }
  0xb7   :  { %5664 = vmatpush3.bf16.msra.mxu0 %v5661_v25 }
  0xb8   :  { %5666 = vmatprep.subr.bf16.mxu0 %v5665_v28 }
  0xbb   :  { %5668 = vmatpush3.bf16.msra.mxu0 %v5665_v28 }
  0xbc   :  { %5670 = vmatprep.subr.bf16.mxu0 %v5669_v31 }
  0xbf   :  { %5672 = vmatpush3.bf16.msra.mxu0 %v5669_v31 }
  0xc0   :  { %5674 = vmatprep.subr.bf16.mxu0 %v5673_v34 }
  0xc3   :  { %5676 = vmatpush3.bf16.msra.mxu0 %v5673_v34 }
  0xc4   :  { %5701 = vmatprep.subr.bf16.mxu0 %v6478_v1 }
 0x123   :  { %v234_v37 = vpop.permute.xlu0 %233 }
 0x124   :  { %vm238_vm1 = vcmp.eq.s32.totalorder %v6724_v36, %v234_v37 }
 0x125   :  { %4996 = vmatprep.mubr.msk.f32.mxu0 %vm238_vm1, %v6481_v38 }
 0x127   :  { %v237_v39 = vpop.permute.xlu0 %236 }
 0x128   :  { %vm239_vm2 = vcmp.eq.s32.totalorder %v6724_v36, %v237_v39 }
 0x129   :  { %4997 = vmatmul.mubr.msk.f32.vlgmr.msra.gmra.mrb[0].mxu0 %vm239_vm2, %v6481_v38 }
 0x12a   :  { %5703 = vmatpush3.bf16.msra.mxu0 %v6699_v15  ;;  %5051 = vmatprep.mubr.msk.f32.mxu0 %vm6479_vm0, %v6480_v20 }
 0x12b   :  { %5704 = vmatprep.subr.bf16.mxu0 %v6478_v1 }
 0x12e   :  { %5706 = vmatpush3.bf16.msra.mxu0 %v6710_v21 }
 0x12f   :  { %5713 = vmatprep.subr.bf16.mxu0 %v6478_v1 }
 0x183   :  { %v396_v40 = vpop.f32.mrb[0].mxu1 }
 0x184   :  { %v5009_v41 = vpop.f32.mrb[1].mxu1 }
 0x1fc   :  { %v4998_v43 = vpop.f32.mrb[0].mxu0 }
 0x1fd   :  { %v6736_v44 = vadd.f32 %v4998_v43, %v4564_v42  ;;  %v317_v45 = vpop.f32.mrb[1].mxu0 }
 0x1fe   :  { %v6738_v46 = vadd.f32 %v4564_v42, %v317_v45 }
 0x200   :  { %v400_v47 = vadd.f32 %v396_v40, %v6738_v46 }
 0x202   :  { %6107 = vtanh.f32 %v400_v47  ;;  %v4567_v49 = vmul.f32 -1.442695, %v400_v47 }
 0x204   :  { %6109 = vpow2.f32 %v4567_v49 }
 0x20c   :  { %v6108_v48 = vpop.eup %6107 }
 0x20d   :  { %410 = vrot.lane.b32.xlu1 %v6108_v48, %s6482_s2 }
 0x20e   :  { %v6110_v50 = vpop.eup %6109 }
 0x20f   :  { %v404_v51 = vadd.f32 1.0, %v6110_v50 }
 0x211   :  { %6111 = vrcp.f32 %v404_v51 }
 0x21b   :  { %v6112_v52 = vpop.eup %6111 }
 0x21c   :  { %v408_v55 = vmul.f32 0.0, %v6112_v52 }
 0x27f   :  { %v411_v53 = vpop.permute.xlu1 %410 }
 0x280   :  { %v413_v54 = vmul.f32 %v6112_v52, %v411_v53 }
 0x282   :  { %415 = vrot.lane.b32.xlu1 %v413_v54, %s6483_s21 }
 0x2f4   :  { %v416_v56 = vpop.permute.xlu1 %415 }
 0x2f5   :  { %v418_v57 = vadd.f32 %v416_v56, %v408_v55 }
 0x2f7   :  { %6113 = vtanh.f32 %v418_v57  ;;  %v512_v10 = vrot.slane %v418_v57, 6 }
 0x301   :  { %v6114_v58 = vpop.eup %6113 }
 0x302   :  { %421 = vrot.lane.b32.xlu0 %v6114_v58, %s6482_s2 }
 0x374   :  { %v422_v59 = vpop.permute.xlu0 %421 }
 0x375   :  { %v6744_v60 = vmul.f32 %v6112_v52, %v422_v59 }
 0x377   :  { %426 = vrot.lane.b32.xlu1 %v6744_v60, %s6483_s21 }
 0x3e9   :  { %v427_v61 = vpop.permute.xlu1 %426 }
 0x3ea   :  { %5019 = vmatmul.mubr.msk.f32.vlgmr.msra.gmra.mrb[2].mxu1 %vm326_vm3, %v427_v61 }
 0x3eb   :  { %5691 = vmatpush3.bf16.msra.mxu1 %v6699_v15  ;;  %5029 = vmatprep.mubr.msk.f32.mxu1 %vm6479_vm0, %v6480_v20 }
 0x3ec   :  { %5692 = vmatprep.subr.bf16.mxu1 %v6478_v1 }
 0x3ef   :  { %5694 = vmatpush3.bf16.msra.mxu1 %v6710_v21 }
 0x3f0   :  { %5695 = vmatprep.subr.bf16.mxu1 %v6478_v1 }
 0x4bd   :  { %v496_v62 = vpop.f32.mrb[2].mxu1 }
 0x4be   :  { %v501_v63 = vrot.slane %v496_v62, 6  ;;  %v5020_v0 = vpop.f32.mrb[3].mxu1 }
 0x4c0   :  { %v503_v2 = vadd.f32 %v501_v63, %v6738_v46 }
 0x4c2   :  { %6115 = vtanh.f32 %v503_v2  ;;  %v4569_v4 = vmul.f32 -1.442695, %v503_v2 }
 0x4c4   :  { %6117 = vpow2.f32 %v4569_v4 }
 0x4cc   :  { %v6116_v3 = vpop.eup %6115 }
 0x4cd   :  { %516 = vrot.lane.b32.xlu0 %v6116_v3, %s6482_s2 }
 0x4ce   :  { %v6118_v5 = vpop.eup %6117 }
 0x4cf   :  { %v507_v6 = vadd.f32 1.0, %v6118_v5 }
 0x4d1   :  { %6119 = vrcp.f32 %v507_v6 }
 0x4db   :  { %v6120_v7 = vpop.eup %6119 }
 0x4dc   :  { %v514_v11 = vmul.f32 %v6120_v7, %v512_v10 }
 0x53f   :  { %v517_v8 = vpop.permute.xlu0 %516 }
 0x540   :  { %v519_v9 = vmul.f32 %v6120_v7, %v517_v8 }
 0x542   :  { %521 = vrot.lane.b32.xlu1 %v519_v9, %s6483_s21 }
 0x5b4   :  { %v522_v12 = vpop.permute.xlu1 %521 }
 0x5b5   :  { %v524_v13 = vadd.f32 %v522_v12, %v514_v11 }
 0x5b7   :  { %6121 = vtanh.f32 %v524_v13  ;;  %v619_v33 = vrot.slane %v524_v13, 6 }
 0x5c1   :  { %v6122_v14 = vpop.eup %6121 }
 0x5c2   :  { %527 = vrot.lane.b32.xlu0 %v6122_v14, %s6482_s2 }
 0x634   :  { %v528_v16 = vpop.permute.xlu0 %527 }
 0x635   :  { %v530_v17 = vmul.f32 %v6120_v7, %v528_v16 }
 0x637   :  { %v532_v18 = vrot.slane %v530_v17, 2  ;;  %v1170_v43 = vsel %vm1169_vm4, %v6744_v60, %v530_v17 }
 0x639   :  { %533 = vrot.lane.b32.xlu1 %v532_v18, %s6483_s21 }
 0x6ab   :  { %v534_v19 = vpop.permute.xlu1 %533 }
 0x6ac   :  { %5030 = vmatmul.mubr.msk.f32.vlgmr.msra.gmra.mrb[4].mxu1 %vm326_vm3, %v534_v19 }
 0x6ad   :  { %5697 = vmatpush3.bf16.msra.mxu1 %v6699_v15  ;;  %5040 = vmatprep.mubr.msk.f32.mxu1 %vm6479_vm0, %v6480_v20 }
 0x6ae   :  { %5698 = vmatprep.subr.bf16.mxu1 %v6478_v1 }
 0x6b1   :  { %5700 = vmatpush3.bf16.msra.mxu1 %v6710_v21 }
 0x6b2   :  { %5707 = vmatprep.subr.bf16.mxu1 %v6478_v1 }
 0x77f   :  { %v603_v22 = vpop.f32.mrb[4].mxu1 }
 0x780   :  { %v608_v23 = vrot.slane %v603_v22, 4  ;;  %v5031_v24 = vpop.f32.mrb[5].mxu1 }
 0x782   :  { %v610_v25 = vadd.f32 %v608_v23, %v6738_v46 }
 0x784   :  { %6123 = vtanh.f32 %v610_v25  ;;  %v4571_v27 = vmul.f32 -1.442695, %v610_v25 }
 0x786   :  { %6125 = vpow2.f32 %v4571_v27 }
 0x78e   :  { %v6124_v26 = vpop.eup %6123 }
 0x78f   :  { %623 = vrot.lane.b32.xlu0 %v6124_v26, %s6482_s2 }
 0x790   :  { %v6126_v28 = vpop.eup %6125 }
 0x791   :  { %v614_v29 = vadd.f32 1.0, %v6126_v28 }
 0x793   :  { %6127 = vrcp.f32 %v614_v29 }
 0x79d   :  { %v6128_v30 = vpop.eup %6127 }
 0x79e   :  { %v621_v34 = vmul.f32 %v6128_v30, %v619_v33 }
 0x801   :  { %v624_v31 = vpop.permute.xlu0 %623 }
 0x802   :  { %v626_v32 = vmul.f32 %v6128_v30, %v624_v31 }
 0x804   :  { %628 = vrot.lane.b32.xlu1 %v626_v32, %s6483_s21 }
 0x876   :  { %v629_v37 = vpop.permute.xlu1 %628 }
 0x877   :  { %v631_v39 = vadd.f32 %v629_v37, %v621_v34 }
 0x879   :  { %6129 = vtanh.f32 %v631_v39  ;;  %v726_v60 = vrot.slane %v631_v39, 6 }
 0x883   :  { %v6130_v40 = vpop.eup %6129 }
 0x884   :  { %634 = vrot.lane.b32.xlu0 %v6130_v40, %s6482_s2 }
 0x8f6   :  { %v635_v41 = vpop.permute.xlu0 %634 }
 0x8f7   :  { %v637_v42 = vmul.f32 %v6128_v30, %v635_v41 }
 0x8f9   :  { %v639_v45 = vrot.slane %v637_v42, 4  ;;  %v1172_v47 = vsel %vm1171_vm5, %v1170_v43, %v637_v42 }
 0x8fb   :  { %640 = vrot.lane.b32.xlu1 %v639_v45, %s6483_s21 }
 0x96d   :  { %v641_v48 = vpop.permute.xlu1 %640 }
 0x96e   :  { %5041 = vmatmul.mubr.msk.f32.vlgmr.msra.gmra.mrb[6].mxu1 %vm326_vm3, %v641_v48 }
 0x96f   :  { %5709 = vmatpush3.bf16.msra.mxu1 %v6699_v15  ;;  %5062 = vmatprep.mubr.msk.f32.mxu1 %vm6479_vm0, %v6480_v20 }
 0x970   :  { %5710 = vmatprep.subr.bf16.mxu1 %v6478_v1 }
 0x973   :  { %5712 = vmatpush3.bf16.msra.mxu1 %v6710_v21 }
 0x974   :  { %5719 = vmatprep.subr.bf16.mxu1 %v6478_v1 }
 0xa41   :  { %v710_v49 = vpop.f32.mrb[6].mxu1 }
 0xa42   :  { %v715_v50 = vrot.slane %v710_v49, 2  ;;  %v5042_v51 = vpop.f32.mrb[7].mxu1 }
 0xa44   :  { %v717_v52 = vadd.f32 %v715_v50, %v6738_v46 }
 0xa46   :  { %6131 = vtanh.f32 %v717_v52  ;;  %v4573_v54 = vmul.f32 -1.442695, %v717_v52 }
 0xa48   :  { %6133 = vpow2.f32 %v4573_v54 }
 0xa50   :  { %v6132_v53 = vpop.eup %6131 }
 0xa51   :  { %730 = vrot.lane.b32.xlu0 %v6132_v53, %s6482_s2 }
 0xa52   :  { %v6134_v55 = vpop.eup %6133 }
 0xa53   :  { %v721_v56 = vadd.f32 1.0, %v6134_v55 }
 0xa55   :  { %6135 = vrcp.f32 %v721_v56 }
 0xa5f   :  { %v6136_v57 = vpop.eup %6135 }
 0xa60   :  { %v728_v61 = vmul.f32 %v6136_v57, %v726_v60 }
 0xac3   :  { %v731_v58 = vpop.permute.xlu0 %730 }
 0xac4   :  { %v733_v59 = vmul.f32 %v6136_v57, %v731_v58 }
 0xac6   :  { %735 = vrot.lane.b32.xlu1 %v733_v59, %s6483_s21 }
 0xb38   :  { %v736_v62 = vpop.permute.xlu1 %735 }
 0xb39   :  { %v738_v63 = vadd.f32 %v736_v62, %v728_v61 }
 0xb3b   :  { %6137 = vtanh.f32 %v738_v63  ;;  %v830_v17 = vrot.slane %v738_v63, 6 }
 0xb45   :  { %v6138_v46 = vpop.eup %6137 }
 0xb46   :  { %741 = vrot.lane.b32.xlu0 %v6138_v46, %s6482_s2 }
 0xbb8   :  { %v742_v0 = vpop.permute.xlu0 %741 }
 0xbb9   :  { %v744_v2 = vmul.f32 %v6136_v57, %v742_v0 }
 0xbbb   :  { %v746_v3 = vrot.slane %v744_v2, 6  ;;  %v6787_v4 = vsel %vm1173_vm6, %v1172_v47, %v744_v2 }
 0xbbd   :  { %747 = vrot.lane.b32.xlu1 %v746_v3, %s6483_s21 }
 0xc2f   :  { %v748_v5 = vpop.permute.xlu1 %747 }
 0xc30   :  { %5052 = vmatmul.mubr.msk.f32.vlgmr.msra.gmra.mrb[2].mxu0 %vm326_vm3, %v748_v5 }
 0xc31   :  { %5715 = vmatpush3.bf16.msra.mxu0 %v6699_v15  ;;  %5073 = vmatprep.mubr.msk.f32.mxu0 %vm6479_vm0, %v6480_v20 }
 0xc32   :  { %5716 = vmatprep.subr.bf16.mxu0 %v6478_v1 }
 0xc35   :  { %5718 = vmatpush3.bf16.msra.mxu0 %v6710_v21 }
 0xc36   :  { %5725 = vmatprep.subr.bf16.mxu0 %v6478_v1 }
 0xd03   :  { %v817_v6 = vpop.f32.mrb[2].mxu0 }
 0xd04   :  { %v821_v7 = vadd.f32 %v817_v6, %v6736_v44  ;;  %v5053_v8 = vpop.f32.mrb[3].mxu0 }
 0xd06   :  { %6139 = vtanh.f32 %v821_v7  ;;  %v4575_v10 = vmul.f32 -1.442695, %v821_v7 }
 0xd08   :  { %6141 = vpow2.f32 %v4575_v10 }
 0xd10   :  { %v6140_v9 = vpop.eup %6139 }
 0xd11   :  { %834 = vrot.lane.b32.xlu0 %v6140_v9, %s6482_s2 }
 0xd12   :  { %v6142_v11 = vpop.eup %6141 }
 0xd13   :  { %v825_v12 = vadd.f32 1.0, %v6142_v11 }
 0xd15   :  { %6143 = vrcp.f32 %v825_v12 }
 0xd1f   :  { %v6144_v13 = vpop.eup %6143 }
 0xd20   :  { %v832_v18 = vmul.f32 %v6144_v13, %v830_v17 }
 0xd83   :  { %v835_v14 = vpop.permute.xlu0 %834 }
 0xd84   :  { %v837_v16 = vmul.f32 %v6144_v13, %v835_v14 }
 0xd86   :  { %839 = vrot.lane.b32.xlu1 %v837_v16, %s6483_s21 }
 0xdf8   :  { %v840_v19 = vpop.permute.xlu1 %839 }
 0xdf9   :  { %v842_v22 = vadd.f32 %v840_v19, %v832_v18 }
 0xdfb   :  { %6145 = vtanh.f32 %v842_v22 }
 0xe05   :  { %v6146_v23 = vpop.eup %6145 }
 0xe06   :  { %845 = vrot.lane.b32.xlu0 %v6146_v23, %s6482_s2 }
 0xe78   :  { %v846_v24 = vpop.permute.xlu0 %845 }
 0xe79   :  { %v6801_v25 = vmul.f32 %v6144_v13, %v846_v24 }
 0xe7b   :  { %850 = vrot.lane.b32.xlu1 %v6801_v25, %s6483_s21 }
 0xeed   :  { %v851_v26 = vpop.permute.xlu1 %850 }
 0xeee   :  { %5063 = vmatmul.mubr.msk.f32.vlgmr.msra.gmra.mrb[8].mxu1 %vm326_vm3, %v851_v26  ;;  %v175_v26 = vld [vmem:[#allocation6] sm:$0xff] }
 0xeef   :  { %5721 = vmatpush3.bf16.msra.mxu1 %v6699_v15  ;;  %5084 = vmatprep.mubr.msk.f32.mxu1 %vm6479_vm0, %v6480_v20 }
 0xef0   :  { %5722 = vmatprep.subr.bf16.mxu1 %v6478_v1 }
 0xef3   :  { %5724 = vmatpush3.bf16.msra.mxu1 %v6710_v21  ;;  %v936_v21 = vrot.slane %v842_v22, 6 }
 0xef4   :  { %5755 = vmatprep.subr.bf16.mxu1 %v6478_v1 }
 0xfc1   :  { %v920_v27 = vpop.f32.mrb[8].mxu1 }
 0xfc2   :  { %v925_v28 = vrot.slane %v920_v27, 6  ;;  %v5064_v29 = vpop.f32.mrb[9].mxu1  ;;  %v176_v27 = vld [vmem:[#allocation6 + $0x8] sm:$0xff] }
 0xfc3   :  { %v6843_v29 = vpack.c.bf16 %v176_v27, %v175_v26 }
 0xfc4   :  { %v927_v30 = vadd.f32 %v925_v28, %v6736_v44  ;;  %v177_v28 = vld [vmem:[#allocation6 + $0x10] sm:$0xff] }
 0xfc6   :  { %6147 = vtanh.f32 %v927_v30  ;;  %v4577_v32 = vmul.f32 -1.442695, %v927_v30  ;;  %v178_v30 = vld [vmem:[#allocation6 + $0x18] sm:$0xff] }
 0xfc8   :  { %6149 = vpow2.f32 %v4577_v32  ;;  %v179_v32 = vld [vmem:[#allocation6 + $0x20] sm:$0xff] }
 0xfd0   :  { %v6148_v31 = vpop.eup %6147 }
 0xfd1   :  { %940 = vrot.lane.b32.xlu0 %v6148_v31, %s6482_s2  ;;  %v6846_v31 = vpack.c.bf16 %v178_v30, %v177_v28  ;;  %v1182_v28 = vand.u32 1, %v6724_v36  ;;  %v1191_v30 = vshrl.u32 %v228_v35, 7 }
 0xfd2   :  { %v6150_v15 = vpop.eup %6149 }
 0xfd3   :  { %v931_v33 = vadd.f32 1.0, %v6150_v15  ;;  %v180_v15 = vld [vmem:[#allocation6 + $0x28] sm:$0xff]  ;;  %vm6946_vm9 = vcmp.eq.s32.totalorder %v1182_v28, %v1191_v30 }
 0xfd5   :  { %6151 = vrcp.f32 %v931_v33  ;;  %v6850_v33 = vpack.c.bf16 %v180_v15, %v179_v32 }
 0xfdf   :  { %v6152_v34 = vpop.eup %6151 }
 0xfe0   :  { %v938_v40 = vmul.f32 %v6152_v34, %v936_v21 }
0x1043   :  { %v941_v37 = vpop.permute.xlu0 %940 }
0x1044   :  { %v943_v39 = vmul.f32 %v6152_v34, %v941_v37  ;;  %v181_v37 = vld [vmem:[#allocation6 + $0x30] sm:$0xff] }
0x1046   :  { %945 = vrot.lane.b32.xlu1 %v943_v39, %s6483_s21  ;;  %v182_v39 = vld [vmem:[#allocation6 + $0x38] sm:$0xff] }
0x1047   :  { %v6855_v21 = vpack.c.bf16 %v182_v39, %v181_v37 }
0x10b8   :  { %v946_v41 = vpop.permute.xlu1 %945 }
0x10b9   :  { %v948_v42 = vadd.f32 %v946_v41, %v938_v40  ;;  %v183_v40 = vld [vmem:[#allocation6 + $0x40] sm:$0xff]  ;;  %v184_v41 = vld [vmem:[#allocation6 + $0x48] sm:$0xff] }
0x10bb   :  { %6153 = vtanh.f32 %v948_v42  ;;  %v1043_v61 = vrot.slane %v948_v42, 6  ;;  %v6859_v42 = vpack.c.bf16 %v184_v41, %v183_v40 }
0x10c5   :  { %v6154_v43 = vpop.eup %6153 }
0x10c6   :  { %951 = vrot.lane.b32.xlu0 %v6154_v43, %s6482_s2  ;;  %v185_v43 = vld [vmem:[#allocation6 + $0x50] sm:$0xff] }
0x1138   :  { %v952_v45 = vpop.permute.xlu0 %951 }
0x1139   :  { %v954_v47 = vmul.f32 %v6152_v34, %v952_v45  ;;  %v186_v45 = vld [vmem:[#allocation6 + $0x58] sm:$0xff] }
0x113b   :  { %v956_v48 = vrot.slane %v954_v47, 2  ;;  %v1175_v5 = vsel %vm1169_vm4, %v6801_v25, %v954_v47  ;;  %v6863_v47 = vpack.c.bf16 %v186_v45, %v185_v43 }
0x113d   :  { %957 = vrot.lane.b32.xlu1 %v956_v48, %s6483_s21  ;;  %v187_v48 = vld [vmem:[#allocation6 + $0x60] sm:$0xff] }
0x11af   :  { %v958_v49 = vpop.permute.xlu1 %957 }
0x11b0   :  { %5074 = vmatmul.mubr.msk.f32.vlgmr.msra.gmra.mrb[4].mxu0 %vm326_vm3, %v958_v49  ;;  %v188_v49 = vld [vmem:[#allocation6 + $0x68] sm:$0xff] }
0x11b1   :  { %5119 = vmatprep.mubr.msk.f32.mxu0 %vm6479_vm0, %v6480_v20  ;;  %5727 = vmatpush3.bf16.msra.mxu0 %v6843_v29 }
0x11b2   :  { %5728 = vmatprep.subr.bf16.mxu0 %v6478_v1 }
0x11b5   :  { %5730 = vmatpush3.bf16.msra.mxu0 %v6846_v31 }
0x11b6   :  { %5731 = vmatprep.subr.bf16.mxu0 %v6478_v1 }
0x11b9   :  { %5733 = vmatpush3.bf16.msra.mxu0 %v6850_v33 }
0x11ba   :  { %5734 = vmatprep.subr.bf16.mxu0 %v6478_v1 }
0x11bd   :  { %5736 = vmatpush3.bf16.msra.mxu0 %v6855_v21 }
0x11be   :  { %5737 = vmatprep.subr.bf16.mxu0 %v6478_v1 }
0x11c1   :  { %5739 = vmatpush3.bf16.msra.mxu0 %v6859_v42 }
0x11c2   :  { %5740 = vmatprep.subr.bf16.mxu0 %v6478_v1 }
0x11c5   :  { %5742 = vmatpush3.bf16.msra.mxu0 %v6863_v47 }
0x11c6   :  { %5743 = vmatprep.subr.bf16.mxu0 %v6478_v1 }
0x1283   :  { %v1027_v50 = vpop.f32.mrb[4].mxu0 }
0x1284   :  { %v1032_v51 = vrot.slane %v1027_v50, 4  ;;  %v5075_v52 = vpop.f32.mrb[5].mxu0  ;;  %v6867_v50 = vpack.c.bf16 %v188_v49, %v187_v48  ;;  %v206_v49 = vld [vmem:[#allocation10] sm:$0xff] }
0x1285   :  { %v190_v52 = vld [vmem:[#allocation6 + $0x78] sm:$0xff] }
0x1286   :  { %v1034_v53 = vadd.f32 %v1032_v51, %v6736_v44  ;;  %v189_v51 = vld [vmem:[#allocation6 + $0x70] sm:$0xff]  ;;  %5745 = vmatpush3.bf16.msra.mxu0 %v6867_v50 }
0x1287   :  { %5746 = vmatprep.subr.bf16.mxu0 %v6478_v1 }
0x1288   :  { %6155 = vtanh.f32 %v1034_v53  ;;  %v4579_v55 = vmul.f32 -1.442695, %v1034_v53  ;;  %v6871_v53 = vpack.c.bf16 %v190_v52, %v189_v51  ;;  %v207_v51 = vld [vmem:[#allocation10 + $0x8] sm:$0xff] }
0x128a   :  { %6157 = vpow2.f32 %v4579_v55  ;;  %v192_v55 = vld [vmem:[%s7429_s5 + $0x8] sm:$0xff]  ;;  %5748 = vmatpush3.bf16.msra.mxu0 %v6871_v53 }
0x128b   :  { %5749 = vmatprep.subr.bf16.mxu0 %v6478_v1 }
0x128d   :  { %5120 = vmatmul.mubr.msk.f32.vlgmr.msra.gmra.mrb[6].mxu0 %vm1193_vm7, %v6481_v38 }
0x128e   :  { %5130 = vmatprep.mubr.msk.f32.mxu0 %vm6479_vm0, %v6480_v20 }
0x1292   :  { %v6156_v54 = vpop.eup %6155 }
0x1293   :  { %1047 = vrot.lane.b32.xlu0 %v6156_v54, %s6482_s2  ;;  %v191_v54 = vld [vmem:[%s7429_s5] sm:$0xff] }
0x1294   :  { %v6158_v56 = vpop.eup %6157 }
0x1295   :  { %v1038_v57 = vadd.f32 1.0, %v6158_v56  ;;  %v6882_v56 = vpack.c.bf16 %v192_v55, %v191_v54  ;;  %v6954_v54 = vpack.c.bf16 %v207_v51, %v206_v49 }
0x1297   :  { %6159 = vrcp.f32 %v1038_v57  ;;  %v193_v57 = vld [vmem:[%s7429_s5 + $0x10] sm:$0xff]  ;;  %5751 = vmatpush3.bf16.msra.mxu0 %v6882_v56 }
0x1298   :  { %5752 = vmatprep.subr.bf16.mxu0 %v6478_v1 }
0x12a1   :  { %v6160_v58 = vpop.eup %6159 }
0x12a2   :  { %v1045_v62 = vmul.f32 %v6160_v58, %v1043_v61 }
0x1305   :  { %v1048_v59 = vpop.permute.xlu0 %1047 }
0x1306   :  { %v1050_v60 = vmul.f32 %v6160_v58, %v1048_v59 }
0x1308   :  { %1052 = vrot.lane.b32.xlu1 %v1050_v60, %s6483_s21 }
0x137a   :  { %v1053_v63 = vpop.permute.xlu1 %1052 }
0x137b   :  { %v1055_v46 = vadd.f32 %v1053_v63, %v1045_v62 }
0x137d   :  { %6161 = vtanh.f32 %v1055_v46  ;;  %v1150_v23 = vrot.slane %v1055_v46, 6 }
0x1387   :  { %v6162_v0 = vpop.eup %6161 }
0x1388   :  { %1058 = vrot.lane.b32.xlu0 %v6162_v0, %s6482_s2 }
0x13fa   :  { %v1059_v2 = vpop.permute.xlu0 %1058 }
0x13fb   :  { %v1061_v3 = vmul.f32 %v6160_v58, %v1059_v2  ;;  %v194_v58 = vld [vmem:[%s7429_s5 + $0x18] sm:$0xff]  ;;  %v6908_v2 = vld [vmem:[#allocation7] ss:$0 sm:$0xff] }
0x13fc   :  { %v6893_v59 = vpack.c.bf16 %v194_v58, %v193_v57  ;;  %v208_v57 = vld [vmem:[#allocation10 + $0x10] sm:$0xff]  ;;  %v209_v58 = vld [vmem:[#allocation10 + $0x18] sm:$0xff] }
0x13fd   :  { %v1063_v6 = vrot.slane %v1061_v3, 4  ;;  %v6827_v7 = vsel %vm1171_vm5, %v1175_v5, %v1061_v3 }
0x13fe   :  { %5754 = vmatpush3.bf16.msra.mxu0 %v6893_v59 }
0x13ff   :  { %1064 = vrot.lane.b32.xlu1 %v1063_v6, %s6483_s21  ;;  %5810 = vmatprep.subr.bf16.mxu0 %v6478_v1 }
0x1471   :  { %v1065_v8 = vpop.permute.xlu1 %1064 }
0x1472   :  { %5085 = vmatmul.mubr.msk.f32.vlgmr.msra.gmra.mrb[10].mxu1 %vm326_vm3, %v1065_v8 }
0x1473   :  { %5137 = vmatprep.mubr.msk.f32.mxu1 %vm6479_vm0, %v6480_v20 }
0x1545   :  { %v1134_v9 = vpop.f32.mrb[10].mxu1 }
0x1546   :  { %v1139_v10 = vrot.slane %v1134_v9, 2  ;;  %v5086_v11 = vpop.f32.mrb[11].mxu1 }
0x1548   :  { %v1141_v12 = vadd.f32 %v1139_v10, %v6736_v44 }
0x154a   :  { %6163 = vtanh.f32 %v1141_v12  ;;  %v4581_v14 = vmul.f32 -1.442695, %v1141_v12 }
0x154c   :  { %6165 = vpow2.f32 %v4581_v14 }
0x1554   :  { %v6164_v13 = vpop.eup %6163 }
0x1555   :  { %1154 = vrot.lane.b32.xlu0 %v6164_v13, %s6482_s2 }
0x1556   :  { %v6166_v16 = vpop.eup %6165 }
0x1557   :  { %v1145_v17 = vadd.f32 1.0, %v6166_v16 }
0x1559   :  { %6167 = vrcp.f32 %v1145_v17 }
0x1563   :  { %v6835_v18 = vpop.eup %6167 }
0x1564   :  { %v1152_v24 = vmul.f32 %v6835_v18, %v1150_v23 }
0x15c7   :  { %v1155_v19 = vpop.permute.xlu0 %1154 }
0x15c8   :  { %v1157_v22 = vmul.f32 %v6835_v18, %v1155_v19 }
0x15ca   :  { %1159 = vrot.lane.b32.xlu1 %v1157_v22, %s6483_s21 }
0x163c   :  { %v1160_v44 = vpop.permute.xlu1 %1159 }
0x163d   :  { %v6840_v25 = vadd.f32 %v1160_v44, %v1152_v24 }
0x163f   :  { %6169 = vtanh.f32 %v6840_v25  ;;  %v1351_v13 = vrot.slane %v6840_v25, 6 }
0x1649   :  { %v6170_v34 = vpop.eup %6169 }
0x164a   :  { %1165 = vrot.lane.b32.xlu0 %v6170_v34, %s6482_s2 }
0x16bc   :  { %v1166_v60 = vpop.permute.xlu0 %1165 }
0x16bd   :  { %v1168_v61 = vmul.f32 %v6835_v18, %v1166_v60  ;;  %v6958_v60 = vpack.c.bf16 %v209_v58, %v208_v57 }
0x16bf   :  { %v1267_v62 = vrot.slane %v1168_v61, 6  ;;  %v1177_v63 = vsel %vm1173_vm6, %v6827_v7, %v1168_v61  ;;  %v202_v61 = vld [vmem:[#allocation9] sm:$0xff] }
0x16c0   :  { %v6102_v46 = vpack.i.bf16 %v1177_v63, %v6787_v4 }
0x16c1   :  { %1268 = vrot.lane.b32.xlu1 %v1267_v62, %s6483_s21  ;;  %v203_v62 = vld [vmem:[#allocation9 + $0x8] sm:$0xff] }
0x16c2   :  { %v6965_v63 = vpack.c.bf16 %v203_v62, %v202_v61 }
0x1733   :  { %v1269_v0 = vpop.permute.xlu1 %1268 }
0x1734   :  { %5131 = vmatmul.mubr.msk.f32.vlgmr.msra.gmra.mrb[6].mxu0 %vm326_vm3, %v1269_v0  ;;  %v205_v0 = vld [vmem:[#allocation9 + $0x18] sm:$0xff] }
0x1735   :  { %5230 = vmatprep.mubr.msk.f32.mxu0 %vm6479_vm0, %v6480_v20 }
0x1807   :  { %v1338_v3 = vpop.f32.mrb[6].mxu0 }
0x1808   :  { %v6055_v5 = vadd.f32 %v6908_v2, %v1338_v3  ;;  %v5132_v6 = vpop.f32.mrb[7].mxu0 }
0x180a   :  { %6171 = vtanh.f32 %v6055_v5  ;;  %v4585_v7 = vmul.f32 -1.442695, %v6055_v5 }
0x180c   :  { %6173 = vpow2.f32 %v4585_v7  ;;  %v218_v7 = vld [vmem:[#allocation13 + $0x8] sm:$0xff] }
0x1814   :  { %v6172_v8 = vpop.eup %6171 }
0x1815   :  { %1355 = vrot.lane.b32.xlu0 %v6172_v8, %s6482_s2  ;;  %v217_v8 = vld [vmem:[#allocation13] sm:$0xff] }
0x1816   :  { %v6174_v4 = vpop.eup %6173 }
0x1817   :  { %v1346_v9 = vadd.f32 1.0, %v6174_v4  ;;  %v219_v4 = vld [vmem:[#allocation13 + $0x10] sm:$0xff] }
0x1819   :  { %6175 = vrcp.f32 %v1346_v9  ;;  %v6980_v9 = vpack.c.bf16 %v218_v7, %v217_v8 }
0x1823   :  { %v6176_v10 = vpop.eup %6175 }
0x1824   :  { %v1353_v14 = vmul.f32 %v6176_v10, %v1351_v13 }
0x1887   :  { %v1356_v11 = vpop.permute.xlu0 %1355 }
0x1888   :  { %v1358_v12 = vmul.f32 %v6176_v10, %v1356_v11 }
0x188a   :  { %1360 = vrot.lane.b32.xlu1 %v1358_v12, %s6483_s21 }
0x188e   :  { %6103 = vrot.lane.b32.xlu1 %v6102_v46, %s6483_s21  ;;  %v204_v46 = vld [vmem:[#allocation9 + $0x10] sm:$0xff] }
0x188f   :  { %v6969_v6 = vpack.c.bf16 %v205_v0, %v204_v46 }
0x18fc   :  { %v1361_v16 = vpop.permute.xlu1 %1360 }
0x18fd   :  { %v6915_v17 = vadd.f32 %v1361_v16, %v1353_v14  ;;  %v6988_v14 = vld [vmem:[#allocation12] ss:$0 sm:$0xff] }
0x18ff   :  { %6177 = vtanh.f32 %v6915_v17 }
0x1900   :  { %v6104_v18 = vpop.permute.xlu1 %6103 }
0x1901   :  { %v6106_v19 = vunpack.i.h.bf16 %v6104_v18  ;;  %v6105_v22 = vunpack.i.l.bf16 %v6104_v18 }
0x1903   :  { %v6924_v24 = vpack.c.bf16 %v6106_v19, %v6105_v22 }
0x1905   :  { %5758 = vmatpush3.bf16.xpose.msk.msra.mxu1 %vm6920_vm8, %v6924_v24  ;;  %5813 = vmatpush3.bf16.xpose.msk.msra.mxu0 %vm6920_vm8, %v6924_v24 }
0x1906   :  { %5759 = vmatprep.subr.bf16.mxu1 %v6478_v1  ;;  %5814 = vmatprep.subr.bf16.mxu0 %v6478_v1 }
0x1909   :  { %v6178_v44 = vpop.eup %6177 }
0x190a   :  { %1366 = vrot.lane.b32.xlu0 %v6178_v44, %s6482_s2 }
0x197c   :  { %v1367_v25 = vpop.permute.xlu0 %1366 }
0x197d   :  { %v1369_v26 = vmul.f32 %v6176_v10, %v1367_v25  ;;  %v220_v10 = vld [vmem:[#allocation13 + $0x18] sm:$0xff]  ;;  %v7010_v25 = vld [vmem:[#allocation15] ss:$0 sm:$0xff] }
0x197e   :  { %v6983_v11 = vpack.c.bf16 %v220_v10, %v219_v4 }
0x197f   :  { %1371 = vrot.lane.b32.xlu0 %v1369_v26, %s6483_s21 }
0x19f1   :  { %v6936_v27 = vpop.permute.xlu0 %1371 }
0x19f2   :  { %5138 = vmatmul.mubr.msk.f32.vlgmr.msra.gmra.mrb[12].mxu1 %vm326_vm3, %v6936_v27 }
0x19f3   :  { %5761 = vmatpush3.bf16.msra.mxu1 %v6924_v24  ;;  %5144 = vmatprep.mubr.msk.f32.mxu1 %vm6479_vm0, %v6480_v20 }
0x19f4   :  { %5762 = vmatprep.subr.bf16.mxu1 %v6478_v1 }
0x1ac5   :  { %v1451_v15 = vpop.f32.mrb[12].mxu1 }
0x1ac6   :  { %v1455_v34 = vsel %vm6946_vm9, %v1451_v15, -inf  ;;  %v5139_v37 = vpop.f32.mrb[13].mxu1 }
0x1ac7   :  { %v1457_v39 = vsel %vm1456_vm10, %v1455_v34, -inf  ;;  %v7021_v37 = vcvt.s32.f32 %v6724_v36 }
0x1ac8   :  { %1458 = vmax.xlane.f32.xlu1 %v1457_v39 }
0x1b55   :  { %v1459_v40 = vpop.xlane.xlu1 %1458 }
0x1b56   :  { %v1460_v41 = vsub.f32 %v1455_v34, %v1459_v40 }
0x1b58   :  { %v1461_v43 = vmul.f32 1.442695, %v1460_v41 }
0x1b5a   :  { %6179 = vpow2.f32 %v1461_v43 }
0x1b64   :  { %v6180_v45 = vpop.eup %6179 }
0x1b65   :  { %v1463_v35 = vsel %vm1456_vm10, %v6180_v45, 0.0 }
0x1b66   :  { %1464 = vadd.xlane.f32.xlu0 %v1463_v35 }
0x1bf3   :  { %v1465_v48 = vpop.xlane.xlu0 %1464 }
0x1bf4   :  { %6181 = vrcp.f32 %v1465_v48 }
0x1bfe   :  { %v6182_v52 = vpop.eup %6181 }
0x1bff   :  { %v1467_v55 = vmul.f32 %v6182_v52, %v6180_v45 }
0x1c01   :  { %5145 = vmatmul.mubr.msk.f32.vlgmr.msra.gmra.mrb[14].mxu1 %vm1470_vm11, %v1467_v55 }
0x1c02   :  { %5764 = vmatpush3.bf16.msra.mxu1 %v6954_v54  ;;  %5155 = vmatprep.mubr.msk.f32.mxu1 %vm6479_vm0, %v6480_v20 }
0x1c03   :  { %5765 = vmatprep.subr.bf16.mxu1 %v6478_v1 }
0x1c06   :  { %5767 = vmatpush3.bf16.msra.mxu1 %v6958_v60 }
0x1c07   :  { %5768 = vmatprep.subr.bf16.mxu1 %v6478_v1 }
0x1cd4   :  { %v1540_v3 = vpop.f32.mrb[14].mxu1 }
0x1cd5   :  { %v5146_v5 = vpop.f32.mrb[15].mxu1  ;;  %5156 = vmatmul.mubr.msk.f32.vlgmr.msra.gmra.mrb[16].mxu1 %vm326_vm3, %v1540_v3 }
0x1cd6   :  { %5770 = vmatpush3.bf16.msra.mxu1 %v6965_v63  ;;  %5166 = vmatprep.mubr.msk.f32.mxu1 %vm6479_vm0, %v6480_v20 }
0x1cd7   :  { %5771 = vmatprep.subr.bf16.mxu1 %v6478_v1 }
0x1cda   :  { %5773 = vmatpush3.bf16.msra.mxu1 %v6969_v6 }
0x1cdb   :  { %5774 = vmatprep.subr.bf16.mxu1 %v6478_v1 }
0x1cdd   :  { %5167 = vmatmul.mubr.msk.f32.vlgmr.msra.gmra.mrb[18].mxu1 %vm326_vm3, %v6936_v27 }
0x1cde   :  { %5177 = vmatprep.mubr.msk.f32.mxu1 %vm6479_vm0, %v6480_v20  ;;  %5776 = vmatpush3.bf16.msra.mxu1 %v6980_v9 }
0x1cdf   :  { %5777 = vmatprep.subr.bf16.mxu1 %v6478_v1 }
0x1ce2   :  { %5779 = vmatpush3.bf16.msra.mxu1 %v6983_v11 }
0x1ce3   :  { %5780 = vmatprep.subr.bf16.mxu1 %v6478_v1 }
0x1da8   :  { %v1613_v12 = vpop.f32.mrb[16].mxu1 }
0x1da9   :  { %v5157_v13 = vpop.f32.mrb[17].mxu1 }
0x1db0   :  { %v1683_v16 = vpop.f32.mrb[18].mxu1 }
0x1db1   :  { %v1684_v18 = vadd.f32 %v1683_v16, %v1613_v12  ;;  %v5168_v19 = vpop.f32.mrb[19].mxu1 }
0x1db3   :  { %v1687_v22 = vadd.f32 %v6988_v14, %v1684_v18 }
0x1db5   :  { %6183 = vtanh.f32 %v1687_v22 }
0x1dbf   :  { %v6184_v44 = vpop.eup %6183 }
0x1dc0   :  { %5178 = vmatmul.mubr.msk.f32.vlgmr.msra.gmra.mrb[20].mxu1 %vm326_vm3, %v6184_v44 }
0x1dc1   :  { %5782 = vmatpush3.bf16.msra.mxu1 %v6843_v29  ;;  %5212 = vmatprep.mubr.msk.f32.mxu1 %vm6479_vm0, %v6480_v20 }
0x1dc2   :  { %5783 = vmatprep.subr.bf16.mxu1 %v6478_v1 }
0x1dc5   :  { %5785 = vmatpush3.bf16.msra.mxu1 %v6846_v31 }
0x1dc6   :  { %5786 = vmatprep.subr.bf16.mxu1 %v6478_v1 }
0x1dc9   :  { %5788 = vmatpush3.bf16.msra.mxu1 %v6850_v33 }
0x1dca   :  { %5789 = vmatprep.subr.bf16.mxu1 %v6478_v1 }
0x1dcd   :  { %5791 = vmatpush3.bf16.msra.mxu1 %v6855_v21 }
0x1dce   :  { %5792 = vmatprep.subr.bf16.mxu1 %v6478_v1 }
0x1dd1   :  { %5794 = vmatpush3.bf16.msra.mxu1 %v6859_v42 }
0x1dd2   :  { %5795 = vmatprep.subr.bf16.mxu1 %v6478_v1 }
0x1dd5   :  { %5797 = vmatpush3.bf16.msra.mxu1 %v6863_v47 }
0x1dd6   :  { %5798 = vmatprep.subr.bf16.mxu1 %v6478_v1 }
0x1dd9   :  { %5800 = vmatpush3.bf16.msra.mxu1 %v6867_v50 }
0x1dda   :  { %5801 = vmatprep.subr.bf16.mxu1 %v6478_v1 }
0x1ddd   :  { %5803 = vmatpush3.bf16.msra.mxu1 %v6871_v53 }
0x1dde   :  { %5804 = vmatprep.subr.bf16.mxu1 %v6478_v1 }
0x1e93   :  { %v1758_v26 = vpop.f32.mrb[20].mxu1 }
0x1e94   :  { %v1759_v28 = vadd.f32 %v7010_v25, %v1758_v26  ;;  %v5179_v30 = vpop.f32.mrb[21].mxu1 }
0x1e96   :  { %1762 = vst [vmem:[%s7436_s12] sm:$0x3] %v1759_v28  ;;  %v1764_v15 = vsel %vm1763_vm12, %v1759_v28, -inf }
0x1e97   :  { %v1765_v34 = vsel %vm1169_vm4, %v1764_v15, -inf }
0x1e98   :  { %1766 = vmax.xlane.f32.xlu0 %v1765_v34 }
0x1f25   :  { %v1767_v39 = vpop.xlane.xlu0 %1766 }
0x1f26   :  { %vm1768_vm13 = vcmp.eq.f32.partialorder %v1764_v15, %v1767_v39 }
0x1f27   :  { %v1770_v40 = vsel %vm1768_vm13, %v7021_v37, 128.0 }
0x1f28   :  { %v1771_v41 = vsel %vm1169_vm4, %v1770_v40, inf }
0x1f29   :  { %1772 = vmin.xlane.f32.xlu1 %v1771_v41 }
0x1fb6   :  { %v1773_v43 = vpop.xlane.xlu1 %1772 }
0x1fb7   :  { %v6073_v45 = vtrunc.f32 %v1773_v43 }
0x1fb9   :  { %v6074_v35 = vcvt.f32.s32 %v6073_v45 }
0x1fbb   :  { %vm1775_vm14 = vcmp.eq.s32.totalorder %v6724_v36, %v6074_v35 }
0x1fbc   :  { %5213 = vmatmul.mubr.msk.f32.vlgmr.msra.gmra.mrb[22].mxu1 %vm1775_vm14, %v6481_v38 }
0x1fbd   :  { %5806 = vmatpush3.bf16.msra.mxu1 %v6882_v56  ;;  %5223 = vmatprep.mubr.msk.f32.mxu1 %vm6479_vm0, %v6480_v20 }
0x1fbe   :  { %5807 = vmatprep.subr.bf16.mxu1 %v6478_v1 }
0x1fc1   :  { %5809 = vmatpush3.bf16.msra.mxu1 %v6893_v59 }
0x1fc2   :  { %5865 = vmatprep.subr.bf16.mxu1 %v6478_v1 }
0x1fc4   :  { %5224 = vmatmul.mubr.msk.f32.vlgmr.msra.gmra.mrb[22].mxu1 %vm326_vm3, %v6936_v27 }
0x1fc5   :  { %5323 = vmatprep.mubr.msk.f32.mxu1 %vm6479_vm0, %v6480_v20 }
0x1fca   :  { %5868 = vmatpush3.bf16.xpose.msk.msra.mxu1 %vm6920_vm8, %v6924_v24 }
0x1fcb   :  { %5869 = vmatprep.subr.bf16.mxu1 %v6478_v1 }
0x2097   :  { %v1914_v48 = vpop.f32.mrb[22].mxu1 }
0x2098   :  { %v6056_v49 = vadd.f32 %v6908_v2, %v1914_v48  ;;  %v5225_v51 = vpop.f32.mrb[23].mxu1 }
0x209a   :  { %6185 = vtanh.f32 %v6056_v49  ;;  %v4596_v55 = vmul.f32 -1.442695, %v6056_v49 }
0x209c   :  { %6187 = vpow2.f32 %v4596_v55 }
0x20a4   :  { %v6186_v52 = vpop.eup %6185 }
0x20a5   :  { %1928 = vrot.lane.b32.xlu0 %v6186_v52, %s6482_s2 }
0x20a6   :  { %v6188_v27 = vpop.eup %6187 }
0x20a7   :  { %v1922_v57 = vadd.f32 1.0, %v6188_v27 }
0x20a9   :  { %6189 = vrcp.f32 %v1922_v57 }
0x20b3   :  { %v6190_v58 = vpop.eup %6189 }
0x20b4   :  { %v1926_v46 = vmul.f32 %v6190_v58, %v6915_v17 }
0x2117   :  { %v1929_v61 = vpop.permute.xlu0 %1928 }
0x2118   :  { %v1931_v62 = vmul.f32 %v6190_v58, %v1929_v61 }
0x211a   :  { %1933 = vrot.lane.b32.xlu1 %v1931_v62, %s6483_s21 }
0x218c   :  { %v1934_v0 = vpop.permute.xlu1 %1933 }
0x218d   :  { %v7045_v3 = vadd.f32 %v1934_v0, %v1926_v46 }
0x218f   :  { %6191 = vtanh.f32 %v7045_v3 }
0x2199   :  { %v6192_v5 = vpop.eup %6191 }
0x219a   :  { %1939 = vrot.lane.b32.xlu1 %v6192_v5, %s6482_s2 }
0x220c   :  { %v1940_v8 = vpop.permute.xlu1 %1939 }
0x220d   :  { %v1942_v7 = vmul.f32 %v6190_v58, %v1940_v8 }
0x220f   :  { %1944 = vrot.lane.b32.xlu0 %v1942_v7, %s6483_s21 }
0x2281   :  { %v7050_v4 = vpop.permute.xlu0 %1944 }
0x2282   :  { %5231 = vmatmul.mubr.msk.f32.vlgmr.msra.gmra.mrb[8].mxu0 %vm326_vm3, %v7050_v4 }
0x2283   :  { %5816 = vmatpush3.bf16.msra.mxu0 %v6924_v24  ;;  %5237 = vmatprep.mubr.msk.f32.mxu0 %vm6479_vm0, %v6480_v20 }
0x2284   :  { %5817 = vmatprep.subr.bf16.mxu0 %v6478_v1 }
0x2355   :  { %v2014_v17 = vpop.f32.mrb[8].mxu0 }
0x2356   :  { %v2018_v10 = vsel %vm6946_vm9, %v2014_v17, -inf  ;;  %v5232_v12 = vpop.f32.mrb[9].mxu0 }
0x2357   :  { %v2019_v13 = vsel %vm1456_vm10, %v2018_v10, -inf }
0x2358   :  { %2020 = vmax.xlane.f32.xlu1 %v2019_v13 }
0x23e5   :  { %v2021_v16 = vpop.xlane.xlu1 %2020 }
0x23e6   :  { %v2022_v18 = vsub.f32 %v2018_v10, %v2021_v16 }
0x23e8   :  { %v2023_v19 = vmul.f32 1.442695, %v2022_v18 }
0x23ea   :  { %6193 = vpow2.f32 %v2023_v19 }
0x23f4   :  { %v6194_v22 = vpop.eup %6193 }
0x23f5   :  { %v2025_v44 = vsel %vm1456_vm10, %v6194_v22, 0.0 }
0x23f6   :  { %2026 = vadd.xlane.f32.xlu0 %v2025_v44 }
0x2483   :  { %v2027_v26 = vpop.xlane.xlu0 %2026 }
0x2484   :  { %6195 = vrcp.f32 %v2027_v26 }
0x248e   :  { %v6196_v28 = vpop.eup %6195 }
0x248f   :  { %v2029_v30 = vmul.f32 %v6196_v28, %v6194_v22 }
0x2491   :  { %5238 = vmatmul.mubr.msk.f32.vlgmr.msra.gmra.mrb[10].mxu0 %vm1470_vm11, %v2029_v30 }
0x2492   :  { %5819 = vmatpush3.bf16.msra.mxu0 %v6954_v54  ;;  %5248 = vmatprep.mubr.msk.f32.mxu0 %vm6479_vm0, %v6480_v20 }
0x2493   :  { %5820 = vmatprep.subr.bf16.mxu0 %v6478_v1 }
0x2496   :  { %5822 = vmatpush3.bf16.msra.mxu0 %v6958_v60 }
0x2497   :  { %5823 = vmatprep.subr.bf16.mxu0 %v6478_v1 }
0x2564   :  { %v2099_v15 = vpop.f32.mrb[10].mxu0 }
0x2565   :  { %v5239_v34 = vpop.f32.mrb[11].mxu0  ;;  %5249 = vmatmul.mubr.msk.f32.vlgmr.msra.gmra.mrb[12].mxu0 %vm326_vm3, %v2099_v15 }
0x2566   :  { %5825 = vmatpush3.bf16.msra.mxu0 %v6965_v63  ;;  %5259 = vmatprep.mubr.msk.f32.mxu0 %vm6479_vm0, %v6480_v20 }
0x2567   :  { %5826 = vmatprep.subr.bf16.mxu0 %v6478_v1 }
0x256a   :  { %5828 = vmatpush3.bf16.msra.mxu0 %v6969_v6 }
0x256b   :  { %5829 = vmatprep.subr.bf16.mxu0 %v6478_v1 }
0x256d   :  { %5260 = vmatmul.mubr.msk.f32.vlgmr.msra.gmra.mrb[14].mxu0 %vm326_vm3, %v7050_v4 }
0x256e   :  { %5831 = vmatpush3.bf16.msra.mxu0 %v6980_v9  ;;  %5270 = vmatprep.mubr.msk.f32.mxu0 %vm6479_vm0, %v6480_v20 }
0x256f   :  { %5832 = vmatprep.subr.bf16.mxu0 %v6478_v1 }
0x2572   :  { %5834 = vmatpush3.bf16.msra.mxu0 %v6983_v11 }
0x2573   :  { %5835 = vmatprep.subr.bf16.mxu0 %v6478_v1 }
0x2638   :  { %v2172_v39 = vpop.f32.mrb[12].mxu0 }
0x2639   :  { %v5250_v40 = vpop.f32.mrb[13].mxu0 }
0x2640   :  { %v2242_v41 = vpop.f32.mrb[14].mxu0 }
0x2641   :  { %v2243_v43 = vadd.f32 %v2242_v41, %v2172_v39  ;;  %v5261_v45 = vpop.f32.mrb[15].mxu0 }
0x2643   :  { %v2246_v35 = vadd.f32 %v6988_v14, %v2243_v43 }
0x2645   :  { %6197 = vtanh.f32 %v2246_v35 }
0x264f   :  { %v6198_v48 = vpop.eup %6197 }
0x2650   :  { %5271 = vmatmul.mubr.msk.f32.vlgmr.msra.gmra.mrb[16].mxu0 %vm326_vm3, %v6198_v48 }
0x2651   :  { %5837 = vmatpush3.bf16.msra.mxu0 %v6843_v29  ;;  %5305 = vmatprep.mubr.msk.f32.mxu0 %vm6479_vm0, %v6480_v20 }
0x2652   :  { %5838 = vmatprep.subr.bf16.mxu0 %v6478_v1 }
0x2655   :  { %5840 = vmatpush3.bf16.msra.mxu0 %v6846_v31 }
0x2656   :  { %5841 = vmatprep.subr.bf16.mxu0 %v6478_v1 }
0x2659   :  { %5843 = vmatpush3.bf16.msra.mxu0 %v6850_v33 }
0x265a   :  { %5844 = vmatprep.subr.bf16.mxu0 %v6478_v1 }
0x265d   :  { %5846 = vmatpush3.bf16.msra.mxu0 %v6855_v21 }
0x265e   :  { %5847 = vmatprep.subr.bf16.mxu0 %v6478_v1 }
0x2661   :  { %5849 = vmatpush3.bf16.msra.mxu0 %v6859_v42 }
0x2662   :  { %5850 = vmatprep.subr.bf16.mxu0 %v6478_v1 }
0x2665   :  { %5852 = vmatpush3.bf16.msra.mxu0 %v6863_v47 }
0x2666   :  { %5853 = vmatprep.subr.bf16.mxu0 %v6478_v1 }
0x2669   :  { %5855 = vmatpush3.bf16.msra.mxu0 %v6867_v50 }
0x266a   :  { %5856 = vmatprep.subr.bf16.mxu0 %v6478_v1 }
0x266d   :  { %5858 = vmatpush3.bf16.msra.mxu0 %v6871_v53 }
0x266e   :  { %5859 = vmatprep.subr.bf16.mxu0 %v6478_v1 }
0x2723   :  { %v2317_v49 = vpop.f32.mrb[16].mxu0 }
0x2724   :  { %v2318_v51 = vadd.f32 %v7010_v25, %v2317_v49  ;;  %v5272_v52 = vpop.f32.mrb[17].mxu0 }
0x2726   :  { %2321 = vst [vmem:[%s7436_s12 + $0x2] sm:$0x3] %v2318_v51  ;;  %v2322_v55 = vsel %vm1763_vm12, %v2318_v51, -inf }
0x2727   :  { %v2323_v27 = vsel %vm1169_vm4, %v2322_v55, -inf }
0x2728   :  { %2324 = vmax.xlane.f32.xlu0 %v2323_v27 }
0x27b5   :  { %v2325_v57 = vpop.xlane.xlu0 %2324 }
0x27b6   :  { %vm2326_vm15 = vcmp.eq.f32.partialorder %v2322_v55, %v2325_v57 }
0x27b7   :  { %v2327_v58 = vsel %vm2326_vm15, %v7021_v37, 128.0 }
0x27b8   :  { %v2328_v61 = vsel %vm1169_vm4, %v2327_v58, inf }
0x27b9   :  { %2329 = vmin.xlane.f32.xlu1 %v2328_v61 }
0x2846   :  { %v2330_v62 = vpop.xlane.xlu1 %2329 }
0x2847   :  { %v6075_v46 = vtrunc.f32 %v2330_v62 }
0x2849   :  { %v6076_v0 = vcvt.f32.s32 %v6075_v46 }
0x284b   :  { %vm2332_vm1 = vcmp.eq.s32.totalorder %v6724_v36, %v6076_v0 }
0x284c   :  { %5306 = vmatmul.mubr.msk.f32.vlgmr.msra.gmra.mrb[18].mxu0 %vm2332_vm1, %v6481_v38 }
0x284d   :  { %5861 = vmatpush3.bf16.msra.mxu0 %v6882_v56  ;;  %5316 = vmatprep.mubr.msk.f32.mxu0 %vm6479_vm0, %v6480_v20 }
0x284e   :  { %5862 = vmatprep.subr.bf16.mxu0 %v6478_v1 }
0x2851   :  { %5864 = vmatpush3.bf16.msra.mxu0 %v6893_v59 }
0x2852   :  { %5920 = vmatprep.subr.bf16.mxu0 %v6478_v1 }
0x2854   :  { %5317 = vmatmul.mubr.msk.f32.vlgmr.msra.gmra.mrb[18].mxu0 %vm326_vm3, %v7050_v4 }
0x2855   :  { %5416 = vmatprep.mubr.msk.f32.mxu0 %vm6479_vm0, %v6480_v20 }
0x285a   :  { %5923 = vmatpush3.bf16.xpose.msk.msra.mxu0 %vm6920_vm8, %v6924_v24 }
0x285b   :  { %5924 = vmatprep.subr.bf16.mxu0 %v6478_v1 }
0x2927   :  { %v2471_v5 = vpop.f32.mrb[18].mxu0 }
0x2928   :  { %v6057_v8 = vadd.f32 %v6908_v2, %v2471_v5  ;;  %v5318_v7 = vpop.f32.mrb[19].mxu0 }
0x292a   :  { %6199 = vtanh.f32 %v6057_v8  ;;  %v4607_v10 = vmul.f32 -1.442695, %v6057_v8 }
0x292c   :  { %6201 = vpow2.f32 %v4607_v10 }
0x2934   :  { %v6200_v17 = vpop.eup %6199 }
0x2935   :  { %2485 = vrot.lane.b32.xlu0 %v6200_v17, %s6482_s2 }
0x2936   :  { %v6202_v4 = vpop.eup %6201 }
0x2937   :  { %v2479_v12 = vadd.f32 1.0, %v6202_v4 }
0x2939   :  { %6203 = vrcp.f32 %v2479_v12 }
0x2943   :  { %v6204_v13 = vpop.eup %6203 }
0x2944   :  { %v2483_v19 = vmul.f32 %v6204_v13, %v7045_v3 }
0x29a7   :  { %v2486_v16 = vpop.permute.xlu0 %2485 }
0x29a8   :  { %v2488_v18 = vmul.f32 %v6204_v13, %v2486_v16 }
0x29aa   :  { %2490 = vrot.lane.b32.xlu1 %v2488_v18, %s6483_s21 }
0x2a1c   :  { %v2491_v22 = vpop.permute.xlu1 %2490 }
0x2a1d   :  { %v7133_v44 = vadd.f32 %v2491_v22, %v2483_v19 }
0x2a1f   :  { %6205 = vtanh.f32 %v7133_v44 }
0x2a29   :  { %v6206_v26 = vpop.eup %6205 }
0x2a2a   :  { %2496 = vrot.lane.b32.xlu1 %v6206_v26, %s6482_s2 }
0x2a9c   :  { %v2497_v28 = vpop.permute.xlu1 %2496 }
0x2a9d   :  { %v2499_v30 = vmul.f32 %v6204_v13, %v2497_v28 }
0x2a9f   :  { %2501 = vrot.lane.b32.xlu0 %v2499_v30, %s6483_s21 }
0x2b11   :  { %v7138_v15 = vpop.permute.xlu0 %2501 }
0x2b12   :  { %5324 = vmatmul.mubr.msk.f32.vlgmr.msra.gmra.mrb[24].mxu1 %vm326_vm3, %v7138_v15 }
0x2b13   :  { %5871 = vmatpush3.bf16.msra.mxu1 %v6924_v24  ;;  %5330 = vmatprep.mubr.msk.f32.mxu1 %vm6479_vm0, %v6480_v20 }
0x2b14   :  { %5872 = vmatprep.subr.bf16.mxu1 %v6478_v1 }
0x2be5   :  { %v2571_v3 = vpop.f32.mrb[24].mxu1 }
0x2be6   :  { %v2575_v34 = vsel %vm6946_vm9, %v2571_v3, -inf  ;;  %v5325_v39 = vpop.f32.mrb[25].mxu1 }
0x2be7   :  { %v2576_v40 = vsel %vm1456_vm10, %v2575_v34, -inf }
0x2be8   :  { %2577 = vmax.xlane.f32.xlu1 %v2576_v40 }
0x2c75   :  { %v2578_v41 = vpop.xlane.xlu1 %2577 }
0x2c76   :  { %v2579_v43 = vsub.f32 %v2575_v34, %v2578_v41 }
0x2c78   :  { %v2580_v45 = vmul.f32 1.442695, %v2579_v43 }
0x2c7a   :  { %6207 = vpow2.f32 %v2580_v45 }
0x2c84   :  { %v6208_v35 = vpop.eup %6207 }
0x2c85   :  { %v2582_v48 = vsel %vm1456_vm10, %v6208_v35, 0.0 }
0x2c86   :  { %2583 = vadd.xlane.f32.xlu0 %v2582_v48 }
0x2d13   :  { %v2584_v49 = vpop.xlane.xlu0 %2583 }
0x2d14   :  { %6209 = vrcp.f32 %v2584_v49 }
0x2d1e   :  { %v6210_v51 = vpop.eup %6209 }
0x2d1f   :  { %v2586_v52 = vmul.f32 %v6210_v51, %v6208_v35 }
0x2d21   :  { %5331 = vmatmul.mubr.msk.f32.vlgmr.msra.gmra.mrb[26].mxu1 %vm1470_vm11, %v2586_v52 }
0x2d22   :  { %5874 = vmatpush3.bf16.msra.mxu1 %v6954_v54  ;;  %5341 = vmatprep.mubr.msk.f32.mxu1 %vm6479_vm0, %v6480_v20 }
0x2d23   :  { %5875 = vmatprep.subr.bf16.mxu1 %v6478_v1 }
0x2d26   :  { %5877 = vmatpush3.bf16.msra.mxu1 %v6958_v60 }
0x2d27   :  { %5878 = vmatprep.subr.bf16.mxu1 %v6478_v1 }
0x2df4   :  { %v2656_v55 = vpop.f32.mrb[26].mxu1 }
0x2df5   :  { %v5332_v27 = vpop.f32.mrb[27].mxu1  ;;  %5342 = vmatmul.mubr.msk.f32.vlgmr.msra.gmra.mrb[28].mxu1 %vm326_vm3, %v2656_v55 }
0x2df6   :  { %5880 = vmatpush3.bf16.msra.mxu1 %v6965_v63  ;;  %5352 = vmatprep.mubr.msk.f32.mxu1 %vm6479_vm0, %v6480_v20 }
0x2df7   :  { %5881 = vmatprep.subr.bf16.mxu1 %v6478_v1 }
0x2dfa   :  { %5883 = vmatpush3.bf16.msra.mxu1 %v6969_v6 }
0x2dfb   :  { %5884 = vmatprep.subr.bf16.mxu1 %v6478_v1 }
0x2dfd   :  { %5353 = vmatmul.mubr.msk.f32.vlgmr.msra.gmra.mrb[30].mxu1 %vm326_vm3, %v7138_v15 }
0x2dfe   :  { %5886 = vmatpush3.bf16.msra.mxu1 %v6980_v9  ;;  %5363 = vmatprep.mubr.msk.f32.mxu1 %vm6479_vm0, %v6480_v20 }
0x2dff   :  { %5887 = vmatprep.subr.bf16.mxu1 %v6478_v1 }
0x2e02   :  { %5889 = vmatpush3.bf16.msra.mxu1 %v6983_v11 }
0x2e03   :  { %5890 = vmatprep.subr.bf16.mxu1 %v6478_v1 }
0x2ec8   :  { %v2729_v57 = vpop.f32.mrb[28].mxu1 }
0x2ec9   :  { %v5343_v58 = vpop.f32.mrb[29].mxu1 }
0x2ed0   :  { %v2799_v61 = vpop.f32.mrb[30].mxu1 }
0x2ed1   :  { %v2800_v62 = vadd.f32 %v2799_v61, %v2729_v57  ;;  %v5354_v46 = vpop.f32.mrb[31].mxu1 }
0x2ed3   :  { %v2803_v0 = vadd.f32 %v6988_v14, %v2800_v62 }
0x2ed5   :  { %6211 = vtanh.f32 %v2803_v0 }
0x2edf   :  { %v6212_v5 = vpop.eup %6211 }
0x2ee0   :  { %5364 = vmatmul.mubr.msk.f32.vlgmr.msra.gmra.mrb[32].mxu1 %vm326_vm3, %v6212_v5 }
0x2ee1   :  { %5892 = vmatpush3.bf16.msra.mxu1 %v6843_v29  ;;  %5398 = vmatprep.mubr.msk.f32.mxu1 %vm6479_vm0, %v6480_v20 }
0x2ee2   :  { %5893 = vmatprep.subr.bf16.mxu1 %v6478_v1 }
0x2ee5   :  { %5895 = vmatpush3.bf16.msra.mxu1 %v6846_v31 }
0x2ee6   :  { %5896 = vmatprep.subr.bf16.mxu1 %v6478_v1 }
0x2ee9   :  { %5898 = vmatpush3.bf16.msra.mxu1 %v6850_v33 }
0x2eea   :  { %5899 = vmatprep.subr.bf16.mxu1 %v6478_v1 }
0x2eed   :  { %5901 = vmatpush3.bf16.msra.mxu1 %v6855_v21 }
0x2eee   :  { %5902 = vmatprep.subr.bf16.mxu1 %v6478_v1 }
0x2ef1   :  { %5904 = vmatpush3.bf16.msra.mxu1 %v6859_v42 }
0x2ef2   :  { %5905 = vmatprep.subr.bf16.mxu1 %v6478_v1 }
0x2ef5   :  { %5907 = vmatpush3.bf16.msra.mxu1 %v6863_v47 }
0x2ef6   :  { %5908 = vmatprep.subr.bf16.mxu1 %v6478_v1 }
0x2ef9   :  { %5910 = vmatpush3.bf16.msra.mxu1 %v6867_v50 }
0x2efa   :  { %5911 = vmatprep.subr.bf16.mxu1 %v6478_v1 }
0x2efd   :  { %5913 = vmatpush3.bf16.msra.mxu1 %v6871_v53 }
0x2efe   :  { %5914 = vmatprep.subr.bf16.mxu1 %v6478_v1 }
0x2fb3   :  { %v2874_v8 = vpop.f32.mrb[32].mxu1 }
0x2fb4   :  { %v2875_v7 = vadd.f32 %v7010_v25, %v2874_v8  ;;  %v5365_v17 = vpop.f32.mrb[33].mxu1 }
0x2fb6   :  { %2878 = vst [vmem:[%s7436_s12 + $0x4] sm:$0x3] %v2875_v7  ;;  %v2879_v10 = vsel %vm1763_vm12, %v2875_v7, -inf }
0x2fb7   :  { %v2880_v4 = vsel %vm1169_vm4, %v2879_v10, -inf }
0x2fb8   :  { %2881 = vmax.xlane.f32.xlu0 %v2880_v4 }
0x3045   :  { %v2882_v12 = vpop.xlane.xlu0 %2881 }
0x3046   :  { %vm2883_vm2 = vcmp.eq.f32.partialorder %v2879_v10, %v2882_v12 }
0x3047   :  { %v2884_v13 = vsel %vm2883_vm2, %v7021_v37, 128.0 }
0x3048   :  { %v2885_v16 = vsel %vm1169_vm4, %v2884_v13, inf }
0x3049   :  { %2886 = vmin.xlane.f32.xlu1 %v2885_v16 }
0x30d6   :  { %v2887_v18 = vpop.xlane.xlu1 %2886 }
0x30d7   :  { %v6077_v19 = vtrunc.f32 %v2887_v18 }
0x30d9   :  { %v6078_v22 = vcvt.f32.s32 %v6077_v19 }
0x30db   :  { %vm2889_vm5 = vcmp.eq.s32.totalorder %v6724_v36, %v6078_v22 }
0x30dc   :  { %5399 = vmatmul.mubr.msk.f32.vlgmr.msra.gmra.mrb[34].mxu1 %vm2889_vm5, %v6481_v38 }
0x30dd   :  { %5916 = vmatpush3.bf16.msra.mxu1 %v6882_v56  ;;  %5409 = vmatprep.mubr.msk.f32.mxu1 %vm6479_vm0, %v6480_v20 }
0x30de   :  { %5917 = vmatprep.subr.bf16.mxu1 %v6478_v1 }
0x30e1   :  { %5919 = vmatpush3.bf16.msra.mxu1 %v6893_v59 }
0x30e2   :  { %5975 = vmatprep.subr.bf16.mxu1 %v6478_v1 }
0x30e4   :  { %5410 = vmatmul.mubr.msk.f32.vlgmr.msra.gmra.mrb[34].mxu1 %vm326_vm3, %v7138_v15 }
0x30e5   :  { %5509 = vmatprep.mubr.msk.f32.mxu1 %vm6479_vm0, %v6480_v20 }
0x30ea   :  { %5978 = vmatpush3.bf16.xpose.msk.msra.mxu1 %vm6920_vm8, %v6924_v24 }
0x30eb   :  { %5979 = vmatprep.subr.bf16.mxu1 %v6478_v1 }
0x31b7   :  { %v3028_v26 = vpop.f32.mrb[34].mxu1 }
0x31b8   :  { %v6058_v28 = vadd.f32 %v6908_v2, %v3028_v26  ;;  %v5411_v30 = vpop.f32.mrb[35].mxu1 }
0x31ba   :  { %6213 = vtanh.f32 %v6058_v28  ;;  %v4618_v34 = vmul.f32 -1.442695, %v6058_v28 }
0x31bc   :  { %6215 = vpow2.f32 %v4618_v34 }
0x31c4   :  { %v6214_v3 = vpop.eup %6213 }
0x31c5   :  { %3042 = vrot.lane.b32.xlu0 %v6214_v3, %s6482_s2 }
0x31c6   :  { %v6216_v15 = vpop.eup %6215 }
0x31c7   :  { %v3036_v39 = vadd.f32 1.0, %v6216_v15 }
0x31c9   :  { %6217 = vrcp.f32 %v3036_v39 }
0x31d3   :  { %v6218_v40 = vpop.eup %6217 }
0x31d4   :  { %v3040_v45 = vmul.f32 %v6218_v40, %v7133_v44 }
0x3237   :  { %v3043_v41 = vpop.permute.xlu0 %3042 }
0x3238   :  { %v3045_v43 = vmul.f32 %v6218_v40, %v3043_v41 }
0x323a   :  { %3047 = vrot.lane.b32.xlu1 %v3045_v43, %s6483_s21 }
0x32ac   :  { %v3048_v35 = vpop.permute.xlu1 %3047 }
0x32ad   :  { %v7221_v48 = vadd.f32 %v3048_v35, %v3040_v45 }
0x32af   :  { %6219 = vtanh.f32 %v7221_v48 }
0x32b9   :  { %v6220_v49 = vpop.eup %6219 }
0x32ba   :  { %3053 = vrot.lane.b32.xlu1 %v6220_v49, %s6482_s2 }
0x332c   :  { %v3054_v51 = vpop.permute.xlu1 %3053 }
0x332d   :  { %v3056_v52 = vmul.f32 %v6218_v40, %v3054_v51 }
0x332f   :  { %3058 = vrot.lane.b32.xlu0 %v3056_v52, %s6483_s21 }
0x33a1   :  { %v7226_v55 = vpop.permute.xlu0 %3058 }
0x33a2   :  { %5417 = vmatmul.mubr.msk.f32.vlgmr.msra.gmra.mrb[20].mxu0 %vm326_vm3, %v7226_v55 }
0x33a3   :  { %5926 = vmatpush3.bf16.msra.mxu0 %v6924_v24  ;;  %5423 = vmatprep.mubr.msk.f32.mxu0 %vm6479_vm0, %v6480_v20 }
0x33a4   :  { %5927 = vmatprep.subr.bf16.mxu0 %v6478_v1 }
0x3475   :  { %v3128_v44 = vpop.f32.mrb[20].mxu0 }
0x3476   :  { %v3132_v27 = vsel %vm6946_vm9, %v3128_v44, -inf  ;;  %v5418_v57 = vpop.f32.mrb[21].mxu0 }
0x3477   :  { %v3133_v58 = vsel %vm1456_vm10, %v3132_v27, -inf }
0x3478   :  { %3134 = vmax.xlane.f32.xlu1 %v3133_v58 }
0x3505   :  { %v3135_v61 = vpop.xlane.xlu1 %3134 }
0x3506   :  { %v3136_v62 = vsub.f32 %v3132_v27, %v3135_v61 }
0x3508   :  { %v3137_v46 = vmul.f32 1.442695, %v3136_v62 }
0x350a   :  { %6221 = vpow2.f32 %v3137_v46 }
0x3514   :  { %v6222_v0 = vpop.eup %6221 }
0x3515   :  { %v3139_v5 = vsel %vm1456_vm10, %v6222_v0, 0.0 }
0x3516   :  { %3140 = vadd.xlane.f32.xlu0 %v3139_v5 }
0x35a3   :  { %v3141_v8 = vpop.xlane.xlu0 %3140 }
0x35a4   :  { %6223 = vrcp.f32 %v3141_v8 }
0x35ae   :  { %v6224_v7 = vpop.eup %6223 }
0x35af   :  { %v3143_v17 = vmul.f32 %v6224_v7, %v6222_v0 }
0x35b1   :  { %5424 = vmatmul.mubr.msk.f32.vlgmr.msra.gmra.mrb[22].mxu0 %vm1470_vm11, %v3143_v17 }
0x35b2   :  { %5929 = vmatpush3.bf16.msra.mxu0 %v6954_v54  ;;  %5434 = vmatprep.mubr.msk.f32.mxu0 %vm6479_vm0, %v6480_v20 }
0x35b3   :  { %5930 = vmatprep.subr.bf16.mxu0 %v6478_v1 }
0x35b6   :  { %5932 = vmatpush3.bf16.msra.mxu0 %v6958_v60 }
0x35b7   :  { %5933 = vmatprep.subr.bf16.mxu0 %v6478_v1 }
0x3684   :  { %v3213_v10 = vpop.f32.mrb[22].mxu0 }
0x3685   :  { %v5425_v4 = vpop.f32.mrb[23].mxu0  ;;  %5435 = vmatmul.mubr.msk.f32.vlgmr.msra.gmra.mrb[24].mxu0 %vm326_vm3, %v3213_v10 }
0x3686   :  { %5935 = vmatpush3.bf16.msra.mxu0 %v6965_v63  ;;  %5445 = vmatprep.mubr.msk.f32.mxu0 %vm6479_vm0, %v6480_v20 }
0x3687   :  { %5936 = vmatprep.subr.bf16.mxu0 %v6478_v1 }
0x368a   :  { %5938 = vmatpush3.bf16.msra.mxu0 %v6969_v6 }
0x368b   :  { %5939 = vmatprep.subr.bf16.mxu0 %v6478_v1 }
0x368d   :  { %5446 = vmatmul.mubr.msk.f32.vlgmr.msra.gmra.mrb[26].mxu0 %vm326_vm3, %v7226_v55 }
0x368e   :  { %5941 = vmatpush3.bf16.msra.mxu0 %v6980_v9  ;;  %5456 = vmatprep.mubr.msk.f32.mxu0 %vm6479_vm0, %v6480_v20 }
0x368f   :  { %5942 = vmatprep.subr.bf16.mxu0 %v6478_v1 }
0x3692   :  { %5944 = vmatpush3.bf16.msra.mxu0 %v6983_v11 }
0x3693   :  { %5945 = vmatprep.subr.bf16.mxu0 %v6478_v1 }
0x3758   :  { %v3286_v12 = vpop.f32.mrb[24].mxu0 }
0x3759   :  { %v5436_v13 = vpop.f32.mrb[25].mxu0 }
0x3760   :  { %v3356_v16 = vpop.f32.mrb[26].mxu0 }
0x3761   :  { %v3357_v18 = vadd.f32 %v3356_v16, %v3286_v12  ;;  %v5447_v19 = vpop.f32.mrb[27].mxu0 }
0x3763   :  { %v3360_v22 = vadd.f32 %v6988_v14, %v3357_v18 }
0x3765   :  { %6225 = vtanh.f32 %v3360_v22 }
0x376f   :  { %v6226_v26 = vpop.eup %6225 }
0x3770   :  { %5457 = vmatmul.mubr.msk.f32.vlgmr.msra.gmra.mrb[28].mxu0 %vm326_vm3, %v6226_v26 }
0x3771   :  { %5947 = vmatpush3.bf16.msra.mxu0 %v6843_v29  ;;  %5491 = vmatprep.mubr.msk.f32.mxu0 %vm6479_vm0, %v6480_v20 }
0x3772   :  { %5948 = vmatprep.subr.bf16.mxu0 %v6478_v1 }
0x3775   :  { %5950 = vmatpush3.bf16.msra.mxu0 %v6846_v31 }
0x3776   :  { %5951 = vmatprep.subr.bf16.mxu0 %v6478_v1 }
0x3779   :  { %5953 = vmatpush3.bf16.msra.mxu0 %v6850_v33 }
0x377a   :  { %5954 = vmatprep.subr.bf16.mxu0 %v6478_v1 }
0x377d   :  { %5956 = vmatpush3.bf16.msra.mxu0 %v6855_v21 }
0x377e   :  { %5957 = vmatprep.subr.bf16.mxu0 %v6478_v1 }
0x3781   :  { %5959 = vmatpush3.bf16.msra.mxu0 %v6859_v42 }
0x3782   :  { %5960 = vmatprep.subr.bf16.mxu0 %v6478_v1 }
0x3785   :  { %5962 = vmatpush3.bf16.msra.mxu0 %v6863_v47 }
0x3786   :  { %5963 = vmatprep.subr.bf16.mxu0 %v6478_v1 }
0x3789   :  { %5965 = vmatpush3.bf16.msra.mxu0 %v6867_v50 }
0x378a   :  { %5966 = vmatprep.subr.bf16.mxu0 %v6478_v1 }
0x378d   :  { %5968 = vmatpush3.bf16.msra.mxu0 %v6871_v53 }
0x378e   :  { %5969 = vmatprep.subr.bf16.mxu0 %v6478_v1 }
0x3843   :  { %v3431_v28 = vpop.f32.mrb[28].mxu0 }
0x3844   :  { %v3432_v30 = vadd.f32 %v7010_v25, %v3431_v28  ;;  %v5458_v3 = vpop.f32.mrb[29].mxu0 }
0x3846   :  { %3435 = vst [vmem:[%s7436_s12 + $0x6] sm:$0x3] %v3432_v30  ;;  %v3436_v34 = vsel %vm1763_vm12, %v3432_v30, -inf }
0x3847   :  { %v3437_v15 = vsel %vm1169_vm4, %v3436_v34, -inf }
0x3848   :  { %3438 = vmax.xlane.f32.xlu0 %v3437_v15 }
0x38d5   :  { %v3439_v39 = vpop.xlane.xlu0 %3438 }
0x38d6   :  { %vm3440_vm6 = vcmp.eq.f32.partialorder %v3436_v34, %v3439_v39 }
0x38d7   :  { %v3441_v40 = vsel %vm3440_vm6, %v7021_v37, 128.0 }
0x38d8   :  { %v3442_v41 = vsel %vm1169_vm4, %v3441_v40, inf }
0x38d9   :  { %3443 = vmin.xlane.f32.xlu1 %v3442_v41 }
0x3966   :  { %v3444_v43 = vpop.xlane.xlu1 %3443 }
0x3967   :  { %v6079_v45 = vtrunc.f32 %v3444_v43 }
0x3969   :  { %v6080_v35 = vcvt.f32.s32 %v6079_v45 }
0x396b   :  { %vm3446_vm7 = vcmp.eq.s32.totalorder %v6724_v36, %v6080_v35 }
0x396c   :  { %5492 = vmatmul.mubr.msk.f32.vlgmr.msra.gmra.mrb[30].mxu0 %vm3446_vm7, %v6481_v38 }
0x396d   :  { %5971 = vmatpush3.bf16.msra.mxu0 %v6882_v56  ;;  %5502 = vmatprep.mubr.msk.f32.mxu0 %vm6479_vm0, %v6480_v20 }
0x396e   :  { %5972 = vmatprep.subr.bf16.mxu0 %v6478_v1 }
0x3971   :  { %5974 = vmatpush3.bf16.msra.mxu0 %v6893_v59 }
0x3972   :  { %6030 = vmatprep.subr.bf16.mxu0 %v6478_v1 }
0x3974   :  { %5503 = vmatmul.mubr.msk.f32.vlgmr.msra.gmra.mrb[30].mxu0 %vm326_vm3, %v7226_v55 }
0x3975   :  { %5602 = vmatprep.mubr.msk.f32.mxu0 %vm6479_vm0, %v6480_v20 }
0x397a   :  { %6033 = vmatpush3.bf16.xpose.msk.msra.mxu0 %vm6920_vm8, %v6924_v24 }
0x397b   :  { %6034 = vmatprep.subr.bf16.mxu0 %v6478_v1 }
0x3a47   :  { %v3585_v49 = vpop.f32.mrb[30].mxu0 }
0x3a48   :  { %v6059_v51 = vadd.f32 %v6908_v2, %v3585_v49  ;;  %v5504_v52 = vpop.f32.mrb[31].mxu0  ;;  %v6255_v49 = vld [vmem:[#allocation7] ss:$0 sm:$0xff] }
0x3a4a   :  { %6227 = vtanh.f32 %v6059_v51  ;;  %v4629_v27 = vmul.f32 -1.442695, %v6059_v51 }
0x3a4c   :  { %6229 = vpow2.f32 %v4629_v27 }
0x3a54   :  { %v6228_v44 = vpop.eup %6227 }
0x3a55   :  { %3599 = vrot.lane.b32.xlu0 %v6228_v44, %s6482_s2 }
0x3a56   :  { %v6230_v55 = vpop.eup %6229 }
0x3a57   :  { %v3593_v57 = vadd.f32 1.0, %v6230_v55 }
0x3a59   :  { %6231 = vrcp.f32 %v3593_v57 }
0x3a63   :  { %v6232_v58 = vpop.eup %6231 }
0x3a64   :  { %v3597_v23 = vmul.f32 %v6232_v58, %v7221_v48 }
0x3ac7   :  { %v3600_v61 = vpop.permute.xlu0 %3599 }
0x3ac8   :  { %v3602_v62 = vmul.f32 %v6232_v58, %v3600_v61 }
0x3aca   :  { %3604 = vrot.lane.b32.xlu1 %v3602_v62, %s6483_s21 }
0x3b3c   :  { %v3605_v46 = vpop.permute.xlu1 %3604 }
0x3b3d   :  { %v7309_v0 = vadd.f32 %v3605_v46, %v3597_v23 }
0x3b3f   :  { %6233 = vtanh.f32 %v7309_v0 }
0x3b49   :  { %v6234_v2 = vpop.eup %6233 }
0x3b4a   :  { %3610 = vrot.lane.b32.xlu1 %v6234_v2, %s6482_s2 }
0x3bbc   :  { %v3611_v5 = vpop.permute.xlu1 %3610 }
0x3bbd   :  { %v3613_v8 = vmul.f32 %v6232_v58, %v3611_v5 }
0x3bbf   :  { %3615 = vrot.lane.b32.xlu0 %v3613_v8, %s6483_s21 }
0x3c31   :  { %v7314_v7 = vpop.permute.xlu0 %3615 }
0x3c32   :  { %5510 = vmatmul.mubr.msk.f32.vlgmr.msra.gmra.mrb[36].mxu1 %vm326_vm3, %v7314_v7 }
0x3c33   :  { %5981 = vmatpush3.bf16.msra.mxu1 %v6924_v24  ;;  %5516 = vmatprep.mubr.msk.f32.mxu1 %vm6479_vm0, %v6480_v20 }
0x3c34   :  { %5982 = vmatprep.subr.bf16.mxu1 %v6478_v1 }
0x3d05   :  { %v3685_v48 = vpop.f32.mrb[36].mxu1 }
0x3d06   :  { %v3689_v17 = vsel %vm6946_vm9, %v3685_v48, -inf  ;;  %v5511_v10 = vpop.f32.mrb[37].mxu1 }
0x3d07   :  { %v3690_v4 = vsel %vm1456_vm10, %v3689_v17, -inf }
0x3d08   :  { %3691 = vmax.xlane.f32.xlu1 %v3690_v4 }
0x3d95   :  { %v3692_v12 = vpop.xlane.xlu1 %3691 }
0x3d96   :  { %v3693_v13 = vsub.f32 %v3689_v17, %v3692_v12 }
0x3d98   :  { %v3694_v16 = vmul.f32 1.442695, %v3693_v13 }
0x3d9a   :  { %6235 = vpow2.f32 %v3694_v16 }
0x3da4   :  { %v6236_v18 = vpop.eup %6235 }
0x3da5   :  { %v3696_v19 = vsel %vm1456_vm10, %v6236_v18, 0.0 }
0x3da6   :  { %3697 = vadd.xlane.f32.xlu0 %v3696_v19 }
0x3e33   :  { %v3698_v22 = vpop.xlane.xlu0 %3697 }
0x3e34   :  { %6237 = vrcp.f32 %v3698_v22 }
0x3e3e   :  { %v6238_v26 = vpop.eup %6237 }
0x3e3f   :  { %v3700_v28 = vmul.f32 %v6238_v26, %v6236_v18  ;;  %v6256_v26 = vld [vmem:[#allocation12] ss:$0 sm:$0xff] }
0x3e41   :  { %5517 = vmatmul.mubr.msk.f32.vlgmr.msra.gmra.mrb[38].mxu1 %vm1470_vm11, %v3700_v28 }
0x3e42   :  { %5984 = vmatpush3.bf16.msra.mxu1 %v6954_v54  ;;  %5527 = vmatprep.mubr.msk.f32.mxu1 %vm6479_vm0, %v6480_v20 }
0x3e43   :  { %5985 = vmatprep.subr.bf16.mxu1 %v6478_v1 }
0x3e46   :  { %5987 = vmatpush3.bf16.msra.mxu1 %v6958_v60 }
0x3e47   :  { %5988 = vmatprep.subr.bf16.mxu1 %v6478_v1 }
0x3f14   :  { %v3770_v30 = vpop.f32.mrb[38].mxu1 }
0x3f15   :  { %v5518_v3 = vpop.f32.mrb[39].mxu1  ;;  %5528 = vmatmul.mubr.msk.f32.vlgmr.msra.gmra.mrb[40].mxu1 %vm326_vm3, %v3770_v30 }
0x3f16   :  { %5990 = vmatpush3.bf16.msra.mxu1 %v6965_v63  ;;  %5538 = vmatprep.mubr.msk.f32.mxu1 %vm6479_vm0, %v6480_v20 }
0x3f17   :  { %5991 = vmatprep.subr.bf16.mxu1 %v6478_v1 }
0x3f1a   :  { %5993 = vmatpush3.bf16.msra.mxu1 %v6969_v6 }
0x3f1b   :  { %5994 = vmatprep.subr.bf16.mxu1 %v6478_v1 }
0x3f1d   :  { %5539 = vmatmul.mubr.msk.f32.vlgmr.msra.gmra.mrb[42].mxu1 %vm326_vm3, %v7314_v7 }
0x3f1e   :  { %5996 = vmatpush3.bf16.msra.mxu1 %v6980_v9  ;;  %5549 = vmatprep.mubr.msk.f32.mxu1 %vm6479_vm0, %v6480_v20 }
0x3f1f   :  { %5997 = vmatprep.subr.bf16.mxu1 %v6478_v1 }
0x3f22   :  { %5999 = vmatpush3.bf16.msra.mxu1 %v6983_v11 }
0x3f23   :  { %6000 = vmatprep.subr.bf16.mxu1 %v6478_v1 }
0x3fe8   :  { %v3843_v34 = vpop.f32.mrb[40].mxu1 }
0x3fe9   :  { %v5529_v15 = vpop.f32.mrb[41].mxu1 }
0x3ff0   :  { %v3913_v39 = vpop.f32.mrb[42].mxu1 }
0x3ff1   :  { %v3914_v40 = vadd.f32 %v3913_v39, %v3843_v34  ;;  %v5540_v41 = vpop.f32.mrb[43].mxu1 }
0x3ff3   :  { %v3917_v43 = vadd.f32 %v6988_v14, %v3914_v40 }
0x3ff5   :  { %6239 = vtanh.f32 %v3917_v43 }
0x3fff   :  { %v6240_v45 = vpop.eup %6239 }
0x4000   :  { %5550 = vmatmul.mubr.msk.f32.vlgmr.msra.gmra.mrb[44].mxu1 %vm326_vm3, %v6240_v45 }
0x4001   :  { %6002 = vmatpush3.bf16.msra.mxu1 %v6843_v29  ;;  %5584 = vmatprep.mubr.msk.f32.mxu1 %vm6479_vm0, %v6480_v20 }
0x4002   :  { %6003 = vmatprep.subr.bf16.mxu1 %v6478_v1 }
0x4005   :  { %6005 = vmatpush3.bf16.msra.mxu1 %v6846_v31 }
0x4006   :  { %6006 = vmatprep.subr.bf16.mxu1 %v6478_v1 }
0x4009   :  { %6008 = vmatpush3.bf16.msra.mxu1 %v6850_v33 }
0x400a   :  { %6009 = vmatprep.subr.bf16.mxu1 %v6478_v1 }
0x400d   :  { %6011 = vmatpush3.bf16.msra.mxu1 %v6855_v21 }
0x400e   :  { %6012 = vmatprep.subr.bf16.mxu1 %v6478_v1 }
0x4011   :  { %6014 = vmatpush3.bf16.msra.mxu1 %v6859_v42 }
0x4012   :  { %6015 = vmatprep.subr.bf16.mxu1 %v6478_v1 }
0x4015   :  { %6017 = vmatpush3.bf16.msra.mxu1 %v6863_v47 }
0x4016   :  { %6018 = vmatprep.subr.bf16.mxu1 %v6478_v1 }
0x4019   :  { %6020 = vmatpush3.bf16.msra.mxu1 %v6867_v50 }
0x401a   :  { %6021 = vmatprep.subr.bf16.mxu1 %v6478_v1 }
0x401d   :  { %6023 = vmatpush3.bf16.msra.mxu1 %v6871_v53 }
0x401e   :  { %6024 = vmatprep.subr.bf16.mxu1 %v6478_v1 }
0x40d3   :  { %v3988_v29 = vpop.f32.mrb[44].mxu1 }
0x40d4   :  { %v3989_v31 = vadd.f32 %v7010_v25, %v3988_v29  ;;  %v5551_v33 = vpop.f32.mrb[45].mxu1 }
0x40d6   :  { %3992 = vst [vmem:[%s7436_s12 + $0x8] sm:$0x3] %v3989_v31  ;;  %v3993_v21 = vsel %vm1763_vm12, %v3989_v31, -inf }
0x40d7   :  { %v3994_v42 = vsel %vm1169_vm4, %v3993_v21, -inf }
0x40d8   :  { %3995 = vmax.xlane.f32.xlu0 %v3994_v42 }
0x4165   :  { %v3996_v47 = vpop.xlane.xlu0 %3995 }
0x4166   :  { %vm3997_vm8 = vcmp.eq.f32.partialorder %v3993_v21, %v3996_v47 }
0x4167   :  { %v3998_v50 = vsel %vm3997_vm8, %v7021_v37, 128.0 }
0x4168   :  { %v3999_v53 = vsel %vm1169_vm4, %v3998_v50, inf }
0x4169   :  { %4000 = vmin.xlane.f32.xlu1 %v3999_v53 }
0x41f6   :  { %v4001_v14 = vpop.xlane.xlu1 %4000 }
0x41f7   :  { %v6081_v25 = vtrunc.f32 %v4001_v14 }
0x41f9   :  { %v6082_v35 = vcvt.f32.s32 %v6081_v25 }
0x41fb   :  { %vm4003_vm13 = vcmp.eq.s32.totalorder %v6724_v36, %v6082_v35 }
0x41fc   :  { %5585 = vmatmul.mubr.msk.f32.vlgmr.msra.gmra.mrb[46].mxu1 %vm4003_vm13, %v6481_v38 }
0x41fd   :  { %6026 = vmatpush3.bf16.msra.mxu1 %v6882_v56  ;;  %5595 = vmatprep.mubr.msk.f32.mxu1 %vm6479_vm0, %v6480_v20 }
0x41fe   :  { %6027 = vmatprep.subr.bf16.mxu1 %v6478_v1 }
0x4201   :  { %6029 = vmatpush3.bf16.msra.mxu1 %v6893_v59 }
0x4204   :  { %5596 = vmatmul.mubr.msk.f32.vlgmr.msra.gmra.mrb[46].mxu1 %vm326_vm3, %v7314_v7 }
0x42d7   :  { %v4142_v37 = vpop.f32.mrb[46].mxu1 }
0x42d8   :  { %v6060_v51 = vadd.f32 %v6255_v49, %v4142_v37  ;;  %v5597_v52 = vpop.f32.mrb[47].mxu1 }
0x42da   :  { %6241 = vtanh.f32 %v6060_v51  ;;  %v4640_v38 = vmul.f32 -1.442695, %v6060_v51 }
0x42dc   :  { %6243 = vpow2.f32 %v4640_v38 }
0x42e4   :  { %v6242_v36 = vpop.eup %6241 }
0x42e5   :  { %4156 = vrot.lane.b32.xlu0 %v6242_v36, %s6482_s2 }
0x42e6   :  { %v6244_v56 = vpop.eup %6243 }
0x42e7   :  { %v4150_v44 = vadd.f32 1.0, %v6244_v56 }
0x42e9   :  { %6245 = vrcp.f32 %v4150_v44 }
0x42f3   :  { %v6246_v27 = vpop.eup %6245 }
0x42f4   :  { %v4154_v59 = vmul.f32 %v6246_v27, %v7309_v0 }
0x4357   :  { %v4157_v55 = vpop.permute.xlu0 %4156 }
0x4358   :  { %v4159_v57 = vmul.f32 %v6246_v27, %v4157_v55 }
0x435a   :  { %4161 = vrot.lane.b32.xlu1 %v4159_v57, %s6483_s21 }
0x43cc   :  { %v4162_v58 = vpop.permute.xlu1 %4161 }
0x43cd   :  { %v4164_v61 = vadd.f32 %v4162_v58, %v4154_v59 }
0x43cf   :  { %6247 = vtanh.f32 %v4164_v61 }
0x43d9   :  { %v6248_v62 = vpop.eup %6247 }
0x43da   :  { %4167 = vrot.lane.b32.xlu1 %v6248_v62, %s6482_s2 }
0x444c   :  { %v4168_v23 = vpop.permute.xlu1 %4167 }
0x444d   :  { %v4170_v46 = vmul.f32 %v6246_v27, %v4168_v23 }
0x444f   :  { %4172 = vrot.lane.b32.xlu0 %v4170_v46, %s6483_s21 }
0x44c1   :  { %v4173_v2 = vpop.permute.xlu0 %4172 }
0x44c2   :  { %5603 = vmatmul.mubr.msk.f32.vlgmr.msra.gmra.mrb[32].mxu0 %vm326_vm3, %v4173_v2 }
0x44c3   :  { %6036 = vmatpush3.bf16.msra.mxu0 %v6924_v24  ;;  %5609 = vmatprep.mubr.msk.f32.mxu0 %vm6479_vm0, %v6480_v20 }
0x44c4   :  { %6037 = vmatprep.subr.bf16.mxu0 %v6478_v1 }
0x4595   :  { %v4242_v0 = vpop.f32.mrb[32].mxu0 }
0x4596   :  { %v4246_v5 = vsel %vm6946_vm9, %v4242_v0, -inf  ;;  %v5604_v8 = vpop.f32.mrb[33].mxu0 }
0x4597   :  { %v4247_v7 = vsel %vm1456_vm10, %v4246_v5, -inf }
0x4598   :  { %4248 = vmax.xlane.f32.xlu1 %v4247_v7 }
0x4625   :  { %v4249_v48 = vpop.xlane.xlu1 %4248 }
0x4626   :  { %v4250_v17 = vsub.f32 %v4246_v5, %v4249_v48 }
0x4628   :  { %v4251_v10 = vmul.f32 1.442695, %v4250_v17 }
0x462a   :  { %6249 = vpow2.f32 %v4251_v10 }
0x4634   :  { %v6250_v4 = vpop.eup %6249 }
0x4635   :  { %v4253_v24 = vsel %vm1456_vm10, %v6250_v4, 0.0 }
0x4636   :  { %4254 = vadd.xlane.f32.xlu0 %v4253_v24 }
0x46c3   :  { %v4255_v12 = vpop.xlane.xlu0 %4254 }
0x46c4   :  { %6251 = vrcp.f32 %v4255_v12 }
0x46ce   :  { %v6252_v13 = vpop.eup %6251 }
0x46cf   :  { %v4257_v16 = vmul.f32 %v6252_v13, %v6250_v4 }
0x46d1   :  { %5610 = vmatmul.mubr.msk.f32.vlgmr.msra.gmra.mrb[34].mxu0 %vm1470_vm11, %v4257_v16 }
0x46d2   :  { %6039 = vmatpush3.bf16.msra.mxu0 %v6954_v54  ;;  %5620 = vmatprep.mubr.msk.f32.mxu0 %vm6479_vm0, %v6480_v20 }
0x46d3   :  { %6040 = vmatprep.subr.bf16.mxu0 %v6478_v1 }
0x46d6   :  { %6042 = vmatpush3.bf16.msra.mxu0 %v6958_v60 }
0x46d7   :  { %6043 = vmatprep.subr.bf16.mxu0 %v6478_v1 }
0x47a4   :  { %v4327_v32 = vpop.f32.mrb[34].mxu0 }
0x47a5   :  { %v5611_v18 = vpop.f32.mrb[35].mxu0  ;;  %5621 = vmatmul.mubr.msk.f32.vlgmr.msra.gmra.mrb[36].mxu0 %vm326_vm3, %v4327_v32 }
0x47a6   :  { %6045 = vmatpush3.bf16.msra.mxu0 %v6965_v63  ;;  %5631 = vmatprep.mubr.msk.f32.mxu0 %vm6479_vm0, %v6480_v20 }
0x47a7   :  { %6046 = vmatprep.subr.bf16.mxu0 %v6478_v1 }
0x47aa   :  { %6048 = vmatpush3.bf16.msra.mxu0 %v6969_v6 }
0x47ab   :  { %6049 = vmatprep.subr.bf16.mxu0 %v6478_v1 }
0x47ad   :  { %5632 = vmatmul.mubr.msk.f32.vlgmr.msra.gmra.mrb[38].mxu0 %vm326_vm3, %v4173_v2 }
0x47ae   :  { %6051 = vmatpush3.bf16.msra.mxu0 %v6980_v9  ;;  %5642 = vmatprep.mubr.msk.f32.mxu0 %vm6479_vm0, %v6480_v20  ;;  %v6257_v9 = vld [vmem:[#allocation15] ss:$0 sm:$0xff] }
0x47af   :  { %6052 = vmatprep.subr.bf16.mxu0 %v6478_v1 }
0x47b2   :  { %6054 = vmatpush3.bf16.msra.mxu0 %v6983_v11 }
0x4878   :  { %v4400_v54 = vpop.f32.mrb[36].mxu0 }
0x4879   :  { %v5622_v60 = vpop.f32.mrb[37].mxu0 }
0x4880   :  { %v4470_v63 = vpop.f32.mrb[38].mxu0 }
0x4881   :  { %v4471_v19 = vadd.f32 %v4470_v63, %v4400_v54  ;;  %v5633_v22 = vpop.f32.mrb[39].mxu0 }
0x4883   :  { %v4474_v6 = vadd.f32 %v6256_v26, %v4471_v19 }
0x4885   :  { %6253 = vtanh.f32 %v4474_v6 }
0x488f   :  { %v6254_v28 = vpop.eup %6253 }
0x4890   :  { %5643 = vmatmul.mubr.msk.f32.vlgmr.msra.gmra.mrb[40].mxu0 %vm326_vm3, %v6254_v28 }
0x4963   :  { %v4545_v30 = vpop.f32.mrb[40].mxu0 }
0x4964   :  { %v4546_v3 = vadd.f32 %v6257_v9, %v4545_v30  ;;  %v5644_v34 = vpop.f32.mrb[41].mxu0 }
0x4966   :  { %4549 = vst [vmem:[%s7436_s12 + $0xa] sm:$0x3] %v4546_v3 }
0x4967   :  { %4554 = vsyncpa [#allocation3], 1 }
0x4968   :  { %4555 = vsyncpa [#allocation5], 1 }
0x4969   :  { %4556 = vsyncpa [#allocation8], 1 }
0x496a   :  { %4557 = vsyncpa [#allocation11], 1 }
0x496b   :  { %4558 = vsyncpa [#allocation14], 1 }

</bundles_post_ra>
